<compile_context>
chip_gen: v5e
topology: v5e:2x2
jax: 0.10.0
libtpu: 0.0.40
codegen_flags: <defaults>
</compile_context>

<pallas_src>
import functools

import jax
import jax.numpy as jnp
import numpy as np
from jax.experimental import pallas as pl
from jax.experimental.pallas import tpu as pltpu


# ------------------------------ Fused Pallas kernel ------------------------------

def _lstm_head_kernel(*refs, n_layer, T, B, H):
    """Fused multi-layer LSTM + classifier.

    Ref order (inputs): pre0 (4, T*B, H) f32,  whh0 (4, H, H),
                        [wih_l (4, H, H), whh_l (4, H, H), b_l (4, 1, H)]  for l = 1..L-1,
                        w_cls (H, C_pad), b_cls (1, C_pad)
    then: out (B, C_pad) f32, scratch hseq (T*B, H) f32, scratch pre (4, T*B, H) f32.
    Gate order is PyTorch's [i, f, g, o]; all row blocks are time-major (row = t*B + b).
    """
    pre0_ref = refs[0]
    whh0_ref = refs[1]
    pos = 2
    deep_layers = []
    for _ in range(n_layer - 1):
        deep_layers.append((refs[pos], refs[pos + 1], refs[pos + 2]))
        pos += 3
    wcls_ref = refs[pos]
    bcls_ref = refs[pos + 1]
    out_ref = refs[pos + 2]
    hseq_scr = refs[pos + 3]
    pre_scr = refs[pos + 4]

    f32 = jnp.float32

    def run_layer(pre_of, whh_ref, store_hseq):
        """Recurrence with the input projection already hoisted.

        pre_of(k, t) -> (B, H): precomputed x-projection (+ bias) of gate k at step t.
        whh_ref[k]   -> (H, H): W_hh_k^T (MXU dtype).
        Returns h at the final timestep; optionally stores the hidden sequence
        (time-major rows) into hseq_scr for the next layer's hoisted projection.
        """
        whh = [whh_ref[k] for k in range(4)]          # hoisted weight loads
        h = jnp.zeros((B, H), f32)
        c = jnp.zeros((B, H), f32)
        # Fully unrolled, static offsets everywhere -> sublane-aligned slices only and
        # full scheduler visibility across steps (MXU/EUP/VPU overlap).
        for t in range(T):
            hb = h.astype(whh[0].dtype)               # bf16 feed, f32 accumulate
            g_i = pre_of(0, t) + jnp.dot(hb, whh[0], preferred_element_type=f32)
            g_f = pre_of(1, t) + jnp.dot(hb, whh[1], preferred_element_type=f32)
            g_g = pre_of(2, t) + jnp.dot(hb, whh[2], preferred_element_type=f32)
            g_o = pre_of(3, t) + jnp.dot(hb, whh[3], preferred_element_type=f32)
            i_g = jax.nn.sigmoid(g_i)
            f_g = jax.nn.sigmoid(g_f)
            gg_g = jnp.tanh(g_g)
            o_g = jax.nn.sigmoid(g_o)
            c = f_g * c + i_g * gg_g
            h = o_g * jnp.tanh(c)
            if store_hseq:
                hseq_scr[t * B:(t + 1) * B, :] = h    # sublane-aligned static store
        return h

    # ---- Layer 0: projection precomputed in the wrapper (one big XLA matmul).
    h_last = run_layer(lambda k, t: pre0_ref[k, t * B:(t + 1) * B, :],
                       whh0_ref, store_hseq=(n_layer > 1))

    # ---- Layers 1..L-1: hoist the input projection out of the recurrence (in-kernel).
    for li, (wih_ref, whh_ref, b_ref) in enumerate(deep_layers):
        x2d = hseq_scr[...].astype(wih_ref.dtype)     # (T*B, H) previous layer's hseq
        for k in range(4):                            # one well-shaped matmul per gate
            pre_scr[k] = (jnp.dot(x2d, wih_ref[k], preferred_element_type=f32)
                          + b_ref[k])
        is_last = (li == n_layer - 2)
        h_last = run_layer(lambda k, t: pre_scr[k, t * B:(t + 1) * B, :],
                           whh_ref, store_hseq=(not is_last))

    # ---- Classifier on h_{T-1}; padded to 128 lanes -> dense (unmasked) store.
    out_ref[...] = (jnp.dot(h_last.astype(wcls_ref.dtype), wcls_ref[...],
                            preferred_element_type=f32)
                    + bcls_ref[...])


# ------------------------------ Wrapper ------------------------------

def rnn_forward(x, lstm_params, w_cls, b_cls, *, mxu_dtype=jnp.bfloat16):
    """x: (B, T, D) batch_first.  lstm_params: list of (w_ih, w_hh, b_ih, b_hh) per layer
    in PyTorch layout ((4H, D_in), (4H, H), (4H,), (4H,)).  w_cls: (C, H), b_cls: (C,).
    Returns (B, C) float32 logits."""
    B, T, D = x.shape
    n_layer = len(lstm_params)
    H = lstm_params[0][1].shape[1]                    # w_hh: (4H, H)
    C = w_cls.shape[0]
    C_pad = ((C + 127) // 128) * 128
    f32 = jnp.float32

    def split_t(w, d_in):
        # (4H, d_in) -> (4, d_in, H): per-gate transposed weights, PyTorch order [i,f,g,o].
        return jnp.transpose(w.reshape(4, H, d_in), (0, 2, 1))

    # Layer-0 prologue: input projection + bias for ALL timesteps as one matmul (plain
    # XLA).  Also produces time-major rows (row = t*B + b), absorbing the batch_first
    # reordering so no separate swapaxes/copy of x is needed.
    w_ih0, w_hh0, b_ih0, b_hh0 = lstm_params[0]
    wih0_t = split_t(w_ih0, D).astype(mxu_dtype)                       # (4, D, H)
    pre0 = jnp.einsum("btd,kdh->ktbh", x.astype(mxu_dtype), wih0_t,
                      preferred_element_type=f32)
    pre0 = pre0 + (b_ih0 + b_hh0).reshape(4, 1, 1, H).astype(f32)
    pre0 = pre0.reshape(4, T * B, H)                                   # (4, T*B, H)

    args = [pre0, split_t(w_hh0, H).astype(mxu_dtype)]
    for (w_ih, w_hh, b_ih, b_hh) in lstm_params[1:]:
        args.append(split_t(w_ih, H).astype(mxu_dtype))                # (4, H, H)
        args.append(split_t(w_hh, H).astype(mxu_dtype))                # (4, H, H)
        args.append((b_ih + b_hh).reshape(4, 1, H).astype(f32))        # (4, 1, H)

    wcls_pad = jnp.zeros((H, C_pad), mxu_dtype).at[:, :C].set(w_cls.T.astype(mxu_dtype))
    bcls_pad = jnp.zeros((1, C_pad), f32).at[:, :C].set(b_cls.astype(f32))
    args += [wcls_pad, bcls_pad]

    kernel = functools.partial(_lstm_head_kernel, n_layer=n_layer, T=T, B=B, H=H)

    out_pad = pl.pallas_call(
        kernel,
        out_shape=jax.ShapeDtypeStruct((B, C_pad), f32),
        # Single invocation, no grid: every operand is a whole-array VMEM block
        # (total footprint ~100 KiB), so weights are resident exactly once.
        in_specs=[pl.BlockSpec(memory_space=pltpu.MemorySpace.VMEM)] * len(args),
        out_specs=pl.BlockSpec(memory_space=pltpu.MemorySpace.VMEM),
        scratch_shapes=[
            pltpu.VMEM((T * B, H), f32),       # inter-layer hidden sequence
            pltpu.VMEM((4, T * B, H), f32),    # hoisted input projection (layers >= 1)
        ],
    )(*args)
    return out_pad[:, :C]


# ------------------------------ Pure-JAX reference ------------------------------

def rnn_reference(x, lstm_params, w_cls, b_cls, *, matmul_dtype=jnp.float32):
    """Direct port of the PyTorch forward.  `matmul_dtype` sets the matmul input
    precision (float32 == exact PyTorch fp32 semantics; bfloat16 mirrors the kernel's
    MXU feed precision, with f32 accumulation and f32 elementwise/state either way)."""
    f32 = jnp.float32

    def mm(a, b):
        return jnp.dot(a.astype(matmul_dtype), b.astype(matmul_dtype),
                       preferred_element_type=f32)

    h_seq = x
    for (w_ih, w_hh, b_ih, b_hh) in lstm_params:
        B, T, _ = h_seq.shape
        H = w_hh.shape[1]

        def step(carry, x_t):
            h, c = carry
            gates = mm(x_t, w_ih.T) + mm(h, w_hh.T) + b_ih + b_hh
            i, f, g, o = jnp.split(gates, 4, axis=-1)
            i, f, o = jax.nn.sigmoid(i), jax.nn.sigmoid(f), jax.nn.sigmoid(o)
            g = jnp.tanh(g)
            c = f * c + i * g
            h = o * jnp.tanh(c)
            return (h, c), h

        init = (jnp.zeros((B, H), f32), jnp.zeros((B, H), f32))
        _, hs = jax.lax.scan(step, init, jnp.swapaxes(h_seq, 0, 1))
        h_seq = jnp.swapaxes(hs, 0, 1)
    return mm(h_seq[:, -1, :], w_cls.T) + b_cls


# ------------------------------ Main ------------------------------

if __name__ == "__main__":
    B, T, D = 8, 8, 32          # batch, seq_len, in_dim
    H = 32                      # hidden_dim
    N_LAYER = 2
    N_CLASS = 10

    key = jax.random.PRNGKey(0)

    def uniform(k, shape, bound):
        return jax.random.uniform(k, shape, jnp.float32, -bound, bound)

    k_lstm = 1.0 / np.sqrt(H)
    lstm_params = []
    in_size = D
    for _ in range(N_LAYER):
        key, k0, k1, k2, k3 = jax.random.split(key, 5)
        lstm_params.append((
            uniform(k0, (4 * H, in_size), k_lstm),   # w_ih: (4H, D_in)
            uniform(k1, (4 * H, H), k_lstm),         # w_hh: (4H, H)
            uniform(k2, (4 * H,), k_lstm),           # b_ih
            uniform(k3, (4 * H,), k_lstm),           # b_hh
        ))
        in_size = H

    key, kw, kb, kx = jax.random.split(key, 4)
    w_cls = uniform(kw, (N_CLASS, H), k_lstm)        # (n_class, H)
    b_cls = uniform(kb, (N_CLASS,), k_lstm)
    x = jax.random.normal(kx, (B, T, D), jnp.float32)

    fwd = jax.jit(rnn_forward, static_argnames=("mxu_dtype",))

    # 1) Exact PyTorch-f32 semantics check (f32 MXU feeds on both sides).
    out_f32 = jax.block_until_ready(fwd(x, lstm_params, w_cls, b_cls, mxu_dtype=jnp.float32))
    ref_f32 = jax.block_until_ready(
        rnn_reference(x, lstm_params, w_cls, b_cls, matmul_dtype=jnp.float32))
    np.testing.assert_allclose(np.asarray(out_f32), np.asarray(ref_f32), rtol=1e-5, atol=1e-5)

    # 2) Optimized path: bf16 MXU feeds (f32 accumulation / state), checked against the
    #    reference run at the same matmul input precision.
    out = jax.block_until_ready(fwd(x, lstm_params, w_cls, b_cls, mxu_dtype=jnp.bfloat16))
    ref = jax.block_until_ready(
        rnn_reference(x, lstm_params, w_cls, b_cls, matmul_dtype=jnp.bfloat16))
    np.testing.assert_allclose(np.asarray(out), np.asarray(ref), rtol=1e-3, atol=1e-3)

    assert out.shape == (B, N_CLASS)
    print("KERNEL_OK")
</pallas_src>

<mosaic_0001>
module attributes {stable_mosaic.version = 11 : i64} {
  func.func @_lstm_head_kernel(%arg0: memref<4x64x32xf32, #tpu.memory_space<vmem>>, %arg1: memref<4x32x32xf32, #tpu.memory_space<vmem>>, %arg2: memref<4x32x32xf32, #tpu.memory_space<vmem>>, %arg3: memref<4x32x32xf32, #tpu.memory_space<vmem>>, %arg4: memref<4x1x32xf32, #tpu.memory_space<vmem>>, %arg5: memref<32x128xf32, #tpu.memory_space<vmem>>, %arg6: memref<1x128xf32, #tpu.memory_space<vmem>>, %arg7: memref<8x128xf32, #tpu.memory_space<vmem>>, %arg8: memref<64x32xf32, #tpu.memory_space<vmem>>, %arg9: memref<4x64x32xf32, #tpu.memory_space<vmem>>) attributes {dimension_semantics = [], scalar_prefetch = 0 : i64, scratch_operands = 2 : i64, tpu.core_type = #tpu.core_type<tc>} {
    %c0 = arith.constant 0 : index
    %c0_0 = arith.constant 0 : index
    %c0_1 = arith.constant 0 : index
    %0 = vector.load %arg1[%c0, %c0_0, %c0_1] : memref<4x32x32xf32, #tpu.memory_space<vmem>>, vector<1x32x32xf32>
    %1 = vector.shape_cast %0 : vector<1x32x32xf32> to vector<32x32xf32>
    %c1 = arith.constant 1 : index
    %c0_2 = arith.constant 0 : index
    %c0_3 = arith.constant 0 : index
    %2 = vector.load %arg1[%c1, %c0_2, %c0_3] : memref<4x32x32xf32, #tpu.memory_space<vmem>>, vector<1x32x32xf32>
    %3 = vector.shape_cast %2 : vector<1x32x32xf32> to vector<32x32xf32>
    %c2 = arith.constant 2 : index
    %c0_4 = arith.constant 0 : index
    %c0_5 = arith.constant 0 : index
    %4 = vector.load %arg1[%c2, %c0_4, %c0_5] : memref<4x32x32xf32, #tpu.memory_space<vmem>>, vector<1x32x32xf32>
    %5 = vector.shape_cast %4 : vector<1x32x32xf32> to vector<32x32xf32>
    %c3 = arith.constant 3 : index
    %c0_6 = arith.constant 0 : index
    %c0_7 = arith.constant 0 : index
    %6 = vector.load %arg1[%c3, %c0_6, %c0_7] : memref<4x32x32xf32, #tpu.memory_space<vmem>>, vector<1x32x32xf32>
    %7 = vector.shape_cast %6 : vector<1x32x32xf32> to vector<32x32xf32>
    %cst = arith.constant 0.000000e+00 : f32
    %8 = vector.broadcast %cst : f32 to vector<8x32xf32>
    %cst_8 = arith.constant 0.000000e+00 : f32
    %9 = vector.broadcast %cst_8 : f32 to vector<8x32xf32>
    %c0_9 = arith.constant 0 : index
    %c0_10 = arith.constant 0 : index
    %c0_11 = arith.constant 0 : index
    %10 = vector.load %arg0[%c0_9, %c0_10, %c0_11] : memref<4x64x32xf32, #tpu.memory_space<vmem>>, vector<1x8x32xf32>
    %11 = vector.shape_cast %10 : vector<1x8x32xf32> to vector<8x32xf32>
    %cst_12 = arith.constant dense<0.000000e+00> : vector<8x32xf32>
    %12 = tpu.matmul %8, %1, %cst_12 {dimension_numbers = #tpu.dot_dimension_numbers<[1], [0], [0], [1], [0, 0, 1, 1], [], []>} : vector<8x32xf32>, vector<32x32xf32>, vector<8x32xf32> -> vector<8x32xf32>
    %13 = arith.addf %11, %12 : vector<8x32xf32>
    %c1_13 = arith.constant 1 : index
    %c0_14 = arith.constant 0 : index
    %c0_15 = arith.constant 0 : index
    %14 = vector.load %arg0[%c1_13, %c0_14, %c0_15] : memref<4x64x32xf32, #tpu.memory_space<vmem>>, vector<1x8x32xf32>
    %15 = vector.shape_cast %14 : vector<1x8x32xf32> to vector<8x32xf32>
    %cst_16 = arith.constant dense<0.000000e+00> : vector<8x32xf32>
    %16 = tpu.matmul %8, %3, %cst_16 {dimension_numbers = #tpu.dot_dimension_numbers<[1], [0], [0], [1], [0, 0, 1, 1], [], []>} : vector<8x32xf32>, vector<32x32xf32>, vector<8x32xf32> -> vector<8x32xf32>
    %17 = arith.addf %15, %16 : vector<8x32xf32>
    %c2_17 = arith.constant 2 : index
    %c0_18 = arith.constant 0 : index
    %c0_19 = arith.constant 0 : index
    %18 = vector.load %arg0[%c2_17, %c0_18, %c0_19] : memref<4x64x32xf32, #tpu.memory_space<vmem>>, vector<1x8x32xf32>
    %19 = vector.shape_cast %18 : vector<1x8x32xf32> to vector<8x32xf32>
    %cst_20 = arith.constant dense<0.000000e+00> : vector<8x32xf32>
    %20 = tpu.matmul %8, %5, %cst_20 {dimension_numbers = #tpu.dot_dimension_numbers<[1], [0], [0], [1], [0, 0, 1, 1], [], []>} : vector<8x32xf32>, vector<32x32xf32>, vector<8x32xf32> -> vector<8x32xf32>
    %21 = arith.addf %19, %20 : vector<8x32xf32>
    %c3_21 = arith.constant 3 : index
    %c0_22 = arith.constant 0 : index
    %c0_23 = arith.constant 0 : index
    %22 = vector.load %arg0[%c3_21, %c0_22, %c0_23] : memref<4x64x32xf32, #tpu.memory_space<vmem>>, vector<1x8x32xf32>
    %23 = vector.shape_cast %22 : vector<1x8x32xf32> to vector<8x32xf32>
    %cst_24 = arith.constant dense<0.000000e+00> : vector<8x32xf32>
    %24 = tpu.matmul %8, %7, %cst_24 {dimension_numbers = #tpu.dot_dimension_numbers<[1], [0], [0], [1], [0, 0, 1, 1], [], []>} : vector<8x32xf32>, vector<32x32xf32>, vector<8x32xf32> -> vector<8x32xf32>
    %25 = arith.addf %23, %24 : vector<8x32xf32>
    %26 = arith.negf %13 : vector<8x32xf32>
    %27 = math.exp %26 : vector<8x32xf32>
    %cst_25 = arith.constant 1.000000e+00 : f32
    %28 = vector.broadcast %cst_25 : f32 to vector<8x32xf32>
    %29 = arith.addf %28, %27 : vector<8x32xf32>
    %30 = arith.divf %28, %29 : vector<8x32xf32>
    %31 = arith.negf %17 : vector<8x32xf32>
    %32 = math.exp %31 : vector<8x32xf32>
    %cst_26 = arith.constant 1.000000e+00 : f32
    %33 = vector.broadcast %cst_26 : f32 to vector<8x32xf32>
    %34 = arith.addf %33, %32 : vector<8x32xf32>
    %35 = arith.divf %33, %34 : vector<8x32xf32>
    %36 = math.tanh %21 : vector<8x32xf32>
    %37 = arith.negf %25 : vector<8x32xf32>
    %38 = math.exp %37 : vector<8x32xf32>
    %cst_27 = arith.constant 1.000000e+00 : f32
    %39 = vector.broadcast %cst_27 : f32 to vector<8x32xf32>
    %40 = arith.addf %39, %38 : vector<8x32xf32>
    %41 = arith.divf %39, %40 : vector<8x32xf32>
    %42 = arith.mulf %35, %9 : vector<8x32xf32>
    %43 = arith.mulf %30, %36 : vector<8x32xf32>
    %44 = arith.addf %42, %43 : vector<8x32xf32>
    %45 = math.tanh %44 : vector<8x32xf32>
    %46 = arith.mulf %41, %45 : vector<8x32xf32>
    %c0_28 = arith.constant 0 : index
    %c0_29 = arith.constant 0 : index
    %47 = vector.load %arg8[%c0_28, %c0_29] : memref<64x32xf32, #tpu.memory_space<vmem>>, vector<8x32xf32>
    tpu.vector_store %arg8[%c0_28, %c0_29], %46 {strides = array<i32>} : memref<64x32xf32, #tpu.memory_space<vmem>>, vector<8x32xf32>,
    %c0_30 = arith.constant 0 : index
    %c8 = arith.constant 8 : index
    %c0_31 = arith.constant 0 : index
    %48 = vector.load %arg0[%c0_30, %c8, %c0_31] : memref<4x64x32xf32, #tpu.memory_space<vmem>>, vector<1x8x32xf32>
    %49 = vector.shape_cast %48 : vector<1x8x32xf32> to vector<8x32xf32>
    %cst_32 = arith.constant dense<0.000000e+00> : vector<8x32xf32>
    %50 = tpu.matmul %46, %1, %cst_32 {dimension_numbers = #tpu.dot_dimension_numbers<[1], [0], [0], [1], [0, 0, 1, 1], [], []>} : vector<8x32xf32>, vector<32x32xf32>, vector<8x32xf32> -> vector<8x32xf32>
    %51 = arith.addf %49, %50 : vector<8x32xf32>
    %c1_33 = arith.constant 1 : index
    %c8_34 = arith.constant 8 : index
    %c0_35 = arith.constant 0 : index
    %52 = vector.load %arg0[%c1_33, %c8_34, %c0_35] : memref<4x64x32xf32, #tpu.memory_space<vmem>>, vector<1x8x32xf32>
    %53 = vector.shape_cast %52 : vector<1x8x32xf32> to vector<8x32xf32>
    %cst_36 = arith.constant dense<0.000000e+00> : vector<8x32xf32>
    %54 = tpu.matmul %46, %3, %cst_36 {dimension_numbers = #tpu.dot_dimension_numbers<[1], [0], [0], [1], [0, 0, 1, 1], [], []>} : vector<8x32xf32>, vector<32x32xf32>, vector<8x32xf32> -> vector<8x32xf32>
    %55 = arith.addf %53, %54 : vector<8x32xf32>
    %c2_37 = arith.constant 2 : index
    %c8_38 = arith.constant 8 : index
    %c0_39 = arith.constant 0 : index
    %56 = vector.load %arg0[%c2_37, %c8_38, %c0_39] : memref<4x64x32xf32, #tpu.memory_space<vmem>>, vector<1x8x32xf32>
    %57 = vector.shape_cast %56 : vector<1x8x32xf32> to vector<8x32xf32>
    %cst_40 = arith.constant dense<0.000000e+00> : vector<8x32xf32>
    %58 = tpu.matmul %46, %5, %cst_40 {dimension_numbers = #tpu.dot_dimension_numbers<[1], [0], [0], [1], [0, 0, 1, 1], [], []>} : vector<8x32xf32>, vector<32x32xf32>, vector<8x32xf32> -> vector<8x32xf32>
    %59 = arith.addf %57, %58 : vector<8x32xf32>
    %c3_41 = arith.constant 3 : index
    %c8_42 = arith.constant 8 : index
    %c0_43 = arith.constant 0 : index
    %60 = vector.load %arg0[%c3_41, %c8_42, %c0_43] : memref<4x64x32xf32, #tpu.memory_space<vmem>>, vector<1x8x32xf32>
    %61 = vector.shape_cast %60 : vector<1x8x32xf32> to vector<8x32xf32>
    %cst_44 = arith.constant dense<0.000000e+00> : vector<8x32xf32>
    %62 = tpu.matmul %46, %7, %cst_44 {dimension_numbers = #tpu.dot_dimension_numbers<[1], [0], [0], [1], [0, 0, 1, 1], [], []>} : vector<8x32xf32>, vector<32x32xf32>, vector<8x32xf32> -> vector<8x32xf32>
    %63 = arith.addf %61, %62 : vector<8x32xf32>
    %64 = arith.negf %51 : vector<8x32xf32>
    %65 = math.exp %64 : vector<8x32xf32>
    %cst_45 = arith.constant 1.000000e+00 : f32
    %66 = vector.broadcast %cst_45 : f32 to vector<8x32xf32>
    %67 = arith.addf %66, %65 : vector<8x32xf32>
    %68 = arith.divf %66, %67 : vector<8x32xf32>
    %69 = arith.negf %55 : vector<8x32xf32>
    %70 = math.exp %69 : vector<8x32xf32>
    %cst_46 = arith.constant 1.000000e+00 : f32
    %71 = vector.broadcast %cst_46 : f32 to vector<8x32xf32>
    %72 = arith.addf %71, %70 : vector<8x32xf32>
    %73 = arith.divf %71, %72 : vector<8x32xf32>
    %74 = math.tanh %59 : vector<8x32xf32>
    %75 = arith.negf %63 : vector<8x32xf32>
    %76 = math.exp %75 : vector<8x32xf32>
    %cst_47 = arith.constant 1.000000e+00 : f32
    %77 = vector.broadcast %cst_47 : f32 to vector<8x32xf32>
    %78 = arith.addf %77, %76 : vector<8x32xf32>
    %79 = arith.divf %77, %78 : vector<8x32xf32>
    %80 = arith.mulf %73, %44 : vector<8x32xf32>
    %81 = arith.mulf %68, %74 : vector<8x32xf32>
    %82 = arith.addf %80, %81 : vector<8x32xf32>
    %83 = math.tanh %82 : vector<8x32xf32>
    %84 = arith.mulf %79, %83 : vector<8x32xf32>
    %c8_48 = arith.constant 8 : index
    %c0_49 = arith.constant 0 : index
    %85 = vector.load %arg8[%c8_48, %c0_49] : memref<64x32xf32, #tpu.memory_space<vmem>>, vector<8x32xf32>
    tpu.vector_store %arg8[%c8_48, %c0_49], %84 {strides = array<i32>} : memref<64x32xf32, #tpu.memory_space<vmem>>, vector<8x32xf32>,
    %c0_50 = arith.constant 0 : index
    %c16 = arith.constant 16 : index
    %c0_51 = arith.constant 0 : index
    %86 = vector.load %arg0[%c0_50, %c16, %c0_51] : memref<4x64x32xf32, #tpu.memory_space<vmem>>, vector<1x8x32xf32>
    %87 = vector.shape_cast %86 : vector<1x8x32xf32> to vector<8x32xf32>
    %cst_52 = arith.constant dense<0.000000e+00> : vector<8x32xf32>
    %88 = tpu.matmul %84, %1, %cst_52 {dimension_numbers = #tpu.dot_dimension_numbers<[1], [0], [0], [1], [0, 0, 1, 1], [], []>} : vector<8x32xf32>, vector<32x32xf32>, vector<8x32xf32> -> vector<8x32xf32>
    %89 = arith.addf %87, %88 : vector<8x32xf32>
    %c1_53 = arith.constant 1 : index
    %c16_54 = arith.constant 16 : index
    %c0_55 = arith.constant 0 : index
    %90 = vector.load %arg0[%c1_53, %c16_54, %c0_55] : memref<4x64x32xf32, #tpu.memory_space<vmem>>, vector<1x8x32xf32>
    %91 = vector.shape_cast %90 : vector<1x8x32xf32> to vector<8x32xf32>
    %cst_56 = arith.constant dense<0.000000e+00> : vector<8x32xf32>
    %92 = tpu.matmul %84, %3, %cst_56 {dimension_numbers = #tpu.dot_dimension_numbers<[1], [0], [0], [1], [0, 0, 1, 1], [], []>} : vector<8x32xf32>, vector<32x32xf32>, vector<8x32xf32> -> vector<8x32xf32>
    %93 = arith.addf %91, %92 : vector<8x32xf32>
    %c2_57 = arith.constant 2 : index
    %c16_58 = arith.constant 16 : index
    %c0_59 = arith.constant 0 : index
    %94 = vector.load %arg0[%c2_57, %c16_58, %c0_59] : memref<4x64x32xf32, #tpu.memory_space<vmem>>, vector<1x8x32xf32>
    %95 = vector.shape_cast %94 : vector<1x8x32xf32> to vector<8x32xf32>
    %cst_60 = arith.constant dense<0.000000e+00> : vector<8x32xf32>
    %96 = tpu.matmul %84, %5, %cst_60 {dimension_numbers = #tpu.dot_dimension_numbers<[1], [0], [0], [1], [0, 0, 1, 1], [], []>} : vector<8x32xf32>, vector<32x32xf32>, vector<8x32xf32> -> vector<8x32xf32>
    %97 = arith.addf %95, %96 : vector<8x32xf32>
    %c3_61 = arith.constant 3 : index
    %c16_62 = arith.constant 16 : index
    %c0_63 = arith.constant 0 : index
    %98 = vector.load %arg0[%c3_61, %c16_62, %c0_63] : memref<4x64x32xf32, #tpu.memory_space<vmem>>, vector<1x8x32xf32>
    %99 = vector.shape_cast %98 : vector<1x8x32xf32> to vector<8x32xf32>
    %cst_64 = arith.constant dense<0.000000e+00> : vector<8x32xf32>
    %100 = tpu.matmul %84, %7, %cst_64 {dimension_numbers = #tpu.dot_dimension_numbers<[1], [0], [0], [1], [0, 0, 1, 1], [], []>} : vector<8x32xf32>, vector<32x32xf32>, vector<8x32xf32> -> vector<8x32xf32>
    %101 = arith.addf %99, %100 : vector<8x32xf32>
    %102 = arith.negf %89 : vector<8x32xf32>
    %103 = math.exp %102 : vector<8x32xf32>
    %cst_65 = arith.constant 1.000000e+00 : f32
    %104 = vector.broadcast %cst_65 : f32 to vector<8x32xf32>
    %105 = arith.addf %104, %103 : vector<8x32xf32>
    %106 = arith.divf %104, %105 : vector<8x32xf32>
    %107 = arith.negf %93 : vector<8x32xf32>
    %108 = math.exp %107 : vector<8x32xf32>
    %cst_66 = arith.constant 1.000000e+00 : f32
    %109 = vector.broadcast %cst_66 : f32 to vector<8x32xf32>
    %110 = arith.addf %109, %108 : vector<8x32xf32>
    %111 = arith.divf %109, %110 : vector<8x32xf32>
    %112 = math.tanh %97 : vector<8x32xf32>
    %113 = arith.negf %101 : vector<8x32xf32>
    %114 = math.exp %113 : vector<8x32xf32>
    %cst_67 = arith.constant 1.000000e+00 : f32
    %115 = vector.broadcast %cst_67 : f32 to vector<8x32xf32>
    %116 = arith.addf %115, %114 : vector<8x32xf32>
    %117 = arith.divf %115, %116 : vector<8x32xf32>
    %118 = arith.mulf %111, %82 : vector<8x32xf32>
    %119 = arith.mulf %106, %112 : vector<8x32xf32>
    %120 = arith.addf %118, %119 : vector<8x32xf32>
    %121 = math.tanh %120 : vector<8x32xf32>
    %122 = arith.mulf %117, %121 : vector<8x32xf32>
    %c16_68 = arith.constant 16 : index
    %c0_69 = arith.constant 0 : index
    %123 = vector.load %arg8[%c16_68, %c0_69] : memref<64x32xf32, #tpu.memory_space<vmem>>, vector<8x32xf32>
    tpu.vector_store %arg8[%c16_68, %c0_69], %122 {strides = array<i32>} : memref<64x32xf32, #tpu.memory_space<vmem>>, vector<8x32xf32>,
    %c0_70 = arith.constant 0 : index
    %c24 = arith.constant 24 : index
    %c0_71 = arith.constant 0 : index
    %124 = vector.load %arg0[%c0_70, %c24, %c0_71] : memref<4x64x32xf32, #tpu.memory_space<vmem>>, vector<1x8x32xf32>
    %125 = vector.shape_cast %124 : vector<1x8x32xf32> to vector<8x32xf32>
    %cst_72 = arith.constant dense<0.000000e+00> : vector<8x32xf32>
    %126 = tpu.matmul %122, %1, %cst_72 {dimension_numbers = #tpu.dot_dimension_numbers<[1], [0], [0], [1], [0, 0, 1, 1], [], []>} : vector<8x32xf32>, vector<32x32xf32>, vector<8x32xf32> -> vector<8x32xf32>
    %127 = arith.addf %125, %126 : vector<8x32xf32>
    %c1_73 = arith.constant 1 : index
    %c24_74 = arith.constant 24 : index
    %c0_75 = arith.constant 0 : index
    %128 = vector.load %arg0[%c1_73, %c24_74, %c0_75] : memref<4x64x32xf32, #tpu.memory_space<vmem>>, vector<1x8x32xf32>
    %129 = vector.shape_cast %128 : vector<1x8x32xf32> to vector<8x32xf32>
    %cst_76 = arith.constant dense<0.000000e+00> : vector<8x32xf32>
    %130 = tpu.matmul %122, %3, %cst_76 {dimension_numbers = #tpu.dot_dimension_numbers<[1], [0], [0], [1], [0, 0, 1, 1], [], []>} : vector<8x32xf32>, vector<32x32xf32>, vector<8x32xf32> -> vector<8x32xf32>
    %131 = arith.addf %129, %130 : vector<8x32xf32>
    %c2_77 = arith.constant 2 : index
    %c24_78 = arith.constant 24 : index
    %c0_79 = arith.constant 0 : index
    %132 = vector.load %arg0[%c2_77, %c24_78, %c0_79] : memref<4x64x32xf32, #tpu.memory_space<vmem>>, vector<1x8x32xf32>
    %133 = vector.shape_cast %132 : vector<1x8x32xf32> to vector<8x32xf32>
    %cst_80 = arith.constant dense<0.000000e+00> : vector<8x32xf32>
    %134 = tpu.matmul %122, %5, %cst_80 {dimension_numbers = #tpu.dot_dimension_numbers<[1], [0], [0], [1], [0, 0, 1, 1], [], []>} : vector<8x32xf32>, vector<32x32xf32>, vector<8x32xf32> -> vector<8x32xf32>
    %135 = arith.addf %133, %134 : vector<8x32xf32>
    %c3_81 = arith.constant 3 : index
    %c24_82 = arith.constant 24 : index
    %c0_83 = arith.constant 0 : index
    %136 = vector.load %arg0[%c3_81, %c24_82, %c0_83] : memref<4x64x32xf32, #tpu.memory_space<vmem>>, vector<1x8x32xf32>
    %137 = vector.shape_cast %136 : vector<1x8x32xf32> to vector<8x32xf32>
    %cst_84 = arith.constant dense<0.000000e+00> : vector<8x32xf32>
    %138 = tpu.matmul %122, %7, %cst_84 {dimension_numbers = #tpu.dot_dimension_numbers<[1], [0], [0], [1], [0, 0, 1, 1], [], []>} : vector<8x32xf32>, vector<32x32xf32>, vector<8x32xf32> -> vector<8x32xf32>
    %139 = arith.addf %137, %138 : vector<8x32xf32>
    %140 = arith.negf %127 : vector<8x32xf32>
    %141 = math.exp %140 : vector<8x32xf32>
    %cst_85 = arith.constant 1.000000e+00 : f32
    %142 = vector.broadcast %cst_85 : f32 to vector<8x32xf32>
    %143 = arith.addf %142, %141 : vector<8x32xf32>
    %144 = arith.divf %142, %143 : vector<8x32xf32>
    %145 = arith.negf %131 : vector<8x32xf32>
    %146 = math.exp %145 : vector<8x32xf32>
    %cst_86 = arith.constant 1.000000e+00 : f32
    %147 = vector.broadcast %cst_86 : f32 to vector<8x32xf32>
    %148 = arith.addf %147, %146 : vector<8x32xf32>
    %149 = arith.divf %147, %148 : vector<8x32xf32>
    %150 = math.tanh %135 : vector<8x32xf32>
    %151 = arith.negf %139 : vector<8x32xf32>
    %152 = math.exp %151 : vector<8x32xf32>
    %cst_87 = arith.constant 1.000000e+00 : f32
    %153 = vector.broadcast %cst_87 : f32 to vector<8x32xf32>
    %154 = arith.addf %153, %152 : vector<8x32xf32>
    %155 = arith.divf %153, %154 : vector<8x32xf32>
    %156 = arith.mulf %149, %120 : vector<8x32xf32>
    %157 = arith.mulf %144, %150 : vector<8x32xf32>
    %158 = arith.addf %156, %157 : vector<8x32xf32>
    %159 = math.tanh %158 : vector<8x32xf32>
    %160 = arith.mulf %155, %159 : vector<8x32xf32>
    %c24_88 = arith.constant 24 : index
    %c0_89 = arith.constant 0 : index
    %161 = vector.load %arg8[%c24_88, %c0_89] : memref<64x32xf32, #tpu.memory_space<vmem>>, vector<8x32xf32>
    tpu.vector_store %arg8[%c24_88, %c0_89], %160 {strides = array<i32>} : memref<64x32xf32, #tpu.memory_space<vmem>>, vector<8x32xf32>,
    %c0_90 = arith.constant 0 : index
    %c32 = arith.constant 32 : index
    %c0_91 = arith.constant 0 : index
    %162 = vector.load %arg0[%c0_90, %c32, %c0_91] : memref<4x64x32xf32, #tpu.memory_space<vmem>>, vector<1x8x32xf32>
    %163 = vector.shape_cast %162 : vector<1x8x32xf32> to vector<8x32xf32>
    %cst_92 = arith.constant dense<0.000000e+00> : vector<8x32xf32>
    %164 = tpu.matmul %160, %1, %cst_92 {dimension_numbers = #tpu.dot_dimension_numbers<[1], [0], [0], [1], [0, 0, 1, 1], [], []>} : vector<8x32xf32>, vector<32x32xf32>, vector<8x32xf32> -> vector<8x32xf32>
    %165 = arith.addf %163, %164 : vector<8x32xf32>
    %c1_93 = arith.constant 1 : index
    %c32_94 = arith.constant 32 : index
    %c0_95 = arith.constant 0 : index
    %166 = vector.load %arg0[%c1_93, %c32_94, %c0_95] : memref<4x64x32xf32, #tpu.memory_space<vmem>>, vector<1x8x32xf32>
    %167 = vector.shape_cast %166 : vector<1x8x32xf32> to vector<8x32xf32>
    %cst_96 = arith.constant dense<0.000000e+00> : vector<8x32xf32>
    %168 = tpu.matmul %160, %3, %cst_96 {dimension_numbers = #tpu.dot_dimension_numbers<[1], [0], [0], [1], [0, 0, 1, 1], [], []>} : vector<8x32xf32>, vector<32x32xf32>, vector<8x32xf32> -> vector<8x32xf32>
    %169 = arith.addf %167, %168 : vector<8x32xf32>
    %c2_97 = arith.constant 2 : index
    %c32_98 = arith.constant 32 : index
    %c0_99 = arith.constant 0 : index
    %170 = vector.load %arg0[%c2_97, %c32_98, %c0_99] : memref<4x64x32xf32, #tpu.memory_space<vmem>>, vector<1x8x32xf32>
    %171 = vector.shape_cast %170 : vector<1x8x32xf32> to vector<8x32xf32>
    %cst_100 = arith.constant dense<0.000000e+00> : vector<8x32xf32>
    %172 = tpu.matmul %160, %5, %cst_100 {dimension_numbers = #tpu.dot_dimension_numbers<[1], [0], [0], [1], [0, 0, 1, 1], [], []>} : vector<8x32xf32>, vector<32x32xf32>, vector<8x32xf32> -> vector<8x32xf32>
    %173 = arith.addf %171, %172 : vector<8x32xf32>
    %c3_101 = arith.constant 3 : index
    %c32_102 = arith.constant 32 : index
    %c0_103 = arith.constant 0 : index
    %174 = vector.load %arg0[%c3_101, %c32_102, %c0_103] : memref<4x64x32xf32, #tpu.memory_space<vmem>>, vector<1x8x32xf32>
    %175 = vector.shape_cast %174 : vector<1x8x32xf32> to vector<8x32xf32>
    %cst_104 = arith.constant dense<0.000000e+00> : vector<8x32xf32>
    %176 = tpu.matmul %160, %7, %cst_104 {dimension_numbers = #tpu.dot_dimension_numbers<[1], [0], [0], [1], [0, 0, 1, 1], [], []>} : vector<8x32xf32>, vector<32x32xf32>, vector<8x32xf32> -> vector<8x32xf32>
    %177 = arith.addf %175, %176 : vector<8x32xf32>
    %178 = arith.negf %165 : vector<8x32xf32>
    %179 = math.exp %178 : vector<8x32xf32>
    %cst_105 = arith.constant 1.000000e+00 : f32
    %180 = vector.broadcast %cst_105 : f32 to vector<8x32xf32>
    %181 = arith.addf %180, %179 : vector<8x32xf32>
    %182 = arith.divf %180, %181 : vector<8x32xf32>
    %183 = arith.negf %169 : vector<8x32xf32>
    %184 = math.exp %183 : vector<8x32xf32>
    %cst_106 = arith.constant 1.000000e+00 : f32
    %185 = vector.broadcast %cst_106 : f32 to vector<8x32xf32>
    %186 = arith.addf %185, %184 : vector<8x32xf32>
    %187 = arith.divf %185, %186 : vector<8x32xf32>
    %188 = math.tanh %173 : vector<8x32xf32>
    %189 = arith.negf %177 : vector<8x32xf32>
    %190 = math.exp %189 : vector<8x32xf32>
    %cst_107 = arith.constant 1.000000e+00 : f32
    %191 = vector.broadcast %cst_107 : f32 to vector<8x32xf32>
    %192 = arith.addf %191, %190 : vector<8x32xf32>
    %193 = arith.divf %191, %192 : vector<8x32xf32>
    %194 = arith.mulf %187, %158 : vector<8x32xf32>
    %195 = arith.mulf %182, %188 : vector<8x32xf32>
    %196 = arith.addf %194, %195 : vector<8x32xf32>
    %197 = math.tanh %196 : vector<8x32xf32>
    %198 = arith.mulf %193, %197 : vector<8x32xf32>
    %c32_108 = arith.constant 32 : index
    %c0_109 = arith.constant 0 : index
    %199 = vector.load %arg8[%c32_108, %c0_109] : memref<64x32xf32, #tpu.memory_space<vmem>>, vector<8x32xf32>
    tpu.vector_store %arg8[%c32_108, %c0_109], %198 {strides = array<i32>} : memref<64x32xf32, #tpu.memory_space<vmem>>, vector<8x32xf32>,
    %c0_110 = arith.constant 0 : index
    %c40 = arith.constant 40 : index
    %c0_111 = arith.constant 0 : index
    %200 = vector.load %arg0[%c0_110, %c40, %c0_111] : memref<4x64x32xf32, #tpu.memory_space<vmem>>, vector<1x8x32xf32>
    %201 = vector.shape_cast %200 : vector<1x8x32xf32> to vector<8x32xf32>
    %cst_112 = arith.constant dense<0.000000e+00> : vector<8x32xf32>
    %202 = tpu.matmul %198, %1, %cst_112 {dimension_numbers = #tpu.dot_dimension_numbers<[1], [0], [0], [1], [0, 0, 1, 1], [], []>} : vector<8x32xf32>, vector<32x32xf32>, vector<8x32xf32> -> vector<8x32xf32>
    %203 = arith.addf %201, %202 : vector<8x32xf32>
    %c1_113 = arith.constant 1 : index
    %c40_114 = arith.constant 40 : index
    %c0_115 = arith.constant 0 : index
    %204 = vector.load %arg0[%c1_113, %c40_114, %c0_115] : memref<4x64x32xf32, #tpu.memory_space<vmem>>, vector<1x8x32xf32>
    %205 = vector.shape_cast %204 : vector<1x8x32xf32> to vector<8x32xf32>
    %cst_116 = arith.constant dense<0.000000e+00> : vector<8x32xf32>
    %206 = tpu.matmul %198, %3, %cst_116 {dimension_numbers = #tpu.dot_dimension_numbers<[1], [0], [0], [1], [0, 0, 1, 1], [], []>} : vector<8x32xf32>, vector<32x32xf32>, vector<8x32xf32> -> vector<8x32xf32>
    %207 = arith.addf %205, %206 : vector<8x32xf32>
    %c2_117 = arith.constant 2 : index
    %c40_118 = arith.constant 40 : index
    %c0_119 = arith.constant 0 : index
    %208 = vector.load %arg0[%c2_117, %c40_118, %c0_119] : memref<4x64x32xf32, #tpu.memory_space<vmem>>, vector<1x8x32xf32>
    %209 = vector.shape_cast %208 : vector<1x8x32xf32> to vector<8x32xf32>
    %cst_120 = arith.constant dense<0.000000e+00> : vector<8x32xf32>
    %210 = tpu.matmul %198, %5, %cst_120 {dimension_numbers = #tpu.dot_dimension_numbers<[1], [0], [0], [1], [0, 0, 1, 1], [], []>} : vector<8x32xf32>, vector<32x32xf32>, vector<8x32xf32> -> vector<8x32xf32>
    %211 = arith.addf %209, %210 : vector<8x32xf32>
    %c3_121 = arith.constant 3 : index
    %c40_122 = arith.constant 40 : index
    %c0_123 = arith.constant 0 : index
    %212 = vector.load %arg0[%c3_121, %c40_122, %c0_123] : memref<4x64x32xf32, #tpu.memory_space<vmem>>, vector<1x8x32xf32>
    %213 = vector.shape_cast %212 : vector<1x8x32xf32> to vector<8x32xf32>
    %cst_124 = arith.constant dense<0.000000e+00> : vector<8x32xf32>
    %214 = tpu.matmul %198, %7, %cst_124 {dimension_numbers = #tpu.dot_dimension_numbers<[1], [0], [0], [1], [0, 0, 1, 1], [], []>} : vector<8x32xf32>, vector<32x32xf32>, vector<8x32xf32> -> vector<8x32xf32>
    %215 = arith.addf %213, %214 : vector<8x32xf32>
    %216 = arith.negf %203 : vector<8x32xf32>
    %217 = math.exp %216 : vector<8x32xf32>
    %cst_125 = arith.constant 1.000000e+00 : f32
    %218 = vector.broadcast %cst_125 : f32 to vector<8x32xf32>
    %219 = arith.addf %218, %217 : vector<8x32xf32>
    %220 = arith.divf %218, %219 : vector<8x32xf32>
    %221 = arith.negf %207 : vector<8x32xf32>
    %222 = math.exp %221 : vector<8x32xf32>
    %cst_126 = arith.constant 1.000000e+00 : f32
    %223 = vector.broadcast %cst_126 : f32 to vector<8x32xf32>
    %224 = arith.addf %223, %222 : vector<8x32xf32>
    %225 = arith.divf %223, %224 : vector<8x32xf32>
    %226 = math.tanh %211 : vector<8x32xf32>
    %227 = arith.negf %215 : vector<8x32xf32>
    %228 = math.exp %227 : vector<8x32xf32>
    %cst_127 = arith.constant 1.000000e+00 : f32
    %229 = vector.broadcast %cst_127 : f32 to vector<8x32xf32>
    %230 = arith.addf %229, %228 : vector<8x32xf32>
    %231 = arith.divf %229, %230 : vector<8x32xf32>
    %232 = arith.mulf %225, %196 : vector<8x32xf32>
    %233 = arith.mulf %220, %226 : vector<8x32xf32>
    %234 = arith.addf %232, %233 : vector<8x32xf32>
    %235 = math.tanh %234 : vector<8x32xf32>
    %236 = arith.mulf %231, %235 : vector<8x32xf32>
    %c40_128 = arith.constant 40 : index
    %c0_129 = arith.constant 0 : index
    %237 = vector.load %arg8[%c40_128, %c0_129] : memref<64x32xf32, #tpu.memory_space<vmem>>, vector<8x32xf32>
    tpu.vector_store %arg8[%c40_128, %c0_129], %236 {strides = array<i32>} : memref<64x32xf32, #tpu.memory_space<vmem>>, vector<8x32xf32>,
    %c0_130 = arith.constant 0 : index
    %c48 = arith.constant 48 : index
    %c0_131 = arith.constant 0 : index
    %238 = vector.load %arg0[%c0_130, %c48, %c0_131] : memref<4x64x32xf32, #tpu.memory_space<vmem>>, vector<1x8x32xf32>
    %239 = vector.shape_cast %238 : vector<1x8x32xf32> to vector<8x32xf32>
    %cst_132 = arith.constant dense<0.000000e+00> : vector<8x32xf32>
    %240 = tpu.matmul %236, %1, %cst_132 {dimension_numbers = #tpu.dot_dimension_numbers<[1], [0], [0], [1], [0, 0, 1, 1], [], []>} : vector<8x32xf32>, vector<32x32xf32>, vector<8x32xf32> -> vector<8x32xf32>
    %241 = arith.addf %239, %240 : vector<8x32xf32>
    %c1_133 = arith.constant 1 : index
    %c48_134 = arith.constant 48 : index
    %c0_135 = arith.constant 0 : index
    %242 = vector.load %arg0[%c1_133, %c48_134, %c0_135] : memref<4x64x32xf32, #tpu.memory_space<vmem>>, vector<1x8x32xf32>
    %243 = vector.shape_cast %242 : vector<1x8x32xf32> to vector<8x32xf32>
    %cst_136 = arith.constant dense<0.000000e+00> : vector<8x32xf32>
    %244 = tpu.matmul %236, %3, %cst_136 {dimension_numbers = #tpu.dot_dimension_numbers<[1], [0], [0], [1], [0, 0, 1, 1], [], []>} : vector<8x32xf32>, vector<32x32xf32>, vector<8x32xf32> -> vector<8x32xf32>
    %245 = arith.addf %243, %244 : vector<8x32xf32>
    %c2_137 = arith.constant 2 : index
    %c48_138 = arith.constant 48 : index
    %c0_139 = arith.constant 0 : index
    %246 = vector.load %arg0[%c2_137, %c48_138, %c0_139] : memref<4x64x32xf32, #tpu.memory_space<vmem>>, vector<1x8x32xf32>
    %247 = vector.shape_cast %246 : vector<1x8x32xf32> to vector<8x32xf32>
    %cst_140 = arith.constant dense<0.000000e+00> : vector<8x32xf32>
    %248 = tpu.matmul %236, %5, %cst_140 {dimension_numbers = #tpu.dot_dimension_numbers<[1], [0], [0], [1], [0, 0, 1, 1], [], []>} : vector<8x32xf32>, vector<32x32xf32>, vector<8x32xf32> -> vector<8x32xf32>
    %249 = arith.addf %247, %248 : vector<8x32xf32>
    %c3_141 = arith.constant 3 : index
    %c48_142 = arith.constant 48 : index
    %c0_143 = arith.constant 0 : index
    %250 = vector.load %arg0[%c3_141, %c48_142, %c0_143] : memref<4x64x32xf32, #tpu.memory_space<vmem>>, vector<1x8x32xf32>
    %251 = vector.shape_cast %250 : vector<1x8x32xf32> to vector<8x32xf32>
    %cst_144 = arith.constant dense<0.000000e+00> : vector<8x32xf32>
    %252 = tpu.matmul %236, %7, %cst_144 {dimension_numbers = #tpu.dot_dimension_numbers<[1], [0], [0], [1], [0, 0, 1, 1], [], []>} : vector<8x32xf32>, vector<32x32xf32>, vector<8x32xf32> -> vector<8x32xf32>
    %253 = arith.addf %251, %252 : vector<8x32xf32>
    %254 = arith.negf %241 : vector<8x32xf32>
    %255 = math.exp %254 : vector<8x32xf32>
    %cst_145 = arith.constant 1.000000e+00 : f32
    %256 = vector.broadcast %cst_145 : f32 to vector<8x32xf32>
    %257 = arith.addf %256, %255 : vector<8x32xf32>
    %258 = arith.divf %256, %257 : vector<8x32xf32>
    %259 = arith.negf %245 : vector<8x32xf32>
    %260 = math.exp %259 : vector<8x32xf32>
    %cst_146 = arith.constant 1.000000e+00 : f32
    %261 = vector.broadcast %cst_146 : f32 to vector<8x32xf32>
    %262 = arith.addf %261, %260 : vector<8x32xf32>
    %263 = arith.divf %261, %262 : vector<8x32xf32>
    %264 = math.tanh %249 : vector<8x32xf32>
    %265 = arith.negf %253 : vector<8x32xf32>
    %266 = math.exp %265 : vector<8x32xf32>
    %cst_147 = arith.constant 1.000000e+00 : f32
    %267 = vector.broadcast %cst_147 : f32 to vector<8x32xf32>
    %268 = arith.addf %267, %266 : vector<8x32xf32>
    %269 = arith.divf %267, %268 : vector<8x32xf32>
    %270 = arith.mulf %263, %234 : vector<8x32xf32>
    %271 = arith.mulf %258, %264 : vector<8x32xf32>
    %272 = arith.addf %270, %271 : vector<8x32xf32>
    %273 = math.tanh %272 : vector<8x32xf32>
    %274 = arith.mulf %269, %273 : vector<8x32xf32>
    %c48_148 = arith.constant 48 : index
    %c0_149 = arith.constant 0 : index
    %275 = vector.load %arg8[%c48_148, %c0_149] : memref<64x32xf32, #tpu.memory_space<vmem>>, vector<8x32xf32>
    tpu.vector_store %arg8[%c48_148, %c0_149], %274 {strides = array<i32>} : memref<64x32xf32, #tpu.memory_space<vmem>>, vector<8x32xf32>,
    %c0_150 = arith.constant 0 : index
    %c56 = arith.constant 56 : index
    %c0_151 = arith.constant 0 : index
    %276 = vector.load %arg0[%c0_150, %c56, %c0_151] : memref<4x64x32xf32, #tpu.memory_space<vmem>>, vector<1x8x32xf32>
    %277 = vector.shape_cast %276 : vector<1x8x32xf32> to vector<8x32xf32>
    %cst_152 = arith.constant dense<0.000000e+00> : vector<8x32xf32>
    %278 = tpu.matmul %274, %1, %cst_152 {dimension_numbers = #tpu.dot_dimension_numbers<[1], [0], [0], [1], [0, 0, 1, 1], [], []>} : vector<8x32xf32>, vector<32x32xf32>, vector<8x32xf32> -> vector<8x32xf32>
    %279 = arith.addf %277, %278 : vector<8x32xf32>
    %c1_153 = arith.constant 1 : index
    %c56_154 = arith.constant 56 : index
    %c0_155 = arith.constant 0 : index
    %280 = vector.load %arg0[%c1_153, %c56_154, %c0_155] : memref<4x64x32xf32, #tpu.memory_space<vmem>>, vector<1x8x32xf32>
    %281 = vector.shape_cast %280 : vector<1x8x32xf32> to vector<8x32xf32>
    %cst_156 = arith.constant dense<0.000000e+00> : vector<8x32xf32>
    %282 = tpu.matmul %274, %3, %cst_156 {dimension_numbers = #tpu.dot_dimension_numbers<[1], [0], [0], [1], [0, 0, 1, 1], [], []>} : vector<8x32xf32>, vector<32x32xf32>, vector<8x32xf32> -> vector<8x32xf32>
    %283 = arith.addf %281, %282 : vector<8x32xf32>
    %c2_157 = arith.constant 2 : index
    %c56_158 = arith.constant 56 : index
    %c0_159 = arith.constant 0 : index
    %284 = vector.load %arg0[%c2_157, %c56_158, %c0_159] : memref<4x64x32xf32, #tpu.memory_space<vmem>>, vector<1x8x32xf32>
    %285 = vector.shape_cast %284 : vector<1x8x32xf32> to vector<8x32xf32>
    %cst_160 = arith.constant dense<0.000000e+00> : vector<8x32xf32>
    %286 = tpu.matmul %274, %5, %cst_160 {dimension_numbers = #tpu.dot_dimension_numbers<[1], [0], [0], [1], [0, 0, 1, 1], [], []>} : vector<8x32xf32>, vector<32x32xf32>, vector<8x32xf32> -> vector<8x32xf32>
    %287 = arith.addf %285, %286 : vector<8x32xf32>
    %c3_161 = arith.constant 3 : index
    %c56_162 = arith.constant 56 : index
    %c0_163 = arith.constant 0 : index
    %288 = vector.load %arg0[%c3_161, %c56_162, %c0_163] : memref<4x64x32xf32, #tpu.memory_space<vmem>>, vector<1x8x32xf32>
    %289 = vector.shape_cast %288 : vector<1x8x32xf32> to vector<8x32xf32>
    %cst_164 = arith.constant dense<0.000000e+00> : vector<8x32xf32>
    %290 = tpu.matmul %274, %7, %cst_164 {dimension_numbers = #tpu.dot_dimension_numbers<[1], [0], [0], [1], [0, 0, 1, 1], [], []>} : vector<8x32xf32>, vector<32x32xf32>, vector<8x32xf32> -> vector<8x32xf32>
    %291 = arith.addf %289, %290 : vector<8x32xf32>
    %292 = arith.negf %279 : vector<8x32xf32>
    %293 = math.exp %292 : vector<8x32xf32>
    %cst_165 = arith.constant 1.000000e+00 : f32
    %294 = vector.broadcast %cst_165 : f32 to vector<8x32xf32>
    %295 = arith.addf %294, %293 : vector<8x32xf32>
    %296 = arith.divf %294, %295 : vector<8x32xf32>
    %297 = arith.negf %283 : vector<8x32xf32>
    %298 = math.exp %297 : vector<8x32xf32>
    %cst_166 = arith.constant 1.000000e+00 : f32
    %299 = vector.broadcast %cst_166 : f32 to vector<8x32xf32>
    %300 = arith.addf %299, %298 : vector<8x32xf32>
    %301 = arith.divf %299, %300 : vector<8x32xf32>
    %302 = math.tanh %287 : vector<8x32xf32>
    %303 = arith.negf %291 : vector<8x32xf32>
    %304 = math.exp %303 : vector<8x32xf32>
    %cst_167 = arith.constant 1.000000e+00 : f32
    %305 = vector.broadcast %cst_167 : f32 to vector<8x32xf32>
    %306 = arith.addf %305, %304 : vector<8x32xf32>
    %307 = arith.divf %305, %306 : vector<8x32xf32>
    %308 = arith.mulf %301, %272 : vector<8x32xf32>
    %309 = arith.mulf %296, %302 : vector<8x32xf32>
    %310 = arith.addf %308, %309 : vector<8x32xf32>
    %311 = math.tanh %310 : vector<8x32xf32>
    %312 = arith.mulf %307, %311 : vector<8x32xf32>
    %c56_168 = arith.constant 56 : index
    %c0_169 = arith.constant 0 : index
    %313 = vector.load %arg8[%c56_168, %c0_169] : memref<64x32xf32, #tpu.memory_space<vmem>>, vector<8x32xf32>
    tpu.vector_store %arg8[%c56_168, %c0_169], %312 {strides = array<i32>} : memref<64x32xf32, #tpu.memory_space<vmem>>, vector<8x32xf32>,
    %c0_170 = arith.constant 0 : index
    %c0_171 = arith.constant 0 : index
    %314 = vector.load %arg8[%c0_170, %c0_171] : memref<64x32xf32, #tpu.memory_space<vmem>>, vector<64x32xf32>
    %c0_172 = arith.constant 0 : index
    %c0_173 = arith.constant 0 : index
    %c0_174 = arith.constant 0 : index
    %315 = vector.load %arg2[%c0_172, %c0_173, %c0_174] : memref<4x32x32xf32, #tpu.memory_space<vmem>>, vector<1x32x32xf32>
    %316 = vector.shape_cast %315 : vector<1x32x32xf32> to vector<32x32xf32>
    %cst_175 = arith.constant dense<0.000000e+00> : vector<64x32xf32>
    %317 = tpu.matmul %314, %316, %cst_175 {dimension_numbers = #tpu.dot_dimension_numbers<[1], [0], [0], [1], [0, 0, 1, 1], [], []>} : vector<64x32xf32>, vector<32x32xf32>, vector<64x32xf32> -> vector<64x32xf32>
    %c0_176 = arith.constant 0 : index
    %c0_177 = arith.constant 0 : index
    %c0_178 = arith.constant 0 : index
    %318 = vector.load %arg4[%c0_176, %c0_177, %c0_178] : memref<4x1x32xf32, #tpu.memory_space<vmem>>, vector<1x1x32xf32>
    %319 = vector.shape_cast %318 : vector<1x1x32xf32> to vector<1x32xf32>
    %320 = vector.broadcast %319 : vector<1x32xf32> to vector<64x32xf32>
    %321 = arith.addf %317, %320 : vector<64x32xf32>
    %c0_179 = arith.constant 0 : index
    %c0_180 = arith.constant 0 : index
    %c0_181 = arith.constant 0 : index
    %322 = vector.load %arg9[%c0_179, %c0_180, %c0_181] : memref<4x64x32xf32, #tpu.memory_space<vmem>>, vector<1x64x32xf32>
    %323 = vector.shape_cast %322 : vector<1x64x32xf32> to vector<64x32xf32>
    %324 = vector.shape_cast %321 : vector<64x32xf32> to vector<1x64x32xf32>
    tpu.vector_store %arg9[%c0_179, %c0_180, %c0_181], %324 {strides = array<i32>} : memref<4x64x32xf32, #tpu.memory_space<vmem>>, vector<1x64x32xf32>,
    %c1_182 = arith.constant 1 : index
    %c0_183 = arith.constant 0 : index
    %c0_184 = arith.constant 0 : index
    %325 = vector.load %arg2[%c1_182, %c0_183, %c0_184] : memref<4x32x32xf32, #tpu.memory_space<vmem>>, vector<1x32x32xf32>
    %326 = vector.shape_cast %325 : vector<1x32x32xf32> to vector<32x32xf32>
    %cst_185 = arith.constant dense<0.000000e+00> : vector<64x32xf32>
    %327 = tpu.matmul %314, %326, %cst_185 {dimension_numbers = #tpu.dot_dimension_numbers<[1], [0], [0], [1], [0, 0, 1, 1], [], []>} : vector<64x32xf32>, vector<32x32xf32>, vector<64x32xf32> -> vector<64x32xf32>
    %c1_186 = arith.constant 1 : index
    %c0_187 = arith.constant 0 : index
    %c0_188 = arith.constant 0 : index
    %328 = vector.load %arg4[%c1_186, %c0_187, %c0_188] : memref<4x1x32xf32, #tpu.memory_space<vmem>>, vector<1x1x32xf32>
    %329 = vector.shape_cast %328 : vector<1x1x32xf32> to vector<1x32xf32>
    %330 = vector.broadcast %329 : vector<1x32xf32> to vector<64x32xf32>
    %331 = arith.addf %327, %330 : vector<64x32xf32>
    %c1_189 = arith.constant 1 : index
    %c0_190 = arith.constant 0 : index
    %c0_191 = arith.constant 0 : index
    %332 = vector.load %arg9[%c1_189, %c0_190, %c0_191] : memref<4x64x32xf32, #tpu.memory_space<vmem>>, vector<1x64x32xf32>
    %333 = vector.shape_cast %332 : vector<1x64x32xf32> to vector<64x32xf32>
    %334 = vector.shape_cast %331 : vector<64x32xf32> to vector<1x64x32xf32>
    tpu.vector_store %arg9[%c1_189, %c0_190, %c0_191], %334 {strides = array<i32>} : memref<4x64x32xf32, #tpu.memory_space<vmem>>, vector<1x64x32xf32>,
    %c2_192 = arith.constant 2 : index
    %c0_193 = arith.constant 0 : index
    %c0_194 = arith.constant 0 : index
    %335 = vector.load %arg2[%c2_192, %c0_193, %c0_194] : memref<4x32x32xf32, #tpu.memory_space<vmem>>, vector<1x32x32xf32>
    %336 = vector.shape_cast %335 : vector<1x32x32xf32> to vector<32x32xf32>
    %cst_195 = arith.constant dense<0.000000e+00> : vector<64x32xf32>
    %337 = tpu.matmul %314, %336, %cst_195 {dimension_numbers = #tpu.dot_dimension_numbers<[1], [0], [0], [1], [0, 0, 1, 1], [], []>} : vector<64x32xf32>, vector<32x32xf32>, vector<64x32xf32> -> vector<64x32xf32>
    %c2_196 = arith.constant 2 : index
    %c0_197 = arith.constant 0 : index
    %c0_198 = arith.constant 0 : index
    %338 = vector.load %arg4[%c2_196, %c0_197, %c0_198] : memref<4x1x32xf32, #tpu.memory_space<vmem>>, vector<1x1x32xf32>
    %339 = vector.shape_cast %338 : vector<1x1x32xf32> to vector<1x32xf32>
    %340 = vector.broadcast %339 : vector<1x32xf32> to vector<64x32xf32>
    %341 = arith.addf %337, %340 : vector<64x32xf32>
    %c2_199 = arith.constant 2 : index
    %c0_200 = arith.constant 0 : index
    %c0_201 = arith.constant 0 : index
    %342 = vector.load %arg9[%c2_199, %c0_200, %c0_201] : memref<4x64x32xf32, #tpu.memory_space<vmem>>, vector<1x64x32xf32>
    %343 = vector.shape_cast %342 : vector<1x64x32xf32> to vector<64x32xf32>
    %344 = vector.shape_cast %341 : vector<64x32xf32> to vector<1x64x32xf32>
    tpu.vector_store %arg9[%c2_199, %c0_200, %c0_201], %344 {strides = array<i32>} : memref<4x64x32xf32, #tpu.memory_space<vmem>>, vector<1x64x32xf32>,
    %c3_202 = arith.constant 3 : index
    %c0_203 = arith.constant 0 : index
    %c0_204 = arith.constant 0 : index
    %345 = vector.load %arg2[%c3_202, %c0_203, %c0_204] : memref<4x32x32xf32, #tpu.memory_space<vmem>>, vector<1x32x32xf32>
    %346 = vector.shape_cast %345 : vector<1x32x32xf32> to vector<32x32xf32>
    %cst_205 = arith.constant dense<0.000000e+00> : vector<64x32xf32>
    %347 = tpu.matmul %314, %346, %cst_205 {dimension_numbers = #tpu.dot_dimension_numbers<[1], [0], [0], [1], [0, 0, 1, 1], [], []>} : vector<64x32xf32>, vector<32x32xf32>, vector<64x32xf32> -> vector<64x32xf32>
    %c3_206 = arith.constant 3 : index
    %c0_207 = arith.constant 0 : index
    %c0_208 = arith.constant 0 : index
    %348 = vector.load %arg4[%c3_206, %c0_207, %c0_208] : memref<4x1x32xf32, #tpu.memory_space<vmem>>, vector<1x1x32xf32>
    %349 = vector.shape_cast %348 : vector<1x1x32xf32> to vector<1x32xf32>
    %350 = vector.broadcast %349 : vector<1x32xf32> to vector<64x32xf32>
    %351 = arith.addf %347, %350 : vector<64x32xf32>
    %c3_209 = arith.constant 3 : index
    %c0_210 = arith.constant 0 : index
    %c0_211 = arith.constant 0 : index
    %352 = vector.load %arg9[%c3_209, %c0_210, %c0_211] : memref<4x64x32xf32, #tpu.memory_space<vmem>>, vector<1x64x32xf32>
    %353 = vector.shape_cast %352 : vector<1x64x32xf32> to vector<64x32xf32>
    %354 = vector.shape_cast %351 : vector<64x32xf32> to vector<1x64x32xf32>
    tpu.vector_store %arg9[%c3_209, %c0_210, %c0_211], %354 {strides = array<i32>} : memref<4x64x32xf32, #tpu.memory_space<vmem>>, vector<1x64x32xf32>,
    %c0_212 = arith.constant 0 : index
    %c0_213 = arith.constant 0 : index
    %c0_214 = arith.constant 0 : index
    %355 = vector.load %arg3[%c0_212, %c0_213, %c0_214] : memref<4x32x32xf32, #tpu.memory_space<vmem>>, vector<1x32x32xf32>
    %356 = vector.shape_cast %355 : vector<1x32x32xf32> to vector<32x32xf32>
    %c1_215 = arith.constant 1 : index
    %c0_216 = arith.constant 0 : index
    %c0_217 = arith.constant 0 : index
    %357 = vector.load %arg3[%c1_215, %c0_216, %c0_217] : memref<4x32x32xf32, #tpu.memory_space<vmem>>, vector<1x32x32xf32>
    %358 = vector.shape_cast %357 : vector<1x32x32xf32> to vector<32x32xf32>
    %c2_218 = arith.constant 2 : index
    %c0_219 = arith.constant 0 : index
    %c0_220 = arith.constant 0 : index
    %359 = vector.load %arg3[%c2_218, %c0_219, %c0_220] : memref<4x32x32xf32, #tpu.memory_space<vmem>>, vector<1x32x32xf32>
    %360 = vector.shape_cast %359 : vector<1x32x32xf32> to vector<32x32xf32>
    %c3_221 = arith.constant 3 : index
    %c0_222 = arith.constant 0 : index
    %c0_223 = arith.constant 0 : index
    %361 = vector.load %arg3[%c3_221, %c0_222, %c0_223] : memref<4x32x32xf32, #tpu.memory_space<vmem>>, vector<1x32x32xf32>
    %362 = vector.shape_cast %361 : vector<1x32x32xf32> to vector<32x32xf32>
    %cst_224 = arith.constant 0.000000e+00 : f32
    %363 = vector.broadcast %cst_224 : f32 to vector<8x32xf32>
    %cst_225 = arith.constant 0.000000e+00 : f32
    %364 = vector.broadcast %cst_225 : f32 to vector<8x32xf32>
    %c0_226 = arith.constant 0 : index
    %c0_227 = arith.constant 0 : index
    %c0_228 = arith.constant 0 : index
    %365 = vector.load %arg9[%c0_226, %c0_227, %c0_228] : memref<4x64x32xf32, #tpu.memory_space<vmem>>, vector<1x8x32xf32>
    %366 = vector.shape_cast %365 : vector<1x8x32xf32> to vector<8x32xf32>
    %cst_229 = arith.constant dense<0.000000e+00> : vector<8x32xf32>
    %367 = tpu.matmul %363, %356, %cst_229 {dimension_numbers = #tpu.dot_dimension_numbers<[1], [0], [0], [1], [0, 0, 1, 1], [], []>} : vector<8x32xf32>, vector<32x32xf32>, vector<8x32xf32> -> vector<8x32xf32>
    %368 = arith.addf %366, %367 : vector<8x32xf32>
    %c1_230 = arith.constant 1 : index
    %c0_231 = arith.constant 0 : index
    %c0_232 = arith.constant 0 : index
    %369 = vector.load %arg9[%c1_230, %c0_231, %c0_232] : memref<4x64x32xf32, #tpu.memory_space<vmem>>, vector<1x8x32xf32>
    %370 = vector.shape_cast %369 : vector<1x8x32xf32> to vector<8x32xf32>
    %cst_233 = arith.constant dense<0.000000e+00> : vector<8x32xf32>
    %371 = tpu.matmul %363, %358, %cst_233 {dimension_numbers = #tpu.dot_dimension_numbers<[1], [0], [0], [1], [0, 0, 1, 1], [], []>} : vector<8x32xf32>, vector<32x32xf32>, vector<8x32xf32> -> vector<8x32xf32>
    %372 = arith.addf %370, %371 : vector<8x32xf32>
    %c2_234 = arith.constant 2 : index
    %c0_235 = arith.constant 0 : index
    %c0_236 = arith.constant 0 : index
    %373 = vector.load %arg9[%c2_234, %c0_235, %c0_236] : memref<4x64x32xf32, #tpu.memory_space<vmem>>, vector<1x8x32xf32>
    %374 = vector.shape_cast %373 : vector<1x8x32xf32> to vector<8x32xf32>
    %cst_237 = arith.constant dense<0.000000e+00> : vector<8x32xf32>
    %375 = tpu.matmul %363, %360, %cst_237 {dimension_numbers = #tpu.dot_dimension_numbers<[1], [0], [0], [1], [0, 0, 1, 1], [], []>} : vector<8x32xf32>, vector<32x32xf32>, vector<8x32xf32> -> vector<8x32xf32>
    %376 = arith.addf %374, %375 : vector<8x32xf32>
    %c3_238 = arith.constant 3 : index
    %c0_239 = arith.constant 0 : index
    %c0_240 = arith.constant 0 : index
    %377 = vector.load %arg9[%c3_238, %c0_239, %c0_240] : memref<4x64x32xf32, #tpu.memory_space<vmem>>, vector<1x8x32xf32>
    %378 = vector.shape_cast %377 : vector<1x8x32xf32> to vector<8x32xf32>
    %cst_241 = arith.constant dense<0.000000e+00> : vector<8x32xf32>
    %379 = tpu.matmul %363, %362, %cst_241 {dimension_numbers = #tpu.dot_dimension_numbers<[1], [0], [0], [1], [0, 0, 1, 1], [], []>} : vector<8x32xf32>, vector<32x32xf32>, vector<8x32xf32> -> vector<8x32xf32>
    %380 = arith.addf %378, %379 : vector<8x32xf32>
    %381 = arith.negf %368 : vector<8x32xf32>
    %382 = math.exp %381 : vector<8x32xf32>
    %cst_242 = arith.constant 1.000000e+00 : f32
    %383 = vector.broadcast %cst_242 : f32 to vector<8x32xf32>
    %384 = arith.addf %383, %382 : vector<8x32xf32>
    %385 = arith.divf %383, %384 : vector<8x32xf32>
    %386 = arith.negf %372 : vector<8x32xf32>
    %387 = math.exp %386 : vector<8x32xf32>
    %cst_243 = arith.constant 1.000000e+00 : f32
    %388 = vector.broadcast %cst_243 : f32 to vector<8x32xf32>
    %389 = arith.addf %388, %387 : vector<8x32xf32>
    %390 = arith.divf %388, %389 : vector<8x32xf32>
    %391 = math.tanh %376 : vector<8x32xf32>
    %392 = arith.negf %380 : vector<8x32xf32>
    %393 = math.exp %392 : vector<8x32xf32>
    %cst_244 = arith.constant 1.000000e+00 : f32
    %394 = vector.broadcast %cst_244 : f32 to vector<8x32xf32>
    %395 = arith.addf %394, %393 : vector<8x32xf32>
    %396 = arith.divf %394, %395 : vector<8x32xf32>
    %397 = arith.mulf %390, %364 : vector<8x32xf32>
    %398 = arith.mulf %385, %391 : vector<8x32xf32>
    %399 = arith.addf %397, %398 : vector<8x32xf32>
    %400 = math.tanh %399 : vector<8x32xf32>
    %401 = arith.mulf %396, %400 : vector<8x32xf32>
    %c0_245 = arith.constant 0 : index
    %c8_246 = arith.constant 8 : index
    %c0_247 = arith.constant 0 : index
    %402 = vector.load %arg9[%c0_245, %c8_246, %c0_247] : memref<4x64x32xf32, #tpu.memory_space<vmem>>, vector<1x8x32xf32>
    %403 = vector.shape_cast %402 : vector<1x8x32xf32> to vector<8x32xf32>
    %cst_248 = arith.constant dense<0.000000e+00> : vector<8x32xf32>
    %404 = tpu.matmul %401, %356, %cst_248 {dimension_numbers = #tpu.dot_dimension_numbers<[1], [0], [0], [1], [0, 0, 1, 1], [], []>} : vector<8x32xf32>, vector<32x32xf32>, vector<8x32xf32> -> vector<8x32xf32>
    %405 = arith.addf %403, %404 : vector<8x32xf32>
    %c1_249 = arith.constant 1 : index
    %c8_250 = arith.constant 8 : index
    %c0_251 = arith.constant 0 : index
    %406 = vector.load %arg9[%c1_249, %c8_250, %c0_251] : memref<4x64x32xf32, #tpu.memory_space<vmem>>, vector<1x8x32xf32>
    %407 = vector.shape_cast %406 : vector<1x8x32xf32> to vector<8x32xf32>
    %cst_252 = arith.constant dense<0.000000e+00> : vector<8x32xf32>
    %408 = tpu.matmul %401, %358, %cst_252 {dimension_numbers = #tpu.dot_dimension_numbers<[1], [0], [0], [1], [0, 0, 1, 1], [], []>} : vector<8x32xf32>, vector<32x32xf32>, vector<8x32xf32> -> vector<8x32xf32>
    %409 = arith.addf %407, %408 : vector<8x32xf32>
    %c2_253 = arith.constant 2 : index
    %c8_254 = arith.constant 8 : index
    %c0_255 = arith.constant 0 : index
    %410 = vector.load %arg9[%c2_253, %c8_254, %c0_255] : memref<4x64x32xf32, #tpu.memory_space<vmem>>, vector<1x8x32xf32>
    %411 = vector.shape_cast %410 : vector<1x8x32xf32> to vector<8x32xf32>
    %cst_256 = arith.constant dense<0.000000e+00> : vector<8x32xf32>
    %412 = tpu.matmul %401, %360, %cst_256 {dimension_numbers = #tpu.dot_dimension_numbers<[1], [0], [0], [1], [0, 0, 1, 1], [], []>} : vector<8x32xf32>, vector<32x32xf32>, vector<8x32xf32> -> vector<8x32xf32>
    %413 = arith.addf %411, %412 : vector<8x32xf32>
    %c3_257 = arith.constant 3 : index
    %c8_258 = arith.constant 8 : index
    %c0_259 = arith.constant 0 : index
    %414 = vector.load %arg9[%c3_257, %c8_258, %c0_259] : memref<4x64x32xf32, #tpu.memory_space<vmem>>, vector<1x8x32xf32>
    %415 = vector.shape_cast %414 : vector<1x8x32xf32> to vector<8x32xf32>
    %cst_260 = arith.constant dense<0.000000e+00> : vector<8x32xf32>
    %416 = tpu.matmul %401, %362, %cst_260 {dimension_numbers = #tpu.dot_dimension_numbers<[1], [0], [0], [1], [0, 0, 1, 1], [], []>} : vector<8x32xf32>, vector<32x32xf32>, vector<8x32xf32> -> vector<8x32xf32>
    %417 = arith.addf %415, %416 : vector<8x32xf32>
    %418 = arith.negf %405 : vector<8x32xf32>
    %419 = math.exp %418 : vector<8x32xf32>
    %cst_261 = arith.constant 1.000000e+00 : f32
    %420 = vector.broadcast %cst_261 : f32 to vector<8x32xf32>
    %421 = arith.addf %420, %419 : vector<8x32xf32>
    %422 = arith.divf %420, %421 : vector<8x32xf32>
    %423 = arith.negf %409 : vector<8x32xf32>
    %424 = math.exp %423 : vector<8x32xf32>
    %cst_262 = arith.constant 1.000000e+00 : f32
    %425 = vector.broadcast %cst_262 : f32 to vector<8x32xf32>
    %426 = arith.addf %425, %424 : vector<8x32xf32>
    %427 = arith.divf %425, %426 : vector<8x32xf32>
    %428 = math.tanh %413 : vector<8x32xf32>
    %429 = arith.negf %417 : vector<8x32xf32>
    %430 = math.exp %429 : vector<8x32xf32>
    %cst_263 = arith.constant 1.000000e+00 : f32
    %431 = vector.broadcast %cst_263 : f32 to vector<8x32xf32>
    %432 = arith.addf %431, %430 : vector<8x32xf32>
    %433 = arith.divf %431, %432 : vector<8x32xf32>
    %434 = arith.mulf %427, %399 : vector<8x32xf32>
    %435 = arith.mulf %422, %428 : vector<8x32xf32>
    %436 = arith.addf %434, %435 : vector<8x32xf32>
    %437 = math.tanh %436 : vector<8x32xf32>
    %438 = arith.mulf %433, %437 : vector<8x32xf32>
    %c0_264 = arith.constant 0 : index
    %c16_265 = arith.constant 16 : index
    %c0_266 = arith.constant 0 : index
    %439 = vector.load %arg9[%c0_264, %c16_265, %c0_266] : memref<4x64x32xf32, #tpu.memory_space<vmem>>, vector<1x8x32xf32>
    %440 = vector.shape_cast %439 : vector<1x8x32xf32> to vector<8x32xf32>
    %cst_267 = arith.constant dense<0.000000e+00> : vector<8x32xf32>
    %441 = tpu.matmul %438, %356, %cst_267 {dimension_numbers = #tpu.dot_dimension_numbers<[1], [0], [0], [1], [0, 0, 1, 1], [], []>} : vector<8x32xf32>, vector<32x32xf32>, vector<8x32xf32> -> vector<8x32xf32>
    %442 = arith.addf %440, %441 : vector<8x32xf32>
    %c1_268 = arith.constant 1 : index
    %c16_269 = arith.constant 16 : index
    %c0_270 = arith.constant 0 : index
    %443 = vector.load %arg9[%c1_268, %c16_269, %c0_270] : memref<4x64x32xf32, #tpu.memory_space<vmem>>, vector<1x8x32xf32>
    %444 = vector.shape_cast %443 : vector<1x8x32xf32> to vector<8x32xf32>
    %cst_271 = arith.constant dense<0.000000e+00> : vector<8x32xf32>
    %445 = tpu.matmul %438, %358, %cst_271 {dimension_numbers = #tpu.dot_dimension_numbers<[1], [0], [0], [1], [0, 0, 1, 1], [], []>} : vector<8x32xf32>, vector<32x32xf32>, vector<8x32xf32> -> vector<8x32xf32>
    %446 = arith.addf %444, %445 : vector<8x32xf32>
    %c2_272 = arith.constant 2 : index
    %c16_273 = arith.constant 16 : index
    %c0_274 = arith.constant 0 : index
    %447 = vector.load %arg9[%c2_272, %c16_273, %c0_274] : memref<4x64x32xf32, #tpu.memory_space<vmem>>, vector<1x8x32xf32>
    %448 = vector.shape_cast %447 : vector<1x8x32xf32> to vector<8x32xf32>
    %cst_275 = arith.constant dense<0.000000e+00> : vector<8x32xf32>
    %449 = tpu.matmul %438, %360, %cst_275 {dimension_numbers = #tpu.dot_dimension_numbers<[1], [0], [0], [1], [0, 0, 1, 1], [], []>} : vector<8x32xf32>, vector<32x32xf32>, vector<8x32xf32> -> vector<8x32xf32>
    %450 = arith.addf %448, %449 : vector<8x32xf32>
    %c3_276 = arith.constant 3 : index
    %c16_277 = arith.constant 16 : index
    %c0_278 = arith.constant 0 : index
    %451 = vector.load %arg9[%c3_276, %c16_277, %c0_278] : memref<4x64x32xf32, #tpu.memory_space<vmem>>, vector<1x8x32xf32>
    %452 = vector.shape_cast %451 : vector<1x8x32xf32> to vector<8x32xf32>
    %cst_279 = arith.constant dense<0.000000e+00> : vector<8x32xf32>
    %453 = tpu.matmul %438, %362, %cst_279 {dimension_numbers = #tpu.dot_dimension_numbers<[1], [0], [0], [1], [0, 0, 1, 1], [], []>} : vector<8x32xf32>, vector<32x32xf32>, vector<8x32xf32> -> vector<8x32xf32>
    %454 = arith.addf %452, %453 : vector<8x32xf32>
    %455 = arith.negf %442 : vector<8x32xf32>
    %456 = math.exp %455 : vector<8x32xf32>
    %cst_280 = arith.constant 1.000000e+00 : f32
    %457 = vector.broadcast %cst_280 : f32 to vector<8x32xf32>
    %458 = arith.addf %457, %456 : vector<8x32xf32>
    %459 = arith.divf %457, %458 : vector<8x32xf32>
    %460 = arith.negf %446 : vector<8x32xf32>
    %461 = math.exp %460 : vector<8x32xf32>
    %cst_281 = arith.constant 1.000000e+00 : f32
    %462 = vector.broadcast %cst_281 : f32 to vector<8x32xf32>
    %463 = arith.addf %462, %461 : vector<8x32xf32>
    %464 = arith.divf %462, %463 : vector<8x32xf32>
    %465 = math.tanh %450 : vector<8x32xf32>
    %466 = arith.negf %454 : vector<8x32xf32>
    %467 = math.exp %466 : vector<8x32xf32>
    %cst_282 = arith.constant 1.000000e+00 : f32
    %468 = vector.broadcast %cst_282 : f32 to vector<8x32xf32>
    %469 = arith.addf %468, %467 : vector<8x32xf32>
    %470 = arith.divf %468, %469 : vector<8x32xf32>
    %471 = arith.mulf %464, %436 : vector<8x32xf32>
    %472 = arith.mulf %459, %465 : vector<8x32xf32>
    %473 = arith.addf %471, %472 : vector<8x32xf32>
    %474 = math.tanh %473 : vector<8x32xf32>
    %475 = arith.mulf %470, %474 : vector<8x32xf32>
    %c0_283 = arith.constant 0 : index
    %c24_284 = arith.constant 24 : index
    %c0_285 = arith.constant 0 : index
    %476 = vector.load %arg9[%c0_283, %c24_284, %c0_285] : memref<4x64x32xf32, #tpu.memory_space<vmem>>, vector<1x8x32xf32>
    %477 = vector.shape_cast %476 : vector<1x8x32xf32> to vector<8x32xf32>
    %cst_286 = arith.constant dense<0.000000e+00> : vector<8x32xf32>
    %478 = tpu.matmul %475, %356, %cst_286 {dimension_numbers = #tpu.dot_dimension_numbers<[1], [0], [0], [1], [0, 0, 1, 1], [], []>} : vector<8x32xf32>, vector<32x32xf32>, vector<8x32xf32> -> vector<8x32xf32>
    %479 = arith.addf %477, %478 : vector<8x32xf32>
    %c1_287 = arith.constant 1 : index
    %c24_288 = arith.constant 24 : index
    %c0_289 = arith.constant 0 : index
    %480 = vector.load %arg9[%c1_287, %c24_288, %c0_289] : memref<4x64x32xf32, #tpu.memory_space<vmem>>, vector<1x8x32xf32>
    %481 = vector.shape_cast %480 : vector<1x8x32xf32> to vector<8x32xf32>
    %cst_290 = arith.constant dense<0.000000e+00> : vector<8x32xf32>
    %482 = tpu.matmul %475, %358, %cst_290 {dimension_numbers = #tpu.dot_dimension_numbers<[1], [0], [0], [1], [0, 0, 1, 1], [], []>} : vector<8x32xf32>, vector<32x32xf32>, vector<8x32xf32> -> vector<8x32xf32>
    %483 = arith.addf %481, %482 : vector<8x32xf32>
    %c2_291 = arith.constant 2 : index
    %c24_292 = arith.constant 24 : index
    %c0_293 = arith.constant 0 : index
    %484 = vector.load %arg9[%c2_291, %c24_292, %c0_293] : memref<4x64x32xf32, #tpu.memory_space<vmem>>, vector<1x8x32xf32>
    %485 = vector.shape_cast %484 : vector<1x8x32xf32> to vector<8x32xf32>
    %cst_294 = arith.constant dense<0.000000e+00> : vector<8x32xf32>
    %486 = tpu.matmul %475, %360, %cst_294 {dimension_numbers = #tpu.dot_dimension_numbers<[1], [0], [0], [1], [0, 0, 1, 1], [], []>} : vector<8x32xf32>, vector<32x32xf32>, vector<8x32xf32> -> vector<8x32xf32>
    %487 = arith.addf %485, %486 : vector<8x32xf32>
    %c3_295 = arith.constant 3 : index
    %c24_296 = arith.constant 24 : index
    %c0_297 = arith.constant 0 : index
    %488 = vector.load %arg9[%c3_295, %c24_296, %c0_297] : memref<4x64x32xf32, #tpu.memory_space<vmem>>, vector<1x8x32xf32>
    %489 = vector.shape_cast %488 : vector<1x8x32xf32> to vector<8x32xf32>
    %cst_298 = arith.constant dense<0.000000e+00> : vector<8x32xf32>
    %490 = tpu.matmul %475, %362, %cst_298 {dimension_numbers = #tpu.dot_dimension_numbers<[1], [0], [0], [1], [0, 0, 1, 1], [], []>} : vector<8x32xf32>, vector<32x32xf32>, vector<8x32xf32> -> vector<8x32xf32>
    %491 = arith.addf %489, %490 : vector<8x32xf32>
    %492 = arith.negf %479 : vector<8x32xf32>
    %493 = math.exp %492 : vector<8x32xf32>
    %cst_299 = arith.constant 1.000000e+00 : f32
    %494 = vector.broadcast %cst_299 : f32 to vector<8x32xf32>
    %495 = arith.addf %494, %493 : vector<8x32xf32>
    %496 = arith.divf %494, %495 : vector<8x32xf32>
    %497 = arith.negf %483 : vector<8x32xf32>
    %498 = math.exp %497 : vector<8x32xf32>
    %cst_300 = arith.constant 1.000000e+00 : f32
    %499 = vector.broadcast %cst_300 : f32 to vector<8x32xf32>
    %500 = arith.addf %499, %498 : vector<8x32xf32>
    %501 = arith.divf %499, %500 : vector<8x32xf32>
    %502 = math.tanh %487 : vector<8x32xf32>
    %503 = arith.negf %491 : vector<8x32xf32>
    %504 = math.exp %503 : vector<8x32xf32>
    %cst_301 = arith.constant 1.000000e+00 : f32
    %505 = vector.broadcast %cst_301 : f32 to vector<8x32xf32>
    %506 = arith.addf %505, %504 : vector<8x32xf32>
    %507 = arith.divf %505, %506 : vector<8x32xf32>
    %508 = arith.mulf %501, %473 : vector<8x32xf32>
    %509 = arith.mulf %496, %502 : vector<8x32xf32>
    %510 = arith.addf %508, %509 : vector<8x32xf32>
    %511 = math.tanh %510 : vector<8x32xf32>
    %512 = arith.mulf %507, %511 : vector<8x32xf32>
    %c0_302 = arith.constant 0 : index
    %c32_303 = arith.constant 32 : index
    %c0_304 = arith.constant 0 : index
    %513 = vector.load %arg9[%c0_302, %c32_303, %c0_304] : memref<4x64x32xf32, #tpu.memory_space<vmem>>, vector<1x8x32xf32>
    %514 = vector.shape_cast %513 : vector<1x8x32xf32> to vector<8x32xf32>
    %cst_305 = arith.constant dense<0.000000e+00> : vector<8x32xf32>
    %515 = tpu.matmul %512, %356, %cst_305 {dimension_numbers = #tpu.dot_dimension_numbers<[1], [0], [0], [1], [0, 0, 1, 1], [], []>} : vector<8x32xf32>, vector<32x32xf32>, vector<8x32xf32> -> vector<8x32xf32>
    %516 = arith.addf %514, %515 : vector<8x32xf32>
    %c1_306 = arith.constant 1 : index
    %c32_307 = arith.constant 32 : index
    %c0_308 = arith.constant 0 : index
    %517 = vector.load %arg9[%c1_306, %c32_307, %c0_308] : memref<4x64x32xf32, #tpu.memory_space<vmem>>, vector<1x8x32xf32>
    %518 = vector.shape_cast %517 : vector<1x8x32xf32> to vector<8x32xf32>
    %cst_309 = arith.constant dense<0.000000e+00> : vector<8x32xf32>
    %519 = tpu.matmul %512, %358, %cst_309 {dimension_numbers = #tpu.dot_dimension_numbers<[1], [0], [0], [1], [0, 0, 1, 1], [], []>} : vector<8x32xf32>, vector<32x32xf32>, vector<8x32xf32> -> vector<8x32xf32>
    %520 = arith.addf %518, %519 : vector<8x32xf32>
    %c2_310 = arith.constant 2 : index
    %c32_311 = arith.constant 32 : index
    %c0_312 = arith.constant 0 : index
    %521 = vector.load %arg9[%c2_310, %c32_311, %c0_312] : memref<4x64x32xf32, #tpu.memory_space<vmem>>, vector<1x8x32xf32>
    %522 = vector.shape_cast %521 : vector<1x8x32xf32> to vector<8x32xf32>
    %cst_313 = arith.constant dense<0.000000e+00> : vector<8x32xf32>
    %523 = tpu.matmul %512, %360, %cst_313 {dimension_numbers = #tpu.dot_dimension_numbers<[1], [0], [0], [1], [0, 0, 1, 1], [], []>} : vector<8x32xf32>, vector<32x32xf32>, vector<8x32xf32> -> vector<8x32xf32>
    %524 = arith.addf %522, %523 : vector<8x32xf32>
    %c3_314 = arith.constant 3 : index
    %c32_315 = arith.constant 32 : index
    %c0_316 = arith.constant 0 : index
    %525 = vector.load %arg9[%c3_314, %c32_315, %c0_316] : memref<4x64x32xf32, #tpu.memory_space<vmem>>, vector<1x8x32xf32>
    %526 = vector.shape_cast %525 : vector<1x8x32xf32> to vector<8x32xf32>
    %cst_317 = arith.constant dense<0.000000e+00> : vector<8x32xf32>
    %527 = tpu.matmul %512, %362, %cst_317 {dimension_numbers = #tpu.dot_dimension_numbers<[1], [0], [0], [1], [0, 0, 1, 1], [], []>} : vector<8x32xf32>, vector<32x32xf32>, vector<8x32xf32> -> vector<8x32xf32>
    %528 = arith.addf %526, %527 : vector<8x32xf32>
    %529 = arith.negf %516 : vector<8x32xf32>
    %530 = math.exp %529 : vector<8x32xf32>
    %cst_318 = arith.constant 1.000000e+00 : f32
    %531 = vector.broadcast %cst_318 : f32 to vector<8x32xf32>
    %532 = arith.addf %531, %530 : vector<8x32xf32>
    %533 = arith.divf %531, %532 : vector<8x32xf32>
    %534 = arith.negf %520 : vector<8x32xf32>
    %535 = math.exp %534 : vector<8x32xf32>
    %cst_319 = arith.constant 1.000000e+00 : f32
    %536 = vector.broadcast %cst_319 : f32 to vector<8x32xf32>
    %537 = arith.addf %536, %535 : vector<8x32xf32>
    %538 = arith.divf %536, %537 : vector<8x32xf32>
    %539 = math.tanh %524 : vector<8x32xf32>
    %540 = arith.negf %528 : vector<8x32xf32>
    %541 = math.exp %540 : vector<8x32xf32>
    %cst_320 = arith.constant 1.000000e+00 : f32
    %542 = vector.broadcast %cst_320 : f32 to vector<8x32xf32>
    %543 = arith.addf %542, %541 : vector<8x32xf32>
    %544 = arith.divf %542, %543 : vector<8x32xf32>
    %545 = arith.mulf %538, %510 : vector<8x32xf32>
    %546 = arith.mulf %533, %539 : vector<8x32xf32>
    %547 = arith.addf %545, %546 : vector<8x32xf32>
    %548 = math.tanh %547 : vector<8x32xf32>
    %549 = arith.mulf %544, %548 : vector<8x32xf32>
    %c0_321 = arith.constant 0 : index
    %c40_322 = arith.constant 40 : index
    %c0_323 = arith.constant 0 : index
    %550 = vector.load %arg9[%c0_321, %c40_322, %c0_323] : memref<4x64x32xf32, #tpu.memory_space<vmem>>, vector<1x8x32xf32>
    %551 = vector.shape_cast %550 : vector<1x8x32xf32> to vector<8x32xf32>
    %cst_324 = arith.constant dense<0.000000e+00> : vector<8x32xf32>
    %552 = tpu.matmul %549, %356, %cst_324 {dimension_numbers = #tpu.dot_dimension_numbers<[1], [0], [0], [1], [0, 0, 1, 1], [], []>} : vector<8x32xf32>, vector<32x32xf32>, vector<8x32xf32> -> vector<8x32xf32>
    %553 = arith.addf %551, %552 : vector<8x32xf32>
    %c1_325 = arith.constant 1 : index
    %c40_326 = arith.constant 40 : index
    %c0_327 = arith.constant 0 : index
    %554 = vector.load %arg9[%c1_325, %c40_326, %c0_327] : memref<4x64x32xf32, #tpu.memory_space<vmem>>, vector<1x8x32xf32>
    %555 = vector.shape_cast %554 : vector<1x8x32xf32> to vector<8x32xf32>
    %cst_328 = arith.constant dense<0.000000e+00> : vector<8x32xf32>
    %556 = tpu.matmul %549, %358, %cst_328 {dimension_numbers = #tpu.dot_dimension_numbers<[1], [0], [0], [1], [0, 0, 1, 1], [], []>} : vector<8x32xf32>, vector<32x32xf32>, vector<8x32xf32> -> vector<8x32xf32>
    %557 = arith.addf %555, %556 : vector<8x32xf32>
    %c2_329 = arith.constant 2 : index
    %c40_330 = arith.constant 40 : index
    %c0_331 = arith.constant 0 : index
    %558 = vector.load %arg9[%c2_329, %c40_330, %c0_331] : memref<4x64x32xf32, #tpu.memory_space<vmem>>, vector<1x8x32xf32>
    %559 = vector.shape_cast %558 : vector<1x8x32xf32> to vector<8x32xf32>
    %cst_332 = arith.constant dense<0.000000e+00> : vector<8x32xf32>
    %560 = tpu.matmul %549, %360, %cst_332 {dimension_numbers = #tpu.dot_dimension_numbers<[1], [0], [0], [1], [0, 0, 1, 1], [], []>} : vector<8x32xf32>, vector<32x32xf32>, vector<8x32xf32> -> vector<8x32xf32>
    %561 = arith.addf %559, %560 : vector<8x32xf32>
    %c3_333 = arith.constant 3 : index
    %c40_334 = arith.constant 40 : index
    %c0_335 = arith.constant 0 : index
    %562 = vector.load %arg9[%c3_333, %c40_334, %c0_335] : memref<4x64x32xf32, #tpu.memory_space<vmem>>, vector<1x8x32xf32>
    %563 = vector.shape_cast %562 : vector<1x8x32xf32> to vector<8x32xf32>
    %cst_336 = arith.constant dense<0.000000e+00> : vector<8x32xf32>
    %564 = tpu.matmul %549, %362, %cst_336 {dimension_numbers = #tpu.dot_dimension_numbers<[1], [0], [0], [1], [0, 0, 1, 1], [], []>} : vector<8x32xf32>, vector<32x32xf32>, vector<8x32xf32> -> vector<8x32xf32>
    %565 = arith.addf %563, %564 : vector<8x32xf32>
    %566 = arith.negf %553 : vector<8x32xf32>
    %567 = math.exp %566 : vector<8x32xf32>
    %cst_337 = arith.constant 1.000000e+00 : f32
    %568 = vector.broadcast %cst_337 : f32 to vector<8x32xf32>
    %569 = arith.addf %568, %567 : vector<8x32xf32>
    %570 = arith.divf %568, %569 : vector<8x32xf32>
    %571 = arith.negf %557 : vector<8x32xf32>
    %572 = math.exp %571 : vector<8x32xf32>
    %cst_338 = arith.constant 1.000000e+00 : f32
    %573 = vector.broadcast %cst_338 : f32 to vector<8x32xf32>
    %574 = arith.addf %573, %572 : vector<8x32xf32>
    %575 = arith.divf %573, %574 : vector<8x32xf32>
    %576 = math.tanh %561 : vector<8x32xf32>
    %577 = arith.negf %565 : vector<8x32xf32>
    %578 = math.exp %577 : vector<8x32xf32>
    %cst_339 = arith.constant 1.000000e+00 : f32
    %579 = vector.broadcast %cst_339 : f32 to vector<8x32xf32>
    %580 = arith.addf %579, %578 : vector<8x32xf32>
    %581 = arith.divf %579, %580 : vector<8x32xf32>
    %582 = arith.mulf %575, %547 : vector<8x32xf32>
    %583 = arith.mulf %570, %576 : vector<8x32xf32>
    %584 = arith.addf %582, %583 : vector<8x32xf32>
    %585 = math.tanh %584 : vector<8x32xf32>
    %586 = arith.mulf %581, %585 : vector<8x32xf32>
    %c0_340 = arith.constant 0 : index
    %c48_341 = arith.constant 48 : index
    %c0_342 = arith.constant 0 : index
    %587 = vector.load %arg9[%c0_340, %c48_341, %c0_342] : memref<4x64x32xf32, #tpu.memory_space<vmem>>, vector<1x8x32xf32>
    %588 = vector.shape_cast %587 : vector<1x8x32xf32> to vector<8x32xf32>
    %cst_343 = arith.constant dense<0.000000e+00> : vector<8x32xf32>
    %589 = tpu.matmul %586, %356, %cst_343 {dimension_numbers = #tpu.dot_dimension_numbers<[1], [0], [0], [1], [0, 0, 1, 1], [], []>} : vector<8x32xf32>, vector<32x32xf32>, vector<8x32xf32> -> vector<8x32xf32>
    %590 = arith.addf %588, %589 : vector<8x32xf32>
    %c1_344 = arith.constant 1 : index
    %c48_345 = arith.constant 48 : index
    %c0_346 = arith.constant 0 : index
    %591 = vector.load %arg9[%c1_344, %c48_345, %c0_346] : memref<4x64x32xf32, #tpu.memory_space<vmem>>, vector<1x8x32xf32>
    %592 = vector.shape_cast %591 : vector<1x8x32xf32> to vector<8x32xf32>
    %cst_347 = arith.constant dense<0.000000e+00> : vector<8x32xf32>
    %593 = tpu.matmul %586, %358, %cst_347 {dimension_numbers = #tpu.dot_dimension_numbers<[1], [0], [0], [1], [0, 0, 1, 1], [], []>} : vector<8x32xf32>, vector<32x32xf32>, vector<8x32xf32> -> vector<8x32xf32>
    %594 = arith.addf %592, %593 : vector<8x32xf32>
    %c2_348 = arith.constant 2 : index
    %c48_349 = arith.constant 48 : index
    %c0_350 = arith.constant 0 : index
    %595 = vector.load %arg9[%c2_348, %c48_349, %c0_350] : memref<4x64x32xf32, #tpu.memory_space<vmem>>, vector<1x8x32xf32>
    %596 = vector.shape_cast %595 : vector<1x8x32xf32> to vector<8x32xf32>
    %cst_351 = arith.constant dense<0.000000e+00> : vector<8x32xf32>
    %597 = tpu.matmul %586, %360, %cst_351 {dimension_numbers = #tpu.dot_dimension_numbers<[1], [0], [0], [1], [0, 0, 1, 1], [], []>} : vector<8x32xf32>, vector<32x32xf32>, vector<8x32xf32> -> vector<8x32xf32>
    %598 = arith.addf %596, %597 : vector<8x32xf32>
    %c3_352 = arith.constant 3 : index
    %c48_353 = arith.constant 48 : index
    %c0_354 = arith.constant 0 : index
    %599 = vector.load %arg9[%c3_352, %c48_353, %c0_354] : memref<4x64x32xf32, #tpu.memory_space<vmem>>, vector<1x8x32xf32>
    %600 = vector.shape_cast %599 : vector<1x8x32xf32> to vector<8x32xf32>
    %cst_355 = arith.constant dense<0.000000e+00> : vector<8x32xf32>
    %601 = tpu.matmul %586, %362, %cst_355 {dimension_numbers = #tpu.dot_dimension_numbers<[1], [0], [0], [1], [0, 0, 1, 1], [], []>} : vector<8x32xf32>, vector<32x32xf32>, vector<8x32xf32> -> vector<8x32xf32>
    %602 = arith.addf %600, %601 : vector<8x32xf32>
    %603 = arith.negf %590 : vector<8x32xf32>
    %604 = math.exp %603 : vector<8x32xf32>
    %cst_356 = arith.constant 1.000000e+00 : f32
    %605 = vector.broadcast %cst_356 : f32 to vector<8x32xf32>
    %606 = arith.addf %605, %604 : vector<8x32xf32>
    %607 = arith.divf %605, %606 : vector<8x32xf32>
    %608 = arith.negf %594 : vector<8x32xf32>
    %609 = math.exp %608 : vector<8x32xf32>
    %cst_357 = arith.constant 1.000000e+00 : f32
    %610 = vector.broadcast %cst_357 : f32 to vector<8x32xf32>
    %611 = arith.addf %610, %609 : vector<8x32xf32>
    %612 = arith.divf %610, %611 : vector<8x32xf32>
    %613 = math.tanh %598 : vector<8x32xf32>
    %614 = arith.negf %602 : vector<8x32xf32>
    %615 = math.exp %614 : vector<8x32xf32>
    %cst_358 = arith.constant 1.000000e+00 : f32
    %616 = vector.broadcast %cst_358 : f32 to vector<8x32xf32>
    %617 = arith.addf %616, %615 : vector<8x32xf32>
    %618 = arith.divf %616, %617 : vector<8x32xf32>
    %619 = arith.mulf %612, %584 : vector<8x32xf32>
    %620 = arith.mulf %607, %613 : vector<8x32xf32>
    %621 = arith.addf %619, %620 : vector<8x32xf32>
    %622 = math.tanh %621 : vector<8x32xf32>
    %623 = arith.mulf %618, %622 : vector<8x32xf32>
    %c0_359 = arith.constant 0 : index
    %c56_360 = arith.constant 56 : index
    %c0_361 = arith.constant 0 : index
    %624 = vector.load %arg9[%c0_359, %c56_360, %c0_361] : memref<4x64x32xf32, #tpu.memory_space<vmem>>, vector<1x8x32xf32>
    %625 = vector.shape_cast %624 : vector<1x8x32xf32> to vector<8x32xf32>
    %cst_362 = arith.constant dense<0.000000e+00> : vector<8x32xf32>
    %626 = tpu.matmul %623, %356, %cst_362 {dimension_numbers = #tpu.dot_dimension_numbers<[1], [0], [0], [1], [0, 0, 1, 1], [], []>} : vector<8x32xf32>, vector<32x32xf32>, vector<8x32xf32> -> vector<8x32xf32>
    %627 = arith.addf %625, %626 : vector<8x32xf32>
    %c1_363 = arith.constant 1 : index
    %c56_364 = arith.constant 56 : index
    %c0_365 = arith.constant 0 : index
    %628 = vector.load %arg9[%c1_363, %c56_364, %c0_365] : memref<4x64x32xf32, #tpu.memory_space<vmem>>, vector<1x8x32xf32>
    %629 = vector.shape_cast %628 : vector<1x8x32xf32> to vector<8x32xf32>
    %cst_366 = arith.constant dense<0.000000e+00> : vector<8x32xf32>
    %630 = tpu.matmul %623, %358, %cst_366 {dimension_numbers = #tpu.dot_dimension_numbers<[1], [0], [0], [1], [0, 0, 1, 1], [], []>} : vector<8x32xf32>, vector<32x32xf32>, vector<8x32xf32> -> vector<8x32xf32>
    %631 = arith.addf %629, %630 : vector<8x32xf32>
    %c2_367 = arith.constant 2 : index
    %c56_368 = arith.constant 56 : index
    %c0_369 = arith.constant 0 : index
    %632 = vector.load %arg9[%c2_367, %c56_368, %c0_369] : memref<4x64x32xf32, #tpu.memory_space<vmem>>, vector<1x8x32xf32>
    %633 = vector.shape_cast %632 : vector<1x8x32xf32> to vector<8x32xf32>
    %cst_370 = arith.constant dense<0.000000e+00> : vector<8x32xf32>
    %634 = tpu.matmul %623, %360, %cst_370 {dimension_numbers = #tpu.dot_dimension_numbers<[1], [0], [0], [1], [0, 0, 1, 1], [], []>} : vector<8x32xf32>, vector<32x32xf32>, vector<8x32xf32> -> vector<8x32xf32>
    %635 = arith.addf %633, %634 : vector<8x32xf32>
    %c3_371 = arith.constant 3 : index
    %c56_372 = arith.constant 56 : index
    %c0_373 = arith.constant 0 : index
    %636 = vector.load %arg9[%c3_371, %c56_372, %c0_373] : memref<4x64x32xf32, #tpu.memory_space<vmem>>, vector<1x8x32xf32>
    %637 = vector.shape_cast %636 : vector<1x8x32xf32> to vector<8x32xf32>
    %cst_374 = arith.constant dense<0.000000e+00> : vector<8x32xf32>
    %638 = tpu.matmul %623, %362, %cst_374 {dimension_numbers = #tpu.dot_dimension_numbers<[1], [0], [0], [1], [0, 0, 1, 1], [], []>} : vector<8x32xf32>, vector<32x32xf32>, vector<8x32xf32> -> vector<8x32xf32>
    %639 = arith.addf %637, %638 : vector<8x32xf32>
    %640 = arith.negf %627 : vector<8x32xf32>
    %641 = math.exp %640 : vector<8x32xf32>
    %cst_375 = arith.constant 1.000000e+00 : f32
    %642 = vector.broadcast %cst_375 : f32 to vector<8x32xf32>
    %643 = arith.addf %642, %641 : vector<8x32xf32>
    %644 = arith.divf %642, %643 : vector<8x32xf32>
    %645 = arith.negf %631 : vector<8x32xf32>
    %646 = math.exp %645 : vector<8x32xf32>
    %cst_376 = arith.constant 1.000000e+00 : f32
    %647 = vector.broadcast %cst_376 : f32 to vector<8x32xf32>
    %648 = arith.addf %647, %646 : vector<8x32xf32>
    %649 = arith.divf %647, %648 : vector<8x32xf32>
    %650 = math.tanh %635 : vector<8x32xf32>
    %651 = arith.negf %639 : vector<8x32xf32>
    %652 = math.exp %651 : vector<8x32xf32>
    %cst_377 = arith.constant 1.000000e+00 : f32
    %653 = vector.broadcast %cst_377 : f32 to vector<8x32xf32>
    %654 = arith.addf %653, %652 : vector<8x32xf32>
    %655 = arith.divf %653, %654 : vector<8x32xf32>
    %656 = arith.mulf %649, %621 : vector<8x32xf32>
    %657 = arith.mulf %644, %650 : vector<8x32xf32>
    %658 = arith.addf %656, %657 : vector<8x32xf32>
    %659 = math.tanh %658 : vector<8x32xf32>
    %660 = arith.mulf %655, %659 : vector<8x32xf32>
    %c0_378 = arith.constant 0 : index
    %c0_379 = arith.constant 0 : index
    %661 = vector.load %arg5[%c0_378, %c0_379] : memref<32x128xf32, #tpu.memory_space<vmem>>, vector<32x128xf32>
    %cst_380 = arith.constant dense<0.000000e+00> : vector<8x128xf32>
    %662 = tpu.matmul %660, %661, %cst_380 {dimension_numbers = #tpu.dot_dimension_numbers<[1], [0], [0], [1], [0, 0, 1, 1], [], []>} : vector<8x32xf32>, vector<32x128xf32>, vector<8x128xf32> -> vector<8x128xf32>
    %c0_381 = arith.constant 0 : index
    %c0_382 = arith.constant 0 : index
    %663 = vector.load %arg6[%c0_381, %c0_382] : memref<1x128xf32, #tpu.memory_space<vmem>>, vector<1x128xf32>
    %664 = vector.broadcast %663 : vector<1x128xf32> to vector<8x128xf32>
    %665 = arith.addf %662, %664 : vector<8x128xf32>
    %c0_383 = arith.constant 0 : index
    %c0_384 = arith.constant 0 : index
    %666 = vector.load %arg7[%c0_383, %c0_384] : memref<8x128xf32, #tpu.memory_space<vmem>>, vector<8x128xf32>
    tpu.vector_store %arg7[%c0_383, %c0_384], %665 {strides = array<i32>} : memref<8x128xf32, #tpu.memory_space<vmem>>, vector<8x128xf32>,
    return
  }
}

</mosaic_0001>

<bundles_post_ra>
// kernel: rnn_forward.1
= control target key start
LH: loop header
LB: loop body
LE: loop exit
PB: predicated region body
PF: predicated region fallthrough
CT: control target
= control target key end

     0   :  { %s4394_s0 = inlined_call_operand.vmem [shape: f32[4,64,32], index: 0, kind: input, shape index: {}]   ;;  %s4395_s1 = inlined_call_operand.vmem [shape: f32[4,32,32], index: 1, kind: input, shape index: {}]   ;;  %s4396_s2 = inlined_call_operand.vmem [shape: f32[4,32,32], index: 2, kind: input, shape index: {}]   ;;  %s4397_s3 = inlined_call_operand.vmem [shape: f32[4,32,32], index: 3, kind: input, shape index: {}]   ;;  %s4398_s4 = inlined_call_operand.vmem [shape: f32[4,1,32], index: 4, kind: input, shape index: {}]   ;;  %s4399_s5 = inlined_call_operand.vmem [shape: f32[32,128], index: 5, kind: input, shape index: {}]   ;;  %s4400_s6 = inlined_call_operand.vmem [shape: f32[1,128], index: 6, kind: input, shape index: {}]   ;;  %s4401_s7 = inlined_call_operand.hbm [shape: f32[8,128], index: 7, kind: output, shape index: {}]  }
   0x1   :  { %v3421_v0 = vld [vmem:[%s4395_s1 + $0x18] sm:$0xff]  ;;  %v3438_v3 = vld [vmem:[%s4395_s1 + $0x10] sm:$0xff]  ;;  %v3454_v6 = vld [vmem:[%s4395_s1 + $0x8] sm:$0xff] }
   0x2   :  { %v3426_v1 = vld [vmem:[%s4395_s1 + $0x38] sm:$0xff]  ;;  %63 = vmatpush.msra.mxu0 %v3421_v0  ;;  %v3443_v4 = vld [vmem:[%s4395_s1 + $0x30] sm:$0xff]  ;;  %v3459_v7 = vld [vmem:[%s4395_s1 + $0x28] sm:$0xff] }
   0x3   :  { %v3431_v2 = vld [vmem:[%s4395_s1 + $0x78] sm:$0xff]  ;;  %86 = vmatpush.msra.mxu1 %v3426_v1  ;;  %v3448_v5 = vld [vmem:[%s4395_s1 + $0x70] sm:$0xff]  ;;  %v3466_v8 = vld [vmem:[%s4395_s1 + $0x68] sm:$0xff] }
   0x4   :  { %132 = vmatpush.msra.mxu3 %v3431_v2  ;;  %64 = vmatpush.msra.mxu0 %v3438_v3  ;;  %v3472_v9 = vld [vmem:[%s4395_s1] sm:$0xff]  ;;  %v3482_v11 = vld [vmem:[%s4395_s1 + $0x58] sm:$0xff]  ;;  %v3498_v13 = vld [vmem:[%s4395_s1 + $0x50] sm:$0xff] }
   0x5   :  { %87 = vmatpush.msra.mxu1 %v3443_v4  ;;  %v3477_v10 = vld [vmem:[%s4395_s1 + $0x20] sm:$0xff]  ;;  %109 = vmatpush.msra.mxu2 %v3482_v11 }
   0x6   :  { %133 = vmatpush.msra.mxu3 %v3448_v5  ;;  %65 = vmatpush.msra.mxu0 %v3454_v6  ;;  %v3489_v12 = vld [vmem:[%s4395_s1 + $0x60] sm:$0xff] }
   0x7   :  { %88 = vmatpush.msra.mxu1 %v3459_v7 }
   0x8   :  { %134 = vmatpush.msra.mxu3 %v3466_v8  ;;  %66 = vmatpush.msra.mxu0 %v3472_v9 }
   0x9   :  { %89 = vmatpush.msra.mxu1 %v3477_v10 }
   0xa   :  { %12 = vsyncpa [#allocation5], 0  ;;  %135 = vmatpush.msra.mxu3 %v3489_v12  ;;  %v3376_v14 = vmov 0.0   ;;  %v3507_v15 = vld [vmem:[%s4395_s1 + $0x48] sm:$0xff]  ;;  %110 = vmatpush.msra.mxu2 %v3498_v13  ;;  %v3514_v16 = vld [vmem:[%s4395_s1 + $0x40] sm:$0xff]  ;;  %vm47_vm12 = vcmask 261120  }
   0xb   :  { %67 = vmatmul.f32.vlgmr.msra.gmra.mxu0 %v3376_v14  ;;  %90 = vmatmul.f32.vlgmr.msra.gmra.mxu1 %v3376_v14  ;;  %v46_v17 = vld [vmem:[%s4394_s0] sm:$0xff]  ;;  %s3377_s19 = smov [#allocation4]   ;;  %s2846_s23 = sshll.u32 %s4401_s7, 4  ;;  %s2847_s23 = int_to_ptr.hbm [resolvable:$true] %s2846_s23 }
   0xc   :  { %136 = vmatmul.f32.vlgmr.msra.gmra.mxu3 %v3376_v14  ;;  %221 = vmatpush.msrb.mxu0 %v3421_v0  ;;  %v2867_v18 = vld [vmem:[%s4394_s0 + $0x40] sm:$0xff]  ;;  %s2844_s20 = sshll.u32 %s3377_s19, 4  ;;  %s2845_s20 = int_to_ptr.vmem [resolvable:$true] %s2844_s20 }
   0xd   :  { %243 = vmatpush.msrb.mxu1 %v3426_v1  ;;  %287 = vmatpush.msrb.mxu3 %v3431_v2  ;;  %v2869_v25 = vld [vmem:[%s4394_s0 + $0xc0] sm:$0xff] }
   0xe   :  { %111 = vmatpush.msra.mxu2 %v3507_v15  ;;  %222 = vmatpush.msrb.mxu0 %v3438_v3  ;;  %v2868_v33 = vld [vmem:[%s4394_s0 + $0x80] sm:$0xff] }
   0xf   :  { %244 = vmatpush.msrb.mxu1 %v3443_v4  ;;  %288 = vmatpush.msrb.mxu3 %v3448_v5 }
  0x10   :  { %112 = vmatpush.msra.mxu2 %v3514_v16  ;;  %223 = vmatpush.msrb.mxu0 %v3454_v6 }
  0x11   :  { %113 = vmatmul.f32.vlgmr.msra.gmra.mxu2 %v3376_v14  ;;  %245 = vmatpush.msrb.mxu1 %v3459_v7 }
  0x12   :  { %265 = vmatpush.msrb.mxu2 %v3482_v11  ;;  %289 = vmatpush.msrb.mxu3 %v3466_v8 }
  0x13   :  { %224 = vmatpush.msrb.mxu0 %v3472_v9  ;;  %246 = vmatpush.msrb.mxu1 %v3477_v10 }
  0x14   :  { %266 = vmatpush.msrb.mxu2 %v3498_v13  ;;  %290 = vmatpush.msrb.mxu3 %v3489_v12 }
  0x15   :  { %376 = vmatpush.msra.mxu0 %v3421_v0  ;;  %398 = vmatpush.msra.mxu1 %v3426_v1 }
  0x16   :  { %267 = vmatpush.msrb.mxu2 %v3507_v15  ;;  %442 = vmatpush.msra.mxu3 %v3431_v2 }
  0x17   :  { %377 = vmatpush.msra.mxu0 %v3438_v3  ;;  %399 = vmatpush.msra.mxu1 %v3443_v4 }
  0x18   :  { %268 = vmatpush.msrb.mxu2 %v3514_v16  ;;  %443 = vmatpush.msra.mxu3 %v3448_v5 }
  0x19   :  { %378 = vmatpush.msra.mxu0 %v3454_v6  ;;  %400 = vmatpush.msra.mxu1 %v3459_v7 }
  0x1a   :  { %420 = vmatpush.msra.mxu2 %v3482_v11  ;;  %444 = vmatpush.msra.mxu3 %v3466_v8 }
  0x1b   :  { %379 = vmatpush.msra.mxu0 %v3472_v9  ;;  %401 = vmatpush.msra.mxu1 %v3477_v10 }
  0x1c   :  { %421 = vmatpush.msra.mxu2 %v3498_v13  ;;  %445 = vmatpush.msra.mxu3 %v3489_v12 }
  0x1e   :  { %422 = vmatpush.msra.mxu2 %v3507_v15 }
  0x20   :  { %423 = vmatpush.msra.mxu2 %v3514_v16 }
  0x88   :  { %v68_v19 = vpop.f32.mrf.mxu0  ;;  %v91_v21 = vpop.f32.mrf.mxu1 }
  0x89   :  { %v71_v20 = vadd.f32 %v68_v19, %v46_v17  ;;  %v94_v22 = vadd.f32 %v2867_v18, %v91_v21 }
  0x8b   :  { %v2870_v23 = vmul.f32 -1.442695, %v71_v20  ;;  %v2871_v24 = vmul.f32 -1.442695, %v94_v22 }
  0x8d   :  { %3062 = vpow2.f32 %v2870_v23 }
  0x8e   :  { %3064 = vpow2.f32 %v2871_v24 }
  0x8f   :  { %v137_v26 = vpop.f32.mrf.mxu3 }
  0x90   :  { %v140_v27 = vadd.f32 %v2869_v25, %v137_v26 }
  0x92   :  { %v2872_v28 = vmul.f32 -1.442695, %v140_v27  ;;  %v205_v27 = vld [vmem:[%s4394_s0 + $0x8] sm:$0xff] }
  0x93   :  { %v3063_v29 = vpop.eup %3062 }
  0x94   :  { %v3065_v30 = vpop.eup %3064  ;;  %v144_v31 = vadd.f32 1.0, %v3063_v29  ;;  %3066 = vpow2.f32 %v2872_v28  ;;  %v114_v34 = vpop.f32.mrf.mxu2  ;;  %v2874_v28 = vld [vmem:[%s4394_s0 + $0x48] sm:$0xff] }
  0x95   :  { %v163_v32 = vadd.f32 1.0, %v3065_v30  ;;  %v117_v36 = vadd.f32 %v2868_v33, %v114_v34 }
  0x96   :  { %3068 = vrcp.f32 %v144_v31  ;;  %v156_v44 = vand.u32 2147483648, %v144_v31  ;;  %v154_v47 = vand.u32 2147483647, %v144_v31  ;;  %vm150_vm2 = vweird.f32 %v144_v31 }
  0x97   :  { %3070 = vrcp.f32 %v163_v32  ;;  %v175_v45 = vand.u32 2147483648, %v163_v32  ;;  %v173_v49 = vand.u32 2147483647, %v163_v32  ;;  %vm169_vm3 = vweird.f32 %v163_v32 }
  0x98   :  { %v157_v54 = vor.u32 1.1754944e-38, %v156_v44  ;;  %vm155_vm5 = vcmp.eq.f32.partialorder %v154_v47, 8.507059e+37 }
  0x99   :  { %v176_v56 = vor.u32 1.1754944e-38, %v175_v45  ;;  %vm174_vm7 = vcmp.eq.f32.partialorder %v173_v49, 8.507059e+37 }
  0x9a   :  { %v3067_v35 = vpop.eup %3066 }
  0x9b   :  { %v183_v37 = vadd.f32 1.0, %v3067_v35  ;;  %v2878_v35 = vld [vmem:[%s4394_s0 + $0xc8] sm:$0xff] }
  0x9c   :  { %v3069_v38 = vpop.eup %3068 }
  0x9d   :  { %v3071_v39 = vpop.eup %3070  ;;  %v146_v40 = vmul.f32 %v3069_v38, %v144_v31  ;;  %3072 = vrcp.f32 %v183_v37  ;;  %vm151_vm0 = vweird.f32 %v3069_v38  ;;  %v195_v20 = vand.u32 2147483648, %v183_v37 }
  0x9e   :  { %v165_v41 = vmul.f32 %v3071_v39, %v163_v32  ;;  %3074 = vtanh.f32 %v117_v36  ;;  %vm170_vm1 = vweird.f32 %v3071_v39  ;;  %vm152_vm4 = vmor %vm150_vm2, %vm151_vm0  ;;  %vm189_vm9 = vweird.f32 %v183_v37 }
  0x9f   :  { %v147_v42 = vsub.f32 1.0, %v146_v40  ;;  %vm171_vm6 = vmor %vm169_vm3, %vm170_vm1  ;;  %v193_v21 = vand.u32 2147483647, %v183_v37  ;;  %v196_v23 = vor.u32 1.1754944e-38, %v195_v20 }
  0xa0   :  { %v166_v43 = vsub.f32 1.0, %v165_v41 }
  0xa1   :  { %v148_v46 = vmul.f32 %v3069_v38, %v147_v42  ;;  %vm194_vm11 = vcmp.eq.f32.partialorder %v193_v21, 8.507059e+37 }
  0xa2   :  { %v167_v48 = vmul.f32 %v3071_v39, %v166_v43  ;;  %v2876_v43 = vld [vmem:[%s4394_s0 + $0x88] sm:$0xff] }
  0xa3   :  { %v3073_v50 = vpop.eup %3072  ;;  %v149_v51 = vadd.f32 %v3069_v38, %v148_v46 }
  0xa4   :  { %v3075_v52 = vpop.eup %3074  ;;  %v185_v53 = vmul.f32 %v3073_v50, %v183_v37  ;;  %v168_v55 = vadd.f32 %v3071_v39, %v167_v48  ;;  %vm190_vm8 = vweird.f32 %v3073_v50 }
  0xa5   :  { %v153_v57 = vsel %vm152_vm4, %v3069_v38, %v149_v51  ;;  %vm191_vm10 = vmor %vm189_vm9, %vm190_vm8 }
  0xa6   :  { %v186_v58 = vsub.f32 1.0, %v185_v53  ;;  %v158_v59 = vsel %vm155_vm5, %v157_v54, %v153_v57  ;;  %v172_v60 = vsel %vm171_vm6, %v3071_v39, %v168_v55 }
  0xa7   :  { %v177_v61 = vsel %vm174_vm7, %v176_v56, %v172_v60  ;;  %v200_v62 = vmul.f32 %v3075_v52, %v158_v59 }
  0xa8   :  { %v187_v63 = vmul.f32 %v3073_v50, %v186_v58  ;;  %v199_v17 = vmul.f32 0.0, %v177_v61 }
  0xaa   :  { %v3562_v18 = vadd.f32 %v200_v62, %v199_v17  ;;  %v188_v19 = vadd.f32 %v3073_v50, %v187_v63 }
  0xac   :  { %3076 = vtanh.f32 %v3562_v18  ;;  %v192_v22 = vsel %vm191_vm10, %v3073_v50, %v188_v19 }
  0xad   :  { %v197_v25 = vsel %vm194_vm11, %v196_v23, %v192_v22 }
  0xb2   :  { %v3077_v24 = vpop.eup %3076 }
  0xb3   :  { %v203_v26 = vmul.f32 %v3077_v24, %v197_v25 }
  0xb5   :  { %204 = vst.msk [vmem:[#allocation2] sm:$0xff] %vm47_vm12, %v203_v26  ;;  %2873 = vmatmul.msk.f32.vlgmr.msrb.gmra.mxu0 %vm47_vm12, %v203_v26  ;;  %2875 = vmatmul.msk.f32.vlgmr.msrb.gmra.mxu1 %vm47_vm12, %v203_v26 }
  0xb6   :  { %2877 = vmatmul.msk.f32.vlgmr.msrb.gmra.mxu2 %vm47_vm12, %v203_v26  ;;  %2879 = vmatmul.msk.f32.vlgmr.msrb.gmra.mxu3 %vm47_vm12, %v203_v26 }
  0xb7   :  { %531 = vmatpush.msrb.mxu0 %v3421_v0  ;;  %553 = vmatpush.msrb.mxu1 %v3426_v1 }
  0xb8   :  { %575 = vmatpush.msrb.mxu2 %v3482_v11  ;;  %597 = vmatpush.msrb.mxu3 %v3431_v2 }
  0xb9   :  { %532 = vmatpush.msrb.mxu0 %v3438_v3  ;;  %554 = vmatpush.msrb.mxu1 %v3443_v4 }
  0xba   :  { %576 = vmatpush.msrb.mxu2 %v3498_v13  ;;  %598 = vmatpush.msrb.mxu3 %v3448_v5 }
  0xbb   :  { %533 = vmatpush.msrb.mxu0 %v3454_v6  ;;  %555 = vmatpush.msrb.mxu1 %v3459_v7 }
  0xbc   :  { %577 = vmatpush.msrb.mxu2 %v3507_v15  ;;  %599 = vmatpush.msrb.mxu3 %v3466_v8 }
  0xbd   :  { %534 = vmatpush.msrb.mxu0 %v3472_v9  ;;  %556 = vmatpush.msrb.mxu1 %v3477_v10 }
  0xbe   :  { %578 = vmatpush.msrb.mxu2 %v3514_v16  ;;  %600 = vmatpush.msrb.mxu3 %v3489_v12 }
 0x132   :  { %v226_v29 = vpop.f32.mrf.mxu0  ;;  %v248_v30 = vpop.f32.mrf.mxu1 }
 0x133   :  { %v229_v31 = vadd.f32 %v226_v29, %v205_v27  ;;  %v251_v32 = vadd.f32 %v2874_v28, %v248_v30 }
 0x135   :  { %v2880_v33 = vmul.f32 -1.442695, %v229_v31  ;;  %v2881_v34 = vmul.f32 -1.442695, %v251_v32 }
 0x137   :  { %3078 = vpow2.f32 %v2880_v33 }
 0x138   :  { %3080 = vpow2.f32 %v2881_v34 }
 0x139   :  { %v292_v36 = vpop.f32.mrf.mxu3  ;;  %v270_v44 = vpop.f32.mrf.mxu2 }
 0x13a   :  { %v295_v37 = vadd.f32 %v2878_v35, %v292_v36  ;;  %v273_v48 = vadd.f32 %v2876_v43, %v270_v44 }
 0x13c   :  { %v2882_v38 = vmul.f32 -1.442695, %v295_v37 }
 0x13d   :  { %v3079_v39 = vpop.eup %3078 }
 0x13e   :  { %v3081_v40 = vpop.eup %3080  ;;  %v299_v41 = vadd.f32 1.0, %v3079_v39  ;;  %3082 = vpow2.f32 %v2882_v38  ;;  %v2884_v38 = vld [vmem:[%s4394_s0 + $0x50] sm:$0xff] }
 0x13f   :  { %v318_v42 = vadd.f32 1.0, %v3081_v40 }
 0x140   :  { %3084 = vrcp.f32 %v299_v41  ;;  %v311_v54 = vand.u32 2147483648, %v299_v41  ;;  %v309_v57 = vand.u32 2147483647, %v299_v41  ;;  %vm305_vm15 = vweird.f32 %v299_v41 }
 0x141   :  { %3086 = vrcp.f32 %v318_v42  ;;  %v330_v55 = vand.u32 2147483648, %v318_v42  ;;  %v328_v59 = vand.u32 2147483647, %v318_v42  ;;  %vm324_vm0 = vweird.f32 %v318_v42 }
 0x142   :  { %v312_v62 = vor.u32 1.1754944e-38, %v311_v54  ;;  %vm310_vm3 = vcmp.eq.f32.partialorder %v309_v57, 8.507059e+37 }
 0x143   :  { %v331_v19 = vor.u32 1.1754944e-38, %v330_v55  ;;  %vm329_vm4 = vcmp.eq.f32.partialorder %v328_v59, 8.507059e+37 }
 0x144   :  { %v3083_v45 = vpop.eup %3082 }
 0x145   :  { %v338_v46 = vadd.f32 1.0, %v3083_v45  ;;  %v2888_v45 = vld [vmem:[%s4394_s0 + $0xd0] sm:$0xff] }
 0x146   :  { %v3085_v47 = vpop.eup %3084 }
 0x147   :  { %v3087_v49 = vpop.eup %3086  ;;  %v301_v50 = vmul.f32 %v3085_v47, %v299_v41  ;;  %3088 = vrcp.f32 %v338_v46  ;;  %vm306_vm13 = vweird.f32 %v3085_v47  ;;  %v350_v31 = vand.u32 2147483648, %v338_v46 }
 0x148   :  { %v320_v51 = vmul.f32 %v3087_v49, %v318_v42  ;;  %3090 = vtanh.f32 %v273_v48  ;;  %vm325_vm14 = vweird.f32 %v3087_v49  ;;  %vm307_vm1 = vmor %vm305_vm15, %vm306_vm13  ;;  %vm344_vm6 = vweird.f32 %v338_v46 }
 0x149   :  { %v302_v52 = vsub.f32 1.0, %v301_v50  ;;  %vm326_vm2 = vmor %vm324_vm0, %vm325_vm14  ;;  %v348_v32 = vand.u32 2147483647, %v338_v46  ;;  %v351_v34 = vor.u32 1.1754944e-38, %v350_v31 }
 0x14a   :  { %v321_v53 = vsub.f32 1.0, %v320_v51 }
 0x14b   :  { %v303_v56 = vmul.f32 %v3085_v47, %v302_v52  ;;  %vm349_vm8 = vcmp.eq.f32.partialorder %v348_v32, 8.507059e+37 }
 0x14c   :  { %v322_v58 = vmul.f32 %v3087_v49, %v321_v53  ;;  %v2886_v53 = vld [vmem:[%s4394_s0 + $0x90] sm:$0xff] }
 0x14d   :  { %v3089_v60 = vpop.eup %3088  ;;  %v304_v61 = vadd.f32 %v3085_v47, %v303_v56 }
 0x14e   :  { %v323_v63 = vadd.f32 %v3087_v49, %v322_v58  ;;  %v340_v17 = vmul.f32 %v3089_v60, %v338_v46  ;;  %v3091_v21 = vpop.eup %3090  ;;  %vm345_vm5 = vweird.f32 %v3089_v60 }
 0x14f   :  { %v308_v20 = vsel %vm307_vm1, %v3085_v47, %v304_v61  ;;  %vm346_vm7 = vmor %vm344_vm6, %vm345_vm5 }
 0x150   :  { %v313_v22 = vsel %vm310_vm3, %v312_v62, %v308_v20  ;;  %v327_v23 = vsel %vm326_vm2, %v3087_v49, %v323_v63  ;;  %v341_v24 = vsub.f32 1.0, %v340_v17 }
 0x151   :  { %v332_v25 = vsel %vm329_vm4, %v331_v19, %v327_v23  ;;  %v355_v26 = vmul.f32 %v3091_v21, %v313_v22 }
 0x152   :  { %v354_v27 = vmul.f32 %v332_v25, %v3562_v18  ;;  %v342_v28 = vmul.f32 %v3089_v60, %v341_v24  ;;  %v360_v18 = vld [vmem:[%s4394_s0 + $0x10] sm:$0xff] }
 0x154   :  { %v3599_v29 = vadd.f32 %v355_v26, %v354_v27  ;;  %v343_v30 = vadd.f32 %v3089_v60, %v342_v28 }
 0x156   :  { %3092 = vtanh.f32 %v3599_v29  ;;  %v347_v33 = vsel %vm346_vm7, %v3089_v60, %v343_v30 }
 0x157   :  { %v352_v36 = vsel %vm349_vm8, %v351_v34, %v347_v33 }
 0x15c   :  { %v3093_v35 = vpop.eup %3092 }
 0x15d   :  { %v358_v37 = vmul.f32 %v3093_v35, %v352_v36 }
 0x15f   :  { %359 = vst.msk [vmem:[#allocation2 + $0x8] sm:$0xff] %vm47_vm12, %v358_v37  ;;  %2883 = vmatmul.msk.f32.vlgmr.msra.gmra.mxu0 %vm47_vm12, %v358_v37  ;;  %2885 = vmatmul.msk.f32.vlgmr.msra.gmra.mxu1 %vm47_vm12, %v358_v37 }
 0x160   :  { %2887 = vmatmul.msk.f32.vlgmr.msra.gmra.mxu2 %vm47_vm12, %v358_v37  ;;  %2889 = vmatmul.msk.f32.vlgmr.msra.gmra.mxu3 %vm47_vm12, %v358_v37 }
 0x161   :  { %686 = vmatpush.msra.mxu0 %v3421_v0  ;;  %708 = vmatpush.msra.mxu1 %v3426_v1 }
 0x162   :  { %730 = vmatpush.msra.mxu2 %v3482_v11  ;;  %752 = vmatpush.msra.mxu3 %v3431_v2 }
 0x163   :  { %687 = vmatpush.msra.mxu0 %v3438_v3  ;;  %709 = vmatpush.msra.mxu1 %v3443_v4 }
 0x164   :  { %731 = vmatpush.msra.mxu2 %v3498_v13  ;;  %753 = vmatpush.msra.mxu3 %v3448_v5 }
 0x165   :  { %688 = vmatpush.msra.mxu0 %v3454_v6  ;;  %710 = vmatpush.msra.mxu1 %v3459_v7 }
 0x166   :  { %732 = vmatpush.msra.mxu2 %v3507_v15  ;;  %754 = vmatpush.msra.mxu3 %v3466_v8 }
 0x167   :  { %689 = vmatpush.msra.mxu0 %v3472_v9  ;;  %711 = vmatpush.msra.mxu1 %v3477_v10 }
 0x168   :  { %733 = vmatpush.msra.mxu2 %v3514_v16  ;;  %755 = vmatpush.msra.mxu3 %v3489_v12 }
 0x1dc   :  { %v381_v39 = vpop.f32.mrf.mxu0  ;;  %v403_v40 = vpop.f32.mrf.mxu1 }
 0x1dd   :  { %v384_v41 = vadd.f32 %v381_v39, %v360_v18  ;;  %v406_v42 = vadd.f32 %v2884_v38, %v403_v40 }
 0x1df   :  { %v2890_v43 = vmul.f32 -1.442695, %v384_v41  ;;  %v2891_v44 = vmul.f32 -1.442695, %v406_v42 }
 0x1e1   :  { %3094 = vpow2.f32 %v2890_v43 }
 0x1e2   :  { %3096 = vpow2.f32 %v2891_v44 }
 0x1e3   :  { %v447_v46 = vpop.f32.mrf.mxu3  ;;  %v425_v54 = vpop.f32.mrf.mxu2 }
 0x1e4   :  { %v450_v47 = vadd.f32 %v2888_v45, %v447_v46  ;;  %v428_v58 = vadd.f32 %v2886_v53, %v425_v54 }
 0x1e6   :  { %v2892_v48 = vmul.f32 -1.442695, %v450_v47 }
 0x1e7   :  { %v3095_v49 = vpop.eup %3094 }
 0x1e8   :  { %v3097_v50 = vpop.eup %3096  ;;  %v454_v51 = vadd.f32 1.0, %v3095_v49  ;;  %3098 = vpow2.f32 %v2892_v48  ;;  %v2894_v48 = vld [vmem:[%s4394_s0 + $0x58] sm:$0xff] }
 0x1e9   :  { %v473_v52 = vadd.f32 1.0, %v3097_v50 }
 0x1ea   :  { %3100 = vrcp.f32 %v454_v51  ;;  %v466_v17 = vand.u32 2147483648, %v454_v51  ;;  %v464_v21 = vand.u32 2147483647, %v454_v51  ;;  %vm460_vm11 = vweird.f32 %v454_v51 }
 0x1eb   :  { %3102 = vrcp.f32 %v473_v52  ;;  %v485_v19 = vand.u32 2147483648, %v473_v52  ;;  %v483_v23 = vand.u32 2147483647, %v473_v52  ;;  %vm479_vm13 = vweird.f32 %v473_v52 }
 0x1ec   :  { %v467_v26 = vor.u32 1.1754944e-38, %v466_v17  ;;  %vm465_vm0 = vcmp.eq.f32.partialorder %v464_v21, 8.507059e+37 }
 0x1ed   :  { %v486_v30 = vor.u32 1.1754944e-38, %v485_v19  ;;  %vm484_vm1 = vcmp.eq.f32.partialorder %v483_v23, 8.507059e+37 }
 0x1ee   :  { %v3099_v55 = vpop.eup %3098 }
 0x1ef   :  { %v493_v56 = vadd.f32 1.0, %v3099_v55  ;;  %v2898_v55 = vld [vmem:[%s4394_s0 + $0xd8] sm:$0xff] }
 0x1f0   :  { %v3101_v57 = vpop.eup %3100 }
 0x1f1   :  { %v3103_v59 = vpop.eup %3102  ;;  %v456_v60 = vmul.f32 %v3101_v57, %v454_v51  ;;  %3104 = vrcp.f32 %v493_v56  ;;  %vm461_vm9 = vweird.f32 %v3101_v57  ;;  %v505_v41 = vand.u32 2147483648, %v493_v56 }
 0x1f2   :  { %v475_v61 = vmul.f32 %v3103_v59, %v473_v52  ;;  %3106 = vtanh.f32 %v428_v58  ;;  %vm480_vm10 = vweird.f32 %v3103_v59  ;;  %vm462_vm14 = vmor %vm460_vm11, %vm461_vm9  ;;  %vm499_vm3 = vweird.f32 %v493_v56 }
 0x1f3   :  { %v457_v62 = vsub.f32 1.0, %v456_v60  ;;  %vm481_vm15 = vmor %vm479_vm13, %vm480_vm10  ;;  %v503_v42 = vand.u32 2147483647, %v493_v56  ;;  %v506_v44 = vor.u32 1.1754944e-38, %v505_v41 }
 0x1f4   :  { %v476_v63 = vsub.f32 1.0, %v475_v61 }
 0x1f5   :  { %v458_v20 = vmul.f32 %v3101_v57, %v457_v62  ;;  %vm504_vm5 = vcmp.eq.f32.partialorder %v503_v42, 8.507059e+37 }
 0x1f6   :  { %v477_v22 = vmul.f32 %v3103_v59, %v476_v63  ;;  %v2896_v63 = vld [vmem:[%s4394_s0 + $0x98] sm:$0xff] }
 0x1f7   :  { %v3105_v24 = vpop.eup %3104  ;;  %v459_v25 = vadd.f32 %v3101_v57, %v458_v20 }
 0x1f8   :  { %v478_v27 = vadd.f32 %v3103_v59, %v477_v22  ;;  %v495_v28 = vmul.f32 %v3105_v24, %v493_v56  ;;  %v3107_v32 = vpop.eup %3106  ;;  %vm500_vm2 = vweird.f32 %v3105_v24 }
 0x1f9   :  { %v463_v31 = vsel %vm462_vm14, %v3101_v57, %v459_v25  ;;  %vm501_vm4 = vmor %vm499_vm3, %vm500_vm2 }
 0x1fa   :  { %v468_v33 = vsel %vm465_vm0, %v467_v26, %v463_v31  ;;  %v482_v34 = vsel %vm481_vm15, %v3103_v59, %v478_v27  ;;  %v496_v35 = vsub.f32 1.0, %v495_v28 }
 0x1fb   :  { %v487_v36 = vsel %vm484_vm1, %v486_v30, %v482_v34  ;;  %v510_v37 = vmul.f32 %v3107_v32, %v468_v33 }
 0x1fc   :  { %v509_v18 = vmul.f32 %v487_v36, %v3599_v29  ;;  %v497_v38 = vmul.f32 %v3105_v24, %v496_v35  ;;  %v515_v29 = vld [vmem:[%s4394_s0 + $0x18] sm:$0xff] }
 0x1fe   :  { %v3636_v39 = vadd.f32 %v510_v37, %v509_v18  ;;  %v498_v40 = vadd.f32 %v3105_v24, %v497_v38 }
 0x200   :  { %3108 = vtanh.f32 %v3636_v39  ;;  %v502_v43 = vsel %vm501_vm4, %v3105_v24, %v498_v40 }
 0x201   :  { %v507_v46 = vsel %vm504_vm5, %v506_v44, %v502_v43 }
 0x206   :  { %v3109_v45 = vpop.eup %3108 }
 0x207   :  { %v513_v47 = vmul.f32 %v3109_v45, %v507_v46 }
 0x209   :  { %514 = vst.msk [vmem:[#allocation2 + $0x10] sm:$0xff] %vm47_vm12, %v513_v47  ;;  %2893 = vmatmul.msk.f32.vlgmr.msrb.gmra.mxu0 %vm47_vm12, %v513_v47  ;;  %2895 = vmatmul.msk.f32.vlgmr.msrb.gmra.mxu1 %vm47_vm12, %v513_v47 }
 0x20a   :  { %2897 = vmatmul.msk.f32.vlgmr.msrb.gmra.mxu2 %vm47_vm12, %v513_v47  ;;  %2899 = vmatmul.msk.f32.vlgmr.msrb.gmra.mxu3 %vm47_vm12, %v513_v47 }
 0x20b   :  { %841 = vmatpush.msrb.mxu0 %v3421_v0  ;;  %863 = vmatpush.msrb.mxu1 %v3426_v1 }
 0x20c   :  { %885 = vmatpush.msrb.mxu2 %v3482_v11  ;;  %907 = vmatpush.msrb.mxu3 %v3431_v2 }
 0x20d   :  { %842 = vmatpush.msrb.mxu0 %v3438_v3  ;;  %864 = vmatpush.msrb.mxu1 %v3443_v4 }
 0x20e   :  { %886 = vmatpush.msrb.mxu2 %v3498_v13  ;;  %908 = vmatpush.msrb.mxu3 %v3448_v5 }
 0x20f   :  { %843 = vmatpush.msrb.mxu0 %v3454_v6  ;;  %865 = vmatpush.msrb.mxu1 %v3459_v7 }
 0x210   :  { %887 = vmatpush.msrb.mxu2 %v3507_v15  ;;  %909 = vmatpush.msrb.mxu3 %v3466_v8 }
 0x211   :  { %844 = vmatpush.msrb.mxu0 %v3472_v9  ;;  %866 = vmatpush.msrb.mxu1 %v3477_v10 }
 0x212   :  { %888 = vmatpush.msrb.mxu2 %v3514_v16  ;;  %910 = vmatpush.msrb.mxu3 %v3489_v12 }
 0x286   :  { %v536_v49 = vpop.f32.mrf.mxu0  ;;  %v558_v50 = vpop.f32.mrf.mxu1 }
 0x287   :  { %v539_v51 = vadd.f32 %v536_v49, %v515_v29  ;;  %v561_v52 = vadd.f32 %v2894_v48, %v558_v50 }
 0x289   :  { %v2900_v53 = vmul.f32 -1.442695, %v539_v51  ;;  %v2901_v54 = vmul.f32 -1.442695, %v561_v52 }
 0x28b   :  { %3110 = vpow2.f32 %v2900_v53 }
 0x28c   :  { %3112 = vpow2.f32 %v2901_v54 }
 0x28d   :  { %v602_v56 = vpop.f32.mrf.mxu3  ;;  %v580_v17 = vpop.f32.mrf.mxu2 }
 0x28e   :  { %v605_v57 = vadd.f32 %v2898_v55, %v602_v56  ;;  %v583_v22 = vadd.f32 %v2896_v63, %v580_v17 }
 0x290   :  { %v2902_v58 = vmul.f32 -1.442695, %v605_v57 }
 0x291   :  { %v3111_v59 = vpop.eup %3110 }
 0x292   :  { %v3113_v60 = vpop.eup %3112  ;;  %v609_v61 = vadd.f32 1.0, %v3111_v59  ;;  %3114 = vpow2.f32 %v2902_v58 }
 0x293   :  { %v628_v62 = vadd.f32 1.0, %v3113_v60 }
 0x294   :  { %3116 = vrcp.f32 %v609_v61  ;;  %v621_v28 = vand.u32 2147483648, %v609_v61  ;;  %v619_v32 = vand.u32 2147483647, %v609_v61  ;;  %vm615_vm8 = vweird.f32 %v609_v61 }
 0x295   :  { %3118 = vrcp.f32 %v628_v62  ;;  %v640_v30 = vand.u32 2147483648, %v628_v62  ;;  %v638_v34 = vand.u32 2147483647, %v628_v62  ;;  %vm634_vm9 = vweird.f32 %v628_v62 }
 0x296   :  { %v622_v37 = vor.u32 1.1754944e-38, %v621_v28  ;;  %vm620_vm13 = vcmp.eq.f32.partialorder %v619_v32, 8.507059e+37 }
 0x297   :  { %v641_v40 = vor.u32 1.1754944e-38, %v640_v30  ;;  %vm639_vm14 = vcmp.eq.f32.partialorder %v638_v34, 8.507059e+37 }
 0x298   :  { %v3115_v19 = vpop.eup %3114 }
 0x299   :  { %v648_v20 = vadd.f32 1.0, %v3115_v19 }
 0x29a   :  { %v3117_v21 = vpop.eup %3116 }
 0x29b   :  { %v3119_v23 = vpop.eup %3118  ;;  %v611_v24 = vmul.f32 %v3117_v21, %v609_v61  ;;  %3120 = vrcp.f32 %v648_v20  ;;  %vm616_vm6 = vweird.f32 %v3117_v21  ;;  %v660_v51 = vand.u32 2147483648, %v648_v20 }
 0x29c   :  { %v630_v25 = vmul.f32 %v3119_v23, %v628_v62  ;;  %3122 = vtanh.f32 %v583_v22  ;;  %vm635_vm7 = vweird.f32 %v3119_v23  ;;  %vm617_vm10 = vmor %vm615_vm8, %vm616_vm6  ;;  %vm654_vm0 = vweird.f32 %v648_v20 }
 0x29d   :  { %v612_v26 = vsub.f32 1.0, %v611_v24  ;;  %vm636_vm11 = vmor %vm634_vm9, %vm635_vm7  ;;  %v658_v52 = vand.u32 2147483647, %v648_v20  ;;  %v661_v54 = vor.u32 1.1754944e-38, %v660_v51 }
 0x29e   :  { %v631_v27 = vsub.f32 1.0, %v630_v25 }
 0x29f   :  { %v613_v31 = vmul.f32 %v3117_v21, %v612_v26  ;;  %vm659_vm2 = vcmp.eq.f32.partialorder %v658_v52, 8.507059e+37 }
 0x2a0   :  { %v632_v33 = vmul.f32 %v3119_v23, %v631_v27 }
 0x2a1   :  { %v3121_v35 = vpop.eup %3120  ;;  %v614_v36 = vadd.f32 %v3117_v21, %v613_v31 }
 0x2a2   :  { %v633_v18 = vadd.f32 %v3119_v23, %v632_v33  ;;  %v650_v38 = vmul.f32 %v3121_v35, %v648_v20  ;;  %v3123_v42 = vpop.eup %3122  ;;  %vm655_vm15 = vweird.f32 %v3121_v35 }
 0x2a3   :  { %v618_v41 = vsel %vm617_vm10, %v3117_v21, %v614_v36  ;;  %vm656_vm1 = vmor %vm654_vm0, %vm655_vm15 }
 0x2a4   :  { %v623_v43 = vsel %vm620_vm13, %v622_v37, %v618_v41  ;;  %v637_v44 = vsel %vm636_vm11, %v3119_v23, %v633_v18  ;;  %v651_v45 = vsub.f32 1.0, %v650_v38 }
 0x2a5   :  { %v642_v46 = vsel %vm639_vm14, %v641_v40, %v637_v44  ;;  %v665_v47 = vmul.f32 %v3123_v42, %v623_v43 }
 0x2a6   :  { %v664_v29 = vmul.f32 %v642_v46, %v3636_v39  ;;  %v652_v48 = vmul.f32 %v3121_v35, %v651_v45  ;;  %v2906_v39 = vld [vmem:[%s4394_s0 + $0xa0] sm:$0xff] }
 0x2a8   :  { %v3673_v49 = vadd.f32 %v665_v47, %v664_v29  ;;  %v653_v50 = vadd.f32 %v3121_v35, %v652_v48 }
 0x2aa   :  { %3124 = vtanh.f32 %v3673_v49  ;;  %v657_v53 = vsel %vm656_vm1, %v3121_v35, %v653_v50 }
 0x2ab   :  { %v662_v56 = vsel %vm659_vm2, %v661_v54, %v657_v53  ;;  %v3319_v53 = vld [vmem:[%s4395_s1 + $0x38] sm:$0xff] }
 0x2ac   :  { %v3320_v54 = vld [vmem:[%s4395_s1 + $0x58] sm:$0xff] }
 0x2b0   :  { %v3125_v55 = vpop.eup %3124 }
 0x2b1   :  { %v668_v57 = vmul.f32 %v3125_v55, %v662_v56  ;;  %v3321_v55 = vld [vmem:[%s4395_s1 + $0x78] sm:$0xff]  ;;  %v3322_v56 = vld [vmem:[%s4395_s1 + $0x10] sm:$0xff] }
 0x2b3   :  { %669 = vst.msk [vmem:[#allocation2 + $0x18] sm:$0xff] %vm47_vm12, %v668_v57  ;;  %2903 = vmatmul.msk.f32.vlgmr.msra.gmra.mxu0 %vm47_vm12, %v668_v57  ;;  %2905 = vmatmul.msk.f32.vlgmr.msra.gmra.mxu1 %vm47_vm12, %v668_v57 }
 0x2b4   :  { %2907 = vmatmul.msk.f32.vlgmr.msra.gmra.mxu2 %vm47_vm12, %v668_v57  ;;  %2909 = vmatmul.msk.f32.vlgmr.msra.gmra.mxu3 %vm47_vm12, %v668_v57  ;;  %v3323_v57 = vld [vmem:[%s4395_s1 + $0x30] sm:$0xff] }
 0x2b5   :  { %996 = vmatpush.msra.mxu0 %v3421_v0  ;;  %1018 = vmatpush.msra.mxu1 %v3426_v1  ;;  %v670_v0 = vld [vmem:[%s4394_s0 + $0x20] sm:$0xff] }
 0x2b6   :  { %1040 = vmatpush.msra.mxu2 %v3482_v11  ;;  %1062 = vmatpush.msra.mxu3 %v3431_v2  ;;  %v2904_v1 = vld [vmem:[%s4394_s0 + $0x60] sm:$0xff] }
 0x2b7   :  { %997 = vmatpush.msra.mxu0 %v3438_v3  ;;  %1019 = vmatpush.msra.mxu1 %v3443_v4 }
 0x2b8   :  { %1041 = vmatpush.msra.mxu2 %v3498_v13  ;;  %1063 = vmatpush.msra.mxu3 %v3448_v5 }
 0x2b9   :  { %998 = vmatpush.msra.mxu0 %v3454_v6  ;;  %1020 = vmatpush.msra.mxu1 %v3459_v7 }
 0x2ba   :  { %1042 = vmatpush.msra.mxu2 %v3507_v15  ;;  %1064 = vmatpush.msra.mxu3 %v3466_v8  ;;  %v2908_v8 = vld [vmem:[%s4394_s0 + $0xe0] sm:$0xff] }
 0x2bb   :  { %999 = vmatpush.msra.mxu0 %v3472_v9  ;;  %1021 = vmatpush.msra.mxu1 %v3477_v10 }
 0x2bc   :  { %1043 = vmatpush.msra.mxu2 %v3514_v16  ;;  %1065 = vmatpush.msra.mxu3 %v3489_v12 }
 0x330   :  { %v691_v2 = vpop.f32.mrf.mxu0  ;;  %v713_v3 = vpop.f32.mrf.mxu1 }
 0x331   :  { %v694_v4 = vadd.f32 %v691_v2, %v670_v0  ;;  %v716_v5 = vadd.f32 %v2904_v1, %v713_v3  ;;  %v3324_v0 = vld [vmem:[%s4395_s1 + $0x50] sm:$0xff]  ;;  %v3326_v2 = vld [vmem:[%s4395_s1 + $0x8] sm:$0xff] }
 0x332   :  { %v3325_v1 = vld [vmem:[%s4395_s1 + $0x70] sm:$0xff]  ;;  %v3327_v3 = vld [vmem:[%s4395_s1 + $0x28] sm:$0xff] }
 0x333   :  { %v2910_v6 = vmul.f32 -1.442695, %v694_v4  ;;  %v2911_v7 = vmul.f32 -1.442695, %v716_v5  ;;  %v3328_v4 = vld [vmem:[%s4395_s1 + $0x48] sm:$0xff] }
 0x334   :  { %v3329_v5 = vld [vmem:[%s4395_s1 + $0x68] sm:$0xff] }
 0x335   :  { %3126 = vpow2.f32 %v2910_v6  ;;  %v3330_v6 = vld [vmem:[%s4395_s1] sm:$0xff] }
 0x336   :  { %3128 = vpow2.f32 %v2911_v7  ;;  %v3331_v7 = vld [vmem:[%s4395_s1 + $0x20] sm:$0xff] }
 0x337   :  { %v757_v9 = vpop.f32.mrf.mxu3  ;;  %v735_v58 = vpop.f32.mrf.mxu2 }
 0x338   :  { %v760_v10 = vadd.f32 %v2908_v8, %v757_v9  ;;  %v738_v62 = vadd.f32 %v2906_v39, %v735_v58  ;;  %v3332_v8 = vld [vmem:[%s4395_s1 + $0x40] sm:$0xff] }
 0x339   :  { %v3333_v9 = vld [vmem:[%s4395_s1 + $0x60] sm:$0xff] }
 0x33a   :  { %v2912_v11 = vmul.f32 -1.442695, %v760_v10  ;;  %v825_v10 = vld [vmem:[%s4394_s0 + $0x28] sm:$0xff] }
 0x33b   :  { %v3127_v12 = vpop.eup %3126 }
 0x33c   :  { %v3129_v13 = vpop.eup %3128  ;;  %v764_v15 = vadd.f32 1.0, %v3127_v12  ;;  %3130 = vpow2.f32 %v2912_v11  ;;  %v2914_v11 = vld [vmem:[%s4394_s0 + $0x68] sm:$0xff] }
 0x33d   :  { %v783_v16 = vadd.f32 1.0, %v3129_v13 }
 0x33e   :  { %3132 = vrcp.f32 %v764_v15  ;;  %v776_v22 = vand.u32 2147483648, %v764_v15  ;;  %v774_v25 = vand.u32 2147483647, %v764_v15  ;;  %vm770_vm5 = vweird.f32 %v764_v15 }
 0x33f   :  { %3134 = vrcp.f32 %v783_v16  ;;  %v795_v23 = vand.u32 2147483648, %v783_v16  ;;  %v793_v27 = vand.u32 2147483647, %v783_v16  ;;  %vm789_vm6 = vweird.f32 %v783_v16 }
 0x340   :  { %v777_v31 = vor.u32 1.1754944e-38, %v776_v22  ;;  %vm775_vm9 = vcmp.eq.f32.partialorder %v774_v25, 8.507059e+37 }
 0x341   :  { %v796_v34 = vor.u32 1.1754944e-38, %v795_v23  ;;  %vm794_vm10 = vcmp.eq.f32.partialorder %v793_v27, 8.507059e+37 }
 0x342   :  { %v3131_v59 = vpop.eup %3130 }
 0x343   :  { %v803_v60 = vadd.f32 1.0, %v3131_v59  ;;  %v2918_v59 = vld [vmem:[%s4394_s0 + $0xe8] sm:$0xff] }
 0x344   :  { %v3133_v61 = vpop.eup %3132 }
 0x345   :  { %v3135_v63 = vpop.eup %3134  ;;  %v766_v17 = vmul.f32 %v3133_v61, %v764_v15  ;;  %3136 = vrcp.f32 %v803_v60  ;;  %vm771_vm3 = vweird.f32 %v3133_v61  ;;  %v815_v46 = vand.u32 2147483648, %v803_v60 }
 0x346   :  { %v785_v19 = vmul.f32 %v3135_v63, %v783_v16  ;;  %3138 = vtanh.f32 %v738_v62  ;;  %vm790_vm4 = vweird.f32 %v3135_v63  ;;  %vm772_vm7 = vmor %vm770_vm5, %vm771_vm3  ;;  %vm809_vm13 = vweird.f32 %v803_v60 }
 0x347   :  { %v767_v20 = vsub.f32 1.0, %v766_v17  ;;  %vm791_vm8 = vmor %vm789_vm6, %vm790_vm4  ;;  %v813_v47 = vand.u32 2147483647, %v803_v60  ;;  %v816_v48 = vor.u32 1.1754944e-38, %v815_v46 }
 0x348   :  { %v786_v21 = vsub.f32 1.0, %v785_v19 }
 0x349   :  { %v768_v24 = vmul.f32 %v3133_v61, %v767_v20  ;;  %vm814_vm15 = vcmp.eq.f32.partialorder %v813_v47, 8.507059e+37 }
 0x34a   :  { %v787_v26 = vmul.f32 %v3135_v63, %v786_v21  ;;  %v2916_v21 = vld [vmem:[%s4394_s0 + $0xa8] sm:$0xff] }
 0x34b   :  { %v3137_v28 = vpop.eup %3136  ;;  %v769_v30 = vadd.f32 %v3133_v61, %v768_v24 }
 0x34c   :  { %v788_v32 = vadd.f32 %v3135_v63, %v787_v26  ;;  %v805_v33 = vmul.f32 %v3137_v28, %v803_v60  ;;  %v3139_v36 = vpop.eup %3138  ;;  %vm810_vm11 = vweird.f32 %v3137_v28 }
 0x34d   :  { %v773_v35 = vsel %vm772_vm7, %v3133_v61, %v769_v30  ;;  %vm811_vm14 = vmor %vm809_vm13, %vm810_vm11 }
 0x34e   :  { %v778_v37 = vsel %vm775_vm9, %v777_v31, %v773_v35  ;;  %v792_v18 = vsel %vm791_vm8, %v3135_v63, %v788_v32  ;;  %v806_v38 = vsub.f32 1.0, %v805_v33 }
 0x34f   :  { %v797_v40 = vsel %vm794_vm10, %v796_v34, %v792_v18  ;;  %v820_v41 = vmul.f32 %v3139_v36, %v778_v37 }
 0x350   :  { %v819_v42 = vmul.f32 %v797_v40, %v3673_v49  ;;  %v807_v43 = vmul.f32 %v3137_v28, %v806_v38  ;;  %v3318_v49 = vld [vmem:[%s4395_s1 + $0x18] sm:$0xff] }
 0x352   :  { %v3710_v44 = vadd.f32 %v820_v41, %v819_v42  ;;  %v808_v45 = vadd.f32 %v3137_v28, %v807_v43 }
 0x354   :  { %3140 = vtanh.f32 %v3710_v44  ;;  %v812_v29 = vsel %vm811_vm14, %v3137_v28, %v808_v45 }
 0x355   :  { %v817_v51 = vsel %vm814_vm15, %v816_v48, %v812_v29 }
 0x35a   :  { %v3141_v50 = vpop.eup %3140 }
 0x35b   :  { %v823_v52 = vmul.f32 %v3141_v50, %v817_v51 }
 0x35d   :  { %824 = vst.msk [vmem:[#allocation2 + $0x20] sm:$0xff] %vm47_vm12, %v823_v52  ;;  %2913 = vmatmul.msk.f32.vlgmr.msrb.gmra.mxu0 %vm47_vm12, %v823_v52  ;;  %2915 = vmatmul.msk.f32.vlgmr.msrb.gmra.mxu1 %vm47_vm12, %v823_v52 }
 0x35e   :  { %2917 = vmatmul.msk.f32.vlgmr.msrb.gmra.mxu2 %vm47_vm12, %v823_v52  ;;  %2919 = vmatmul.msk.f32.vlgmr.msrb.gmra.mxu3 %vm47_vm12, %v823_v52 }
 0x35f   :  { %1151 = vmatpush.msrb.mxu0 %v3318_v49  ;;  %1173 = vmatpush.msrb.mxu1 %v3319_v53 }
 0x360   :  { %1195 = vmatpush.msrb.mxu2 %v3320_v54  ;;  %1217 = vmatpush.msrb.mxu3 %v3321_v55 }
 0x361   :  { %1152 = vmatpush.msrb.mxu0 %v3322_v56  ;;  %1174 = vmatpush.msrb.mxu1 %v3323_v57 }
 0x362   :  { %1196 = vmatpush.msrb.mxu2 %v3324_v0  ;;  %1218 = vmatpush.msrb.mxu3 %v3325_v1 }
 0x363   :  { %1153 = vmatpush.msrb.mxu0 %v3326_v2  ;;  %1175 = vmatpush.msrb.mxu1 %v3327_v3 }
 0x364   :  { %1197 = vmatpush.msrb.mxu2 %v3328_v4  ;;  %1219 = vmatpush.msrb.mxu3 %v3329_v5  ;;  %v2924_v5 = vld [vmem:[%s4394_s0 + $0x70] sm:$0xff] }
 0x365   :  { %1154 = vmatpush.msrb.mxu0 %v3330_v6  ;;  %1176 = vmatpush.msrb.mxu1 %v3331_v7 }
 0x366   :  { %1198 = vmatpush.msrb.mxu2 %v3332_v8  ;;  %1220 = vmatpush.msrb.mxu3 %v3333_v9 }
 0x3da   :  { %v846_v12 = vpop.f32.mrf.mxu0  ;;  %v868_v13 = vpop.f32.mrf.mxu1 }
 0x3db   :  { %v849_v15 = vadd.f32 %v846_v12, %v825_v10  ;;  %v871_v16 = vadd.f32 %v2914_v11, %v868_v13  ;;  %v2928_v12 = vld [vmem:[%s4394_s0 + $0xf0] sm:$0xff] }
 0x3dd   :  { %v2920_v39 = vmul.f32 -1.442695, %v849_v15  ;;  %v2921_v58 = vmul.f32 -1.442695, %v871_v16 }
 0x3df   :  { %3142 = vpow2.f32 %v2920_v39 }
 0x3e0   :  { %3144 = vpow2.f32 %v2921_v58 }
 0x3e1   :  { %v912_v60 = vpop.f32.mrf.mxu3  ;;  %v890_v22 = vpop.f32.mrf.mxu2 }
 0x3e2   :  { %v915_v61 = vadd.f32 %v2918_v59, %v912_v60  ;;  %v893_v26 = vadd.f32 %v2916_v21, %v890_v22  ;;  %v2953_v21 = vld [vmem:[%s4396_s2 + $0x30] sm:$0xff] }
 0x3e3   :  { %v2966_v22 = vld [vmem:[%s4396_s2 + $0x50] sm:$0xff] }
 0x3e4   :  { %v2922_v62 = vmul.f32 -1.442695, %v915_v61  ;;  %v1301_v61 = vld [vmem:[%s4396_s2 + $0x18] sm:$0xff] }
 0x3e5   :  { %v3143_v63 = vpop.eup %3142 }
 0x3e6   :  { %v3145_v17 = vpop.eup %3144  ;;  %v919_v19 = vadd.f32 1.0, %v3143_v63  ;;  %3146 = vpow2.f32 %v2922_v62  ;;  %v2954_v62 = vld [vmem:[%s4396_s2 + $0x38] sm:$0xff] }
 0x3e7   :  { %v938_v20 = vadd.f32 1.0, %v3145_v17  ;;  %v2967_v63 = vld [vmem:[%s4396_s2 + $0x58] sm:$0xff]  ;;  %v2926_v17 = vld [vmem:[%s4394_s0 + $0xb0] sm:$0xff] }
 0x3e8   :  { %3148 = vrcp.f32 %v919_v19  ;;  %v931_v33 = vand.u32 2147483648, %v919_v19  ;;  %v929_v36 = vand.u32 2147483647, %v919_v19  ;;  %vm925_vm2 = vweird.f32 %v919_v19 }
 0x3e9   :  { %3150 = vrcp.f32 %v938_v20  ;;  %v950_v34 = vand.u32 2147483648, %v938_v20  ;;  %v948_v18 = vand.u32 2147483647, %v938_v20  ;;  %vm944_vm3 = vweird.f32 %v938_v20 }
 0x3ea   :  { %v932_v41 = vor.u32 1.1754944e-38, %v931_v33  ;;  %vm930_vm6 = vcmp.eq.f32.partialorder %v929_v36, 8.507059e+37 }
 0x3eb   :  { %v951_v45 = vor.u32 1.1754944e-38, %v950_v34  ;;  %vm949_vm7 = vcmp.eq.f32.partialorder %v948_v18, 8.507059e+37  ;;  %v2964_v34 = vld [vmem:[%s4396_s2 + $0x40] sm:$0xff] }
 0x3ec   :  { %v3147_v23 = vpop.eup %3146 }
 0x3ed   :  { %v958_v24 = vadd.f32 1.0, %v3147_v23  ;;  %v2979_v23 = vld [vmem:[%s4396_s2 + $0x70] sm:$0xff] }
 0x3ee   :  { %v3149_v25 = vpop.eup %3148 }
 0x3ef   :  { %v3151_v27 = vpop.eup %3150  ;;  %v921_v28 = vmul.f32 %v3149_v25, %v919_v19  ;;  %3152 = vrcp.f32 %v958_v24  ;;  %vm926_vm0 = vweird.f32 %v3149_v25  ;;  %v970_v56 = vand.u32 2147483648, %v958_v24  ;;  %v2980_v19 = vld [vmem:[%s4396_s2 + $0x78] sm:$0xff] }
 0x3f0   :  { %v940_v30 = vmul.f32 %v3151_v27, %v938_v20  ;;  %3154 = vtanh.f32 %v893_v26  ;;  %vm945_vm1 = vweird.f32 %v3151_v27  ;;  %vm927_vm4 = vmor %vm925_vm2, %vm926_vm0  ;;  %vm964_vm9 = vweird.f32 %v958_v24  ;;  %v1300_v20 = vld [vmem:[%s4396_s2 + $0x10] sm:$0xff]  ;;  %v2952_v26 = vld [vmem:[%s4396_s2 + $0x28] sm:$0xff] }
 0x3f1   :  { %v922_v31 = vsub.f32 1.0, %v921_v28  ;;  %vm946_vm5 = vmor %vm944_vm3, %vm945_vm1  ;;  %v968_v57 = vand.u32 2147483647, %v958_v24  ;;  %v971_v1 = vor.u32 1.1754944e-38, %v970_v56  ;;  %v2978_v28 = vld [vmem:[%s4396_s2 + $0x68] sm:$0xff] }
 0x3f2   :  { %v941_v32 = vsub.f32 1.0, %v940_v30 }
 0x3f3   :  { %v923_v35 = vmul.f32 %v3149_v25, %v922_v31  ;;  %vm969_vm11 = vcmp.eq.f32.partialorder %v968_v57, 8.507059e+37  ;;  %v1298_v31 = vld [vmem:[%s4396_s2] sm:$0xff] }
 0x3f4   :  { %v942_v37 = vmul.f32 %v3151_v27, %v941_v32  ;;  %v2951_v32 = vld [vmem:[%s4396_s2 + $0x20] sm:$0xff] }
 0x3f5   :  { %v3153_v38 = vpop.eup %3152  ;;  %v924_v40 = vadd.f32 %v3149_v25, %v923_v35  ;;  %v2977_v35 = vld [vmem:[%s4396_s2 + $0x60] sm:$0xff] }
 0x3f6   :  { %v943_v42 = vadd.f32 %v3151_v27, %v942_v37  ;;  %v960_v43 = vmul.f32 %v3153_v38, %v958_v24  ;;  %v3155_v47 = vpop.eup %3154  ;;  %vm965_vm8 = vweird.f32 %v3153_v38  ;;  %v1299_v24 = vld [vmem:[%s4396_s2 + $0x8] sm:$0xff] }
 0x3f7   :  { %v928_v46 = vsel %vm927_vm4, %v3149_v25, %v924_v40  ;;  %vm966_vm10 = vmor %vm964_vm9, %vm965_vm8 }
 0x3f8   :  { %v933_v29 = vsel %vm930_vm6, %v932_v41, %v928_v46  ;;  %v947_v48 = vsel %vm946_vm5, %v3151_v27, %v943_v42  ;;  %v961_v50 = vsub.f32 1.0, %v960_v43  ;;  %v2965_v27 = vld [vmem:[%s4396_s2 + $0x48] sm:$0xff] }
 0x3f9   :  { %v952_v51 = vsel %vm949_vm7, %v951_v45, %v947_v48  ;;  %v975_v52 = vmul.f32 %v3155_v47, %v933_v29 }
 0x3fa   :  { %v974_v49 = vmul.f32 %v952_v51, %v3710_v44  ;;  %v962_v53 = vmul.f32 %v3153_v38, %v961_v50  ;;  %v980_v44 = vld [vmem:[%s4394_s0 + $0x30] sm:$0xff] }
 0x3fc   :  { %v3779_v54 = vadd.f32 %v975_v52, %v974_v49  ;;  %v963_v55 = vadd.f32 %v3153_v38, %v962_v53 }
 0x3fe   :  { %3156 = vtanh.f32 %v3779_v54  ;;  %v967_v0 = vsel %vm966_vm10, %v3153_v38, %v963_v55 }
 0x3ff   :  { %v972_v3 = vsel %vm969_vm11, %v971_v1, %v967_v0 }
 0x404   :  { %v3157_v2 = vpop.eup %3156 }
 0x405   :  { %v978_v4 = vmul.f32 %v3157_v2, %v972_v3 }
 0x407   :  { %979 = vst.msk [vmem:[#allocation2 + $0x28] sm:$0xff] %vm47_vm12, %v978_v4  ;;  %2923 = vmatmul.msk.f32.vlgmr.msra.gmra.mxu0 %vm47_vm12, %v978_v4  ;;  %2925 = vmatmul.msk.f32.vlgmr.msra.gmra.mxu1 %vm47_vm12, %v978_v4 }
 0x408   :  { %2927 = vmatmul.msk.f32.vlgmr.msra.gmra.mxu2 %vm47_vm12, %v978_v4  ;;  %2929 = vmatmul.msk.f32.vlgmr.msra.gmra.mxu3 %vm47_vm12, %v978_v4 }
 0x409   :  { %1342 = vmatpush.msra.mxu0 %v1301_v61  ;;  %1401 = vmatpush.msra.mxu1 %v2954_v62  ;;  %v1294_v61 = vld [vmem:[#allocation2 + $0x20] sm:$0xff] }
 0x40a   :  { %1461 = vmatpush.msra.mxu2 %v2967_v63  ;;  %1521 = vmatpush.msra.mxu3 %v2980_v19  ;;  %v1135_v19 = vld [vmem:[%s4394_s0 + $0x38] sm:$0xff] }
 0x40b   :  { %1343 = vmatpush.msra.mxu0 %v1300_v20  ;;  %1402 = vmatpush.msra.mxu1 %v2953_v21  ;;  %v2934_v20 = vld [vmem:[%s4394_s0 + $0x78] sm:$0xff] }
 0x40c   :  { %1462 = vmatpush.msra.mxu2 %v2966_v22  ;;  %1522 = vmatpush.msra.mxu3 %v2979_v23 }
 0x40d   :  { %1344 = vmatpush.msra.mxu0 %v1299_v24  ;;  %1403 = vmatpush.msra.mxu1 %v2952_v26 }
 0x40e   :  { %1463 = vmatpush.msra.mxu2 %v2965_v27  ;;  %1523 = vmatpush.msra.mxu3 %v2978_v28  ;;  %v1295_v62 = vld [vmem:[#allocation2 + $0x28] sm:$0xff]  ;;  %v2938_v27 = vld [vmem:[%s4394_s0 + $0xf8] sm:$0xff]  ;;  %v3928_v28 = vld [vmem:[%s4398_s4] ss:$0 sm:$0xff] }
 0x40f   :  { %1345 = vmatpush.msra.mxu0 %v1298_v31  ;;  %1404 = vmatpush.msra.mxu1 %v2951_v32 }
 0x410   :  { %1464 = vmatpush.msra.mxu2 %v2964_v34  ;;  %1524 = vmatpush.msra.mxu3 %v2977_v35 }
 0x484   :  { %v1001_v6 = vpop.f32.mrf.mxu0  ;;  %v1023_v7 = vpop.f32.mrf.mxu1 }
 0x485   :  { %v1004_v8 = vadd.f32 %v1001_v6, %v980_v44  ;;  %v1026_v9 = vadd.f32 %v2924_v5, %v1023_v7 }
 0x487   :  { %v2930_v10 = vmul.f32 -1.442695, %v1004_v8  ;;  %v2931_v11 = vmul.f32 -1.442695, %v1026_v9 }
 0x489   :  { %3158 = vpow2.f32 %v2930_v10 }
 0x48a   :  { %3160 = vpow2.f32 %v2931_v11 }
 0x48b   :  { %v1067_v13 = vpop.f32.mrf.mxu3  ;;  %v1045_v25 = vpop.f32.mrf.mxu2 }
 0x48c   :  { %v1070_v15 = vadd.f32 %v2928_v12, %v1067_v13  ;;  %v1048_v37 = vadd.f32 %v2926_v17, %v1045_v25  ;;  %v3913_v17 = vld [vmem:[%s4397_s3 + $0x78] sm:$0xff] }
 0x48e   :  { %v2932_v16 = vmul.f32 -1.442695, %v1070_v15 }
 0x48f   :  { %v3159_v39 = vpop.eup %3158 }
 0x490   :  { %v3161_v58 = vpop.eup %3160  ;;  %v3796_v59 = vadd.f32 1.0, %v3159_v39  ;;  %3162 = vpow2.f32 %v2932_v16  ;;  %v1291_v16 = vld [vmem:[#allocation2 + $0x8] sm:$0xff]  ;;  %v1292_v39 = vld [vmem:[#allocation2 + $0x10] sm:$0xff] }
 0x491   :  { %v3798_v60 = vadd.f32 1.0, %v3161_v58  ;;  %v3885_v58 = vld [vmem:[%s4397_s3 + $0x18] sm:$0xff] }
 0x492   :  { %3164 = vrcp.f32 %v3796_v59  ;;  %v1086_v43 = vand.u32 2147483648, %v3796_v59  ;;  %v1084_v47 = vand.u32 2147483647, %v3796_v59  ;;  %vm1080_vm15 = vweird.f32 %v3796_v59 }
 0x493   :  { %3166 = vrcp.f32 %v3798_v60  ;;  %v1105_v45 = vand.u32 2147483648, %v3798_v60  ;;  %v1103_v48 = vand.u32 2147483647, %v3798_v60  ;;  %vm1099_vm0 = vweird.f32 %v3798_v60 }
 0x494   :  { %v1087_v52 = vor.u32 1.1754944e-38, %v1086_v43  ;;  %vm1085_vm3 = vcmp.eq.f32.partialorder %v1084_v47, 8.507059e+37  ;;  %v3949_v43 = vld [vmem:[%s4398_s4 + $0x3] ss:$0 sm:$0xff]  ;;  %v3961_v47 = vld [vmem:[%s4397_s3 + $0x10] sm:$0xff] }
 0x495   :  { %v1106_v55 = vor.u32 1.1754944e-38, %v1105_v45  ;;  %vm1104_vm4 = vcmp.eq.f32.partialorder %v1103_v48, 8.507059e+37  ;;  %v3974_v48 = vld [vmem:[%s4397_s3 + $0x70] sm:$0xff] }
 0x496   :  { %v3163_v30 = vpop.eup %3162 }
 0x497   :  { %v1113_v33 = vadd.f32 1.0, %v3163_v30  ;;  %v3933_v30 = vld [vmem:[%s4398_s4 + $0x1] ss:$0 sm:$0xff] }
 0x498   :  { %v3165_v36 = vpop.eup %3164 }
 0x499   :  { %v3167_v18 = vpop.eup %3166  ;;  %v1076_v38 = vmul.f32 %v3165_v36, %v3796_v59  ;;  %3168 = vrcp.f32 %v1113_v33  ;;  %vm1081_vm13 = vweird.f32 %v3165_v36  ;;  %v1125_v8 = vand.u32 2147483648, %v1113_v33  ;;  %v3890_v59 = vld [vmem:[%s4397_s3 + $0x38] sm:$0xff] }
 0x49a   :  { %v1095_v40 = vmul.f32 %v3167_v18, %v3798_v60  ;;  %3170 = vtanh.f32 %v1048_v37  ;;  %vm1100_vm14 = vweird.f32 %v3167_v18  ;;  %vm1082_vm1 = vmor %vm1080_vm15, %vm1081_vm13  ;;  %vm1119_vm6 = vweird.f32 %v1113_v33  ;;  %v1293_v60 = vld [vmem:[#allocation2 + $0x18] sm:$0xff] }
 0x49b   :  { %v1077_v41 = vsub.f32 1.0, %v1076_v38  ;;  %vm1101_vm2 = vmor %vm1099_vm0, %vm1100_vm14  ;;  %v1123_v9 = vand.u32 2147483647, %v1113_v33  ;;  %v1126_v11 = vor.u32 1.1754944e-38, %v1125_v8 }
 0x49c   :  { %v1096_v42 = vsub.f32 1.0, %v1095_v40 }
 0x49d   :  { %v1078_v46 = vmul.f32 %v3165_v36, %v1077_v41  ;;  %vm1124_vm8 = vcmp.eq.f32.partialorder %v1123_v9, 8.507059e+37 }
 0x49e   :  { %v1097_v29 = vmul.f32 %v3167_v18, %v1096_v42  ;;  %v3944_v42 = vld [vmem:[%s4398_s4 + $0x2] ss:$0 sm:$0xff] }
 0x49f   :  { %v3169_v50 = vpop.eup %3168  ;;  %v1079_v51 = vadd.f32 %v3165_v36, %v1078_v46  ;;  %v3956_v46 = vld [vmem:[%s4397_s3 + $0x58] sm:$0xff] }
 0x4a0   :  { %v1098_v49 = vadd.f32 %v3167_v18, %v1097_v29  ;;  %v1115_v53 = vmul.f32 %v3169_v50, %v1113_v33  ;;  %v3171_v57 = vpop.eup %3170  ;;  %vm1120_vm5 = vweird.f32 %v3169_v50  ;;  %v3966_v29 = vld [vmem:[%s4397_s3 + $0x30] sm:$0xff] }
 0x4a1   :  { %v1083_v56 = vsel %vm1082_vm1, %v3165_v36, %v1079_v51  ;;  %vm1121_vm7 = vmor %vm1119_vm6, %vm1120_vm5  ;;  %v3984_v51 = vld [vmem:[%s4397_s3 + $0x8] sm:$0xff] }
 0x4a2   :  { %v1088_v0 = vsel %vm1085_vm3, %v1087_v52, %v1083_v56  ;;  %v1102_v1 = vsel %vm1101_vm2, %v3167_v18, %v1098_v49  ;;  %v1116_v2 = vsub.f32 1.0, %v1115_v53  ;;  %v3992_v53 = vld [vmem:[%s4397_s3 + $0x28] sm:$0xff] }
 0x4a3   :  { %v1107_v3 = vsel %vm1104_vm4, %v1106_v55, %v1102_v1  ;;  %v1130_v4 = vmul.f32 %v3171_v57, %v1088_v0  ;;  %v3997_v55 = vld [vmem:[%s4397_s3 + $0x68] sm:$0xff]  ;;  %v2936_v57 = vld [vmem:[%s4394_s0 + $0xb8] sm:$0xff] }
 0x4a4   :  { %v1129_v44 = vmul.f32 %v1107_v3, %v3779_v54  ;;  %v1117_v5 = vmul.f32 %v3169_v50, %v1116_v2  ;;  %v1290_v54 = vld [vmem:[#allocation2] sm:$0xff]  ;;  %v4002_v56 = vld [vmem:[%s4397_s3 + $0x48] sm:$0xff] }
 0x4a6   :  { %v3862_v6 = vadd.f32 %v1130_v4, %v1129_v44  ;;  %v1118_v7 = vadd.f32 %v3169_v50, %v1117_v5  ;;  %v4014_v4 = vld [vmem:[%s4397_s3] sm:$0xff] }
 0x4a7   :  { %v4019_v44 = vld [vmem:[%s4397_s3 + $0x20] sm:$0xff] }
 0x4a8   :  { %3172 = vtanh.f32 %v3862_v6  ;;  %v1122_v10 = vsel %vm1121_vm7, %v3169_v50, %v1118_v7  ;;  %v3979_v50 = vld [vmem:[%s4397_s3 + $0x50] sm:$0xff] }
 0x4a9   :  { %v1127_v13 = vsel %vm1124_vm8, %v1126_v11, %v1122_v10 }
 0x4ae   :  { %v3173_v12 = vpop.eup %3172 }
 0x4af   :  { %v1133_v15 = vmul.f32 %v3173_v12, %v1127_v13 }
 0x4b1   :  { %1134 = vst.msk [vmem:[#allocation2 + $0x30] sm:$0xff] %vm47_vm12, %v1133_v15  ;;  %2933 = vmatmul.msk.f32.vlgmr.msrb.gmra.mxu0 %vm47_vm12, %v1133_v15  ;;  %2935 = vmatmul.msk.f32.vlgmr.msrb.gmra.mxu1 %vm47_vm12, %v1133_v15 }
 0x4b2   :  { %2937 = vmatmul.msk.f32.vlgmr.msrb.gmra.mxu2 %vm47_vm12, %v1133_v15  ;;  %2939 = vmatmul.msk.f32.vlgmr.msrb.gmra.mxu3 %vm47_vm12, %v1133_v15  ;;  %v4041_v15 = vld [vmem:[%s4397_s3 + $0x60] sm:$0xff] }
 0x4b3   :  { %1591 = vmatpush.msrb.mxu0 %v3885_v58  ;;  %1613 = vmatpush.msrb.mxu1 %v3890_v59 }
 0x4b4   :  { %1657 = vmatpush.msrb.mxu3 %v3913_v17  ;;  %1635 = vmatpush.msrb.mxu2 %v3956_v46 }
 0x4b5   :  { %1592 = vmatpush.msrb.mxu0 %v3961_v47  ;;  %1614 = vmatpush.msrb.mxu1 %v3966_v29 }
 0x4b6   :  { %1658 = vmatpush.msrb.mxu3 %v3974_v48  ;;  %1636 = vmatpush.msrb.mxu2 %v3979_v50 }
 0x4b7   :  { %1593 = vmatpush.msrb.mxu0 %v3984_v51  ;;  %1615 = vmatpush.msrb.mxu1 %v3992_v53 }
 0x4b8   :  { %v1296_v63 = vld [vmem:[#allocation2 + $0x30] sm:$0xff]  ;;  %1659 = vmatpush.msrb.mxu3 %v3997_v55  ;;  %1637 = vmatpush.msrb.mxu2 %v4002_v56 }
 0x4b9   :  { %2943 = vmatmul.msk.f32.vlgmr.msra.gmra.mxu0 %vm47_vm12, %v1290_v54  ;;  %2956 = vmatmul.msk.f32.vlgmr.msra.gmra.mxu1 %vm47_vm12, %v1290_v54 }
 0x4ba   :  { %2969 = vmatmul.msk.f32.vlgmr.msra.gmra.mxu2 %vm47_vm12, %v1290_v54  ;;  %2982 = vmatmul.msk.f32.vlgmr.msra.gmra.mxu3 %vm47_vm12, %v1290_v54 }
 0x4bb   :  { %1594 = vmatpush.msrb.mxu0 %v4014_v4  ;;  %1616 = vmatpush.msrb.mxu1 %v4019_v44 }
 0x4bc   :  { %1660 = vmatpush.msrb.mxu3 %v4041_v15 }
 0x4bd   :  { %1745 = vmatpush.msra.mxu0 %v3885_v58  ;;  %1767 = vmatpush.msra.mxu1 %v3890_v59 }
 0x4be   :  { %1811 = vmatpush.msra.mxu3 %v3913_v17 }
 0x4bf   :  { %1746 = vmatpush.msra.mxu0 %v3961_v47  ;;  %1768 = vmatpush.msra.mxu1 %v3966_v29 }
 0x4c0   :  { %1812 = vmatpush.msra.mxu3 %v3974_v48 }
 0x4c1   :  { %2944 = vmatmul.msk.f32.gmra.mxu0 %vm47_vm12, %v1291_v16  ;;  %2957 = vmatmul.msk.f32.gmra.mxu1 %vm47_vm12, %v1291_v16 }
 0x4c2   :  { %2970 = vmatmul.msk.f32.gmra.mxu2 %vm47_vm12, %v1291_v16  ;;  %2983 = vmatmul.msk.f32.gmra.mxu3 %vm47_vm12, %v1291_v16 }
 0x4c3   :  { %1747 = vmatpush.msra.mxu0 %v3984_v51  ;;  %1769 = vmatpush.msra.mxu1 %v3992_v53 }
 0x4c4   :  { %1813 = vmatpush.msra.mxu3 %v3997_v55 }
 0x4c5   :  { %1748 = vmatpush.msra.mxu0 %v4014_v4  ;;  %1770 = vmatpush.msra.mxu1 %v4019_v44 }
 0x4c6   :  { %1814 = vmatpush.msra.mxu3 %v4041_v15 }
 0x4c9   :  { %2945 = vmatmul.msk.f32.gmra.mxu0 %vm47_vm12, %v1292_v39  ;;  %2958 = vmatmul.msk.f32.gmra.mxu1 %vm47_vm12, %v1292_v39 }
 0x4ca   :  { %2971 = vmatmul.msk.f32.gmra.mxu2 %vm47_vm12, %v1292_v39  ;;  %2984 = vmatmul.msk.f32.gmra.mxu3 %vm47_vm12, %v1292_v39 }
 0x4d1   :  { %2946 = vmatmul.msk.f32.gmra.mxu0 %vm47_vm12, %v1293_v60  ;;  %2959 = vmatmul.msk.f32.gmra.mxu1 %vm47_vm12, %v1293_v60 }
 0x4d2   :  { %2972 = vmatmul.msk.f32.gmra.mxu2 %vm47_vm12, %v1293_v60  ;;  %2985 = vmatmul.msk.f32.gmra.mxu3 %vm47_vm12, %v1293_v60 }
 0x4d9   :  { %2947 = vmatmul.msk.f32.gmra.mxu0 %vm47_vm12, %v1294_v61  ;;  %2960 = vmatmul.msk.f32.gmra.mxu1 %vm47_vm12, %v1294_v61 }
 0x4da   :  { %2973 = vmatmul.msk.f32.gmra.mxu2 %vm47_vm12, %v1294_v61  ;;  %2986 = vmatmul.msk.f32.gmra.mxu3 %vm47_vm12, %v1294_v61 }
 0x4e1   :  { %2948 = vmatmul.msk.f32.gmra.mxu0 %vm47_vm12, %v1295_v62  ;;  %2961 = vmatmul.msk.f32.gmra.mxu1 %vm47_vm12, %v1295_v62 }
 0x4e2   :  { %2974 = vmatmul.msk.f32.gmra.mxu2 %vm47_vm12, %v1295_v62  ;;  %2987 = vmatmul.msk.f32.gmra.mxu3 %vm47_vm12, %v1295_v62 }
 0x4e9   :  { %2949 = vmatmul.msk.f32.gmra.mxu0 %vm47_vm12, %v1296_v63  ;;  %2962 = vmatmul.msk.f32.gmra.mxu1 %vm47_vm12, %v1296_v63 }
 0x4ea   :  { %2975 = vmatmul.msk.f32.gmra.mxu2 %vm47_vm12, %v1296_v63  ;;  %2988 = vmatmul.msk.f32.gmra.mxu3 %vm47_vm12, %v1296_v63 }
 0x52e   :  { %v1156_v21 = vpop.f32.mrf.mxu0  ;;  %v1178_v22 = vpop.f32.mrf.mxu1 }
 0x52f   :  { %v1159_v23 = vadd.f32 %v1156_v21, %v1135_v19  ;;  %v1181_v24 = vadd.f32 %v2934_v20, %v1178_v22 }
 0x531   :  { %v2940_v25 = vmul.f32 -1.442695, %v1159_v23  ;;  %v2941_v26 = vmul.f32 -1.442695, %v1181_v24 }
 0x533   :  { %3174 = vpow2.f32 %v2940_v25 }
 0x534   :  { %3176 = vpow2.f32 %v2941_v26 }
 0x535   :  { %v1200_v31 = vpop.f32.mrf.mxu2  ;;  %v1222_v32 = vpop.f32.mrf.mxu3 }
 0x536   :  { %v1225_v33 = vadd.f32 %v2938_v27, %v1222_v32  ;;  %v1347_v34 = vpop.f32.mrf.mxu0  ;;  %v1406_v35 = vpop.f32.mrf.mxu1  ;;  %v1203_v9 = vadd.f32 %v2936_v57, %v1200_v31 }
 0x537   :  { %v1348_v36 = vadd.f32 %v3928_v28, %v1347_v34  ;;  %v1407_v37 = vadd.f32 %v3933_v30, %v1406_v35 }
 0x538   :  { %v2942_v18 = vmul.f32 -1.442695, %v1225_v33 }
 0x539   :  { %v3175_v38 = vpop.eup %3174  ;;  %1371 = vst.msk [vmem:[#allocation3] sm:$0xff] %vm47_vm12, %v1348_v36 }
 0x53a   :  { %v3177_v40 = vpop.eup %3176  ;;  %v3938_v41 = vadd.f32 1.0, %v3175_v38  ;;  %3178 = vpow2.f32 %v2942_v18  ;;  %1431 = vst.msk [vmem:[#allocation3 + $0x40] sm:$0xff] %vm47_vm12, %v1407_v37 }
 0x53b   :  { %v3951_v45 = vadd.f32 1.0, %v3177_v40  ;;  %v4077_v40 = vld [vmem:[%s4397_s3 + $0x40] sm:$0xff] }
 0x53c   :  { %3180 = vrcp.f32 %v3938_v41  ;;  %v1239_v39 = vand.u32 2147483647, %v3938_v41  ;;  %v1241_v60 = vand.u32 2147483648, %v3938_v41  ;;  %vm1235_vm11 = vweird.f32 %v3938_v41  ;;  %1638 = vmatpush.msrb.mxu2 %v4077_v40 }
 0x53d   :  { %3182 = vrcp.f32 %v3951_v45  ;;  %v1466_v52 = vpop.f32.mrf.mxu2  ;;  %v1526_v49 = vpop.f32.mrf.mxu3  ;;  %v1260_v19 = vand.u32 2147483648, %v3951_v45  ;;  %v1258_v31 = vand.u32 2147483647, %v3951_v45  ;;  %vm1254_vm13 = vweird.f32 %v3951_v45 }
 0x53e   :  { %v1467_v0 = vadd.f32 %v3944_v42, %v1466_v52  ;;  %v1527_v1 = vadd.f32 %v3949_v43, %v1526_v49  ;;  %v1350_v2 = vpop.f32.mrf.mxu0  ;;  %v1409_v3 = vpop.f32.mrf.mxu1  ;;  %v1242_v34 = vor.u32 1.1754944e-38, %v1241_v60  ;;  %vm1240_vm0 = vcmp.eq.f32.partialorder %v1239_v39, 8.507059e+37  ;;  %1789 = vmatpush.msra.mxu2 %v3956_v46 }
 0x53f   :  { %v1351_v5 = vadd.f32 %v3928_v28, %v1350_v2  ;;  %v1410_v7 = vadd.f32 %v3933_v30, %v1409_v3  ;;  %v1261_v18 = vor.u32 1.1754944e-38, %v1260_v19  ;;  %vm1259_vm1 = vcmp.eq.f32.partialorder %v1258_v31, 8.507059e+37 }
 0x540   :  { %v3179_v8 = vpop.eup %3178  ;;  %1491 = vst.msk [vmem:[#allocation3 + $0x80] sm:$0xff] %vm47_vm12, %v1467_v0  ;;  %1790 = vmatpush.msra.mxu2 %v3979_v50 }
 0x541   :  { %v4028_v10 = vadd.f32 1.0, %v3179_v8  ;;  %1551 = vst.msk [vmem:[#allocation3 + $0xc0] sm:$0xff] %vm47_vm12, %v1527_v1 }
 0x542   :  { %v3181_v11 = vpop.eup %3180  ;;  %1372 = vst.msk [vmem:[#allocation3 + $0x8] sm:$0xff] %vm47_vm12, %v1351_v5  ;;  %1791 = vmatpush.msra.mxu2 %v4002_v56 }
 0x543   :  { %v3183_v12 = vpop.eup %3182  ;;  %v1231_v13 = vmul.f32 %v3181_v11, %v3938_v41  ;;  %3184 = vrcp.f32 %v4028_v10  ;;  %1432 = vst.msk [vmem:[#allocation3 + $0x48] sm:$0xff] %vm47_vm12, %v1410_v7  ;;  %vm1236_vm9 = vweird.f32 %v3181_v11  ;;  %vm1274_vm3 = vweird.f32 %v4028_v10 }
 0x544   :  { %v1250_v54 = vmul.f32 %v3183_v12, %v3951_v45  ;;  %3186 = vtanh.f32 %v1203_v9  ;;  %vm1255_vm10 = vweird.f32 %v3183_v12  ;;  %vm1237_vm14 = vmor %vm1235_vm11, %vm1236_vm9  ;;  %1792 = vmatpush.msra.mxu2 %v4077_v40 }
 0x545   :  { %v1232_v16 = vsub.f32 1.0, %v1231_v13  ;;  %v1469_v61 = vpop.f32.mrf.mxu2  ;;  %v1529_v62 = vpop.f32.mrf.mxu3  ;;  %vm1256_vm15 = vmor %vm1254_vm13, %vm1255_vm10 }
 0x546   :  { %v1251_v63 = vsub.f32 1.0, %v1250_v54  ;;  %v1470_v20 = vadd.f32 %v3944_v42, %v1469_v61  ;;  %v1353_v21 = vpop.f32.mrf.mxu0  ;;  %v1412_v22 = vpop.f32.mrf.mxu1  ;;  %v1530_v24 = vadd.f32 %v3949_v43, %v1529_v62 }
 0x547   :  { %v1233_v23 = vmul.f32 %v3181_v11, %v1232_v16  ;;  %v1354_v25 = vadd.f32 %v3928_v28, %v1353_v21  ;;  %v1413_v26 = vadd.f32 %v3933_v30, %v1412_v22  ;;  %v1278_v16 = vand.u32 2147483647, %v4028_v10 }
 0x548   :  { %v1252_v27 = vmul.f32 %v3183_v12, %v1251_v63  ;;  %1492 = vst.msk [vmem:[#allocation3 + $0x88] sm:$0xff] %vm47_vm12, %v1470_v20 }
 0x549   :  { %v4062_v32 = vpop.eup %3184  ;;  %v1234_v33 = vadd.f32 %v3181_v11, %v1233_v23  ;;  %1552 = vst.msk [vmem:[#allocation3 + $0xc8] sm:$0xff] %vm47_vm12, %v1530_v24  ;;  %vm1279_vm5 = vcmp.eq.f32.partialorder %v1278_v16, 8.507059e+37 }
 0x54a   :  { %v1253_v35 = vadd.f32 %v3183_v12, %v1252_v27  ;;  %v1270_v36 = vmul.f32 %v4062_v32, %v4028_v10  ;;  %1373 = vst.msk [vmem:[#allocation3 + $0x10] sm:$0xff] %vm47_vm12, %v1354_v25  ;;  %v3187_v37 = vpop.eup %3186  ;;  %vm1275_vm2 = vweird.f32 %v4062_v32 }
 0x54b   :  { %v1238_v38 = vsel %vm1237_vm14, %v3181_v11, %v1234_v33  ;;  %1433 = vst.msk [vmem:[#allocation3 + $0x50] sm:$0xff] %vm47_vm12, %v1413_v26  ;;  %vm1276_vm4 = vmor %vm1274_vm3, %vm1275_vm2 }
 0x54c   :  { %v1243_v41 = vsel %vm1240_vm0, %v1242_v34, %v1238_v38  ;;  %v1257_v45 = vsel %vm1256_vm15, %v3183_v12, %v1253_v35  ;;  %v1271_v52 = vsub.f32 1.0, %v1270_v36 }
 0x54d   :  { %v1262_v49 = vsel %vm1259_vm1, %v1261_v18, %v1257_v45  ;;  %v1285_v57 = vmul.f32 %v3187_v37, %v1243_v41  ;;  %v1472_v0 = vpop.f32.mrf.mxu2  ;;  %v1532_v1 = vpop.f32.mrf.mxu3 }
 0x54e   :  { %v1284_v2 = vmul.f32 %v1262_v49, %v3862_v6  ;;  %v1272_v3 = vmul.f32 %v4062_v32, %v1271_v52  ;;  %v1473_v5 = vadd.f32 %v3944_v42, %v1472_v0  ;;  %v1533_v7 = vadd.f32 %v3949_v43, %v1532_v1  ;;  %v1356_v8 = vpop.f32.mrf.mxu0  ;;  %v1415_v9 = vpop.f32.mrf.mxu1 }
 0x54f   :  { %v1357_v11 = vadd.f32 %v3928_v28, %v1356_v8  ;;  %v1416_v12 = vadd.f32 %v3933_v30, %v1415_v9  ;;  %v1280_v6 = vand.u32 2147483648, %v4028_v10 }
 0x550   :  { %v1286_v13 = vadd.f32 %v1285_v57, %v1284_v2  ;;  %1493 = vst.msk [vmem:[#allocation3 + $0x90] sm:$0xff] %vm47_vm12, %v1473_v5  ;;  %v1273_v54 = vadd.f32 %v4062_v32, %v1272_v3 }
 0x551   :  { %1553 = vst.msk [vmem:[#allocation3 + $0xd0] sm:$0xff] %vm47_vm12, %v1533_v7  ;;  %v1281_v62 = vor.u32 1.1754944e-38, %v1280_v6  ;;  %v1578_v6 = vld [vmem:[#allocation3] sm:$0xff] }
 0x552   :  { %3188 = vtanh.f32 %v1286_v13  ;;  %1374 = vst.msk [vmem:[#allocation3 + $0x18] sm:$0xff] %vm47_vm12, %v1357_v11  ;;  %v1277_v39 = vsel %vm1276_vm4, %v4062_v32, %v1273_v54 }
 0x553   :  { %1434 = vst.msk [vmem:[#allocation3 + $0x58] sm:$0xff] %vm47_vm12, %v1416_v12  ;;  %v1282_v23 = vsel %vm1279_vm5, %v1281_v62, %v1277_v39  ;;  %v1600_v39 = vld [vmem:[#allocation3 + $0x40] sm:$0xff] }
 0x555   :  { %v1475_v60 = vpop.f32.mrf.mxu2  ;;  %v1535_v61 = vpop.f32.mrf.mxu3 }
 0x556   :  { %v1476_v63 = vadd.f32 %v3944_v42, %v1475_v60  ;;  %v1536_v19 = vadd.f32 %v3949_v43, %v1535_v61  ;;  %v1359_v20 = vpop.f32.mrf.mxu0  ;;  %v1418_v21 = vpop.f32.mrf.mxu1 }
 0x557   :  { %v1360_v22 = vadd.f32 %v3928_v28, %v1359_v20  ;;  %v1419_v24 = vadd.f32 %v3933_v30, %v1418_v21 }
 0x558   :  { %v3189_v10 = vpop.eup %3188  ;;  %1494 = vst.msk [vmem:[#allocation3 + $0x98] sm:$0xff] %vm47_vm12, %v1476_v63  ;;  %v1644_v63 = vld [vmem:[#allocation3 + $0xc0] sm:$0xff] }
 0x559   :  { %v1288_v25 = vmul.f32 %v3189_v10, %v1282_v23  ;;  %1554 = vst.msk [vmem:[#allocation3 + $0xd8] sm:$0xff] %vm47_vm12, %v1536_v19 }
 0x55a   :  { %1375 = vst.msk [vmem:[#allocation3 + $0x20] sm:$0xff] %vm47_vm12, %v1360_v22 }
 0x55b   :  { %1289 = vst.msk [vmem:[#allocation2 + $0x38] sm:$0xff] %vm47_vm12, %v1288_v25  ;;  %v1622_v25 = vld [vmem:[#allocation3 + $0x80] sm:$0xff] }
 0x55c   :  { %1435 = vst.msk [vmem:[#allocation3 + $0x60] sm:$0xff] %vm47_vm12, %v1419_v24 }
 0x55d   :  { %v1478_v26 = vpop.f32.mrf.mxu2  ;;  %v1538_v27 = vpop.f32.mrf.mxu3 }
 0x55e   :  { %v1479_v31 = vadd.f32 %v3944_v42, %v1478_v26  ;;  %v1539_v32 = vadd.f32 %v3949_v43, %v1538_v27  ;;  %v1362_v33 = vpop.f32.mrf.mxu0  ;;  %v1421_v34 = vpop.f32.mrf.mxu1 }
 0x55f   :  { %v1363_v35 = vadd.f32 %v3928_v28, %v1362_v33  ;;  %v1422_v36 = vadd.f32 %v3933_v30, %v1421_v34 }
 0x560   :  { %1495 = vst.msk [vmem:[#allocation3 + $0xa0] sm:$0xff] %vm47_vm12, %v1479_v31 }
 0x561   :  { %1555 = vst.msk [vmem:[#allocation3 + $0xe0] sm:$0xff] %vm47_vm12, %v1539_v32 }
 0x562   :  { %1376 = vst.msk [vmem:[#allocation3 + $0x28] sm:$0xff] %vm47_vm12, %v1363_v35  ;;  %v1297_v37 = vld [vmem:[#allocation2 + $0x38] sm:$0xff] }
 0x563   :  { %1436 = vst.msk [vmem:[#allocation3 + $0x68] sm:$0xff] %vm47_vm12, %v1422_v36  ;;  %2950 = vmatmul.msk.f32.gmra.mxu0 %vm47_vm12, %v1297_v37  ;;  %2963 = vmatmul.msk.f32.gmra.mxu1 %vm47_vm12, %v1297_v37 }
 0x564   :  { %2976 = vmatmul.msk.f32.gmra.mxu2 %vm47_vm12, %v1297_v37  ;;  %2989 = vmatmul.msk.f32.gmra.mxu3 %vm47_vm12, %v1297_v37 }
 0x565   :  { %v1481_v18 = vpop.f32.mrf.mxu2  ;;  %v1541_v38 = vpop.f32.mrf.mxu3 }
 0x566   :  { %v1482_v41 = vadd.f32 %v3944_v42, %v1481_v18  ;;  %v1542_v45 = vadd.f32 %v3949_v43, %v1541_v38  ;;  %v1365_v52 = vpop.f32.mrf.mxu0  ;;  %v1424_v49 = vpop.f32.mrf.mxu1 }
 0x567   :  { %v1366_v57 = vadd.f32 %v3928_v28, %v1365_v52  ;;  %v1425_v0 = vadd.f32 %v3933_v30, %v1424_v49 }
 0x568   :  { %1496 = vst.msk [vmem:[#allocation3 + $0xa8] sm:$0xff] %vm47_vm12, %v1482_v41 }
 0x569   :  { %1556 = vst.msk [vmem:[#allocation3 + $0xe8] sm:$0xff] %vm47_vm12, %v1542_v45 }
 0x56a   :  { %1377 = vst.msk [vmem:[#allocation3 + $0x30] sm:$0xff] %vm47_vm12, %v1366_v57 }
 0x56b   :  { %1437 = vst.msk [vmem:[#allocation3 + $0x70] sm:$0xff] %vm47_vm12, %v1425_v0  ;;  %1595 = vmatmul.f32.vlgmr.msrb.gmra.mxu0 %v3376_v14  ;;  %1617 = vmatmul.f32.vlgmr.msrb.gmra.mxu1 %v3376_v14 }
 0x56c   :  { %1639 = vmatmul.f32.vlgmr.msrb.gmra.mxu2 %v3376_v14  ;;  %1661 = vmatmul.f32.vlgmr.msrb.gmra.mxu3 %v3376_v14 }
 0x56d   :  { %v1484_v1 = vpop.f32.mrf.mxu2  ;;  %v1544_v2 = vpop.f32.mrf.mxu3  ;;  %1899 = vmatpush.msrb.mxu0 %v3885_v58  ;;  %1921 = vmatpush.msrb.mxu1 %v3890_v59 }
 0x56e   :  { %v1485_v3 = vadd.f32 %v3944_v42, %v1484_v1  ;;  %v1545_v5 = vadd.f32 %v3949_v43, %v1544_v2  ;;  %1943 = vmatpush.msrb.mxu2 %v3956_v46  ;;  %1965 = vmatpush.msrb.mxu3 %v3913_v17 }
 0x56f   :  { %1900 = vmatpush.msrb.mxu0 %v3961_v47  ;;  %1922 = vmatpush.msrb.mxu1 %v3966_v29 }
 0x570   :  { %1497 = vst.msk [vmem:[#allocation3 + $0xb0] sm:$0xff] %vm47_vm12, %v1485_v3  ;;  %1944 = vmatpush.msrb.mxu2 %v3979_v50  ;;  %1966 = vmatpush.msrb.mxu3 %v3974_v48 }
 0x571   :  { %1557 = vst.msk [vmem:[#allocation3 + $0xf0] sm:$0xff] %vm47_vm12, %v1545_v5  ;;  %1901 = vmatpush.msrb.mxu0 %v3984_v51  ;;  %1923 = vmatpush.msrb.mxu1 %v3992_v53 }
 0x572   :  { %1945 = vmatpush.msrb.mxu2 %v4002_v56  ;;  %1967 = vmatpush.msrb.mxu3 %v3997_v55 }
 0x573   :  { %1902 = vmatpush.msrb.mxu0 %v4014_v4  ;;  %1924 = vmatpush.msrb.mxu1 %v4019_v44 }
 0x574   :  { %1946 = vmatpush.msrb.mxu2 %v4077_v40  ;;  %1968 = vmatpush.msrb.mxu3 %v4041_v15 }
 0x5e0   :  { %v1368_v14 = vpop.f32.mrf.mxu0  ;;  %v1427_v7 = vpop.f32.mrf.mxu1 }
 0x5e1   :  { %v1369_v8 = vadd.f32 %v3928_v28, %v1368_v14  ;;  %v1428_v9 = vadd.f32 %v3933_v30, %v1427_v7 }
 0x5e3   :  { %1378 = vst.msk [vmem:[#allocation3 + $0x38] sm:$0xff] %vm47_vm12, %v1369_v8 }
 0x5e4   :  { %1438 = vst.msk [vmem:[#allocation3 + $0x78] sm:$0xff] %vm47_vm12, %v1428_v9 }
 0x5e7   :  { %v1487_v11 = vpop.f32.mrf.mxu2  ;;  %v1547_v12 = vpop.f32.mrf.mxu3 }
 0x5e8   :  { %v1488_v13 = vadd.f32 %v3944_v42, %v1487_v11  ;;  %v1548_v54 = vadd.f32 %v3949_v43, %v1547_v12  ;;  %v1596_v16 = vpop.f32.mrf.mxu0  ;;  %v1618_v60 = vpop.f32.mrf.mxu1 }
 0x5e9   :  { %v1599_v61 = vadd.f32 %v1596_v16, %v1578_v6  ;;  %v1621_v62 = vadd.f32 %v1618_v60, %v1600_v39 }
 0x5ea   :  { %1498 = vst.msk [vmem:[#allocation3 + $0xb8] sm:$0xff] %vm47_vm12, %v1488_v13 }
 0x5eb   :  { %1558 = vst.msk [vmem:[#allocation3 + $0xf8] sm:$0xff] %vm47_vm12, %v1548_v54  ;;  %v3002_v28 = vmul.f32 -1.442695, %v1599_v61  ;;  %v3003_v30 = vmul.f32 -1.442695, %v1621_v62 }
 0x5ed   :  { %3190 = vpow2.f32 %v3002_v28 }
 0x5ee   :  { %3192 = vpow2.f32 %v3003_v30 }
 0x5ef   :  { %v1662_v19 = vpop.f32.mrf.mxu3  ;;  %v1640_v23 = vpop.f32.mrf.mxu2 }
 0x5f0   :  { %v1665_v20 = vadd.f32 %v1662_v19, %v1644_v63  ;;  %v1643_v31 = vadd.f32 %v1640_v23, %v1622_v25  ;;  %v1729_v19 = vld [vmem:[#allocation3 + $0x8] sm:$0xff] }
 0x5f2   :  { %v3004_v42 = vmul.f32 -1.442695, %v1665_v20 }
 0x5f3   :  { %v3191_v21 = vpop.eup %3190 }
 0x5f4   :  { %v3193_v43 = vpop.eup %3192  ;;  %v1669_v22 = vadd.f32 1.0, %v3191_v21  ;;  %3194 = vpow2.f32 %v3004_v42  ;;  %v1754_v42 = vld [vmem:[#allocation3 + $0x48] sm:$0xff] }
 0x5f5   :  { %v1688_v10 = vadd.f32 1.0, %v3193_v43 }
 0x5f6   :  { %3196 = vrcp.f32 %v1669_v22  ;;  %v1681_v37 = vand.u32 2147483648, %v1669_v22  ;;  %v1679_v41 = vand.u32 2147483647, %v1669_v22  ;;  %vm1675_vm8 = vweird.f32 %v1669_v22 }
 0x5f7   :  { %3198 = vrcp.f32 %v1688_v10  ;;  %v1700_v18 = vand.u32 2147483648, %v1688_v10  ;;  %v1698_v52 = vand.u32 2147483647, %v1688_v10  ;;  %vm1694_vm9 = vweird.f32 %v1688_v10 }
 0x5f8   :  { %v1682_v0 = vor.u32 1.1754944e-38, %v1681_v37  ;;  %vm1680_vm11 = vcmp.eq.f32.partialorder %v1679_v41, 8.507059e+37  ;;  %v1776_v37 = vld [vmem:[#allocation3 + $0x88] sm:$0xff] }
 0x5f9   :  { %v1701_v3 = vor.u32 1.1754944e-38, %v1700_v18  ;;  %vm1699_vm14 = vcmp.eq.f32.partialorder %v1698_v52, 8.507059e+37 }
 0x5fa   :  { %v3195_v24 = vpop.eup %3194 }
 0x5fb   :  { %v1708_v26 = vadd.f32 1.0, %v3195_v24  ;;  %v1798_v24 = vld [vmem:[#allocation3 + $0xc8] sm:$0xff] }
 0x5fc   :  { %v3197_v27 = vpop.eup %3196 }
 0x5fd   :  { %v3199_v32 = vpop.eup %3198  ;;  %v1671_v33 = vmul.f32 %v3197_v27, %v1669_v22  ;;  %3200 = vrcp.f32 %v1708_v26  ;;  %vm1676_vm6 = vweird.f32 %v3197_v27  ;;  %v1720_v39 = vand.u32 2147483648, %v1708_v26 }
 0x5fe   :  { %v1690_v34 = vmul.f32 %v3199_v32, %v1688_v10  ;;  %3202 = vtanh.f32 %v1643_v31  ;;  %vm1695_vm7 = vweird.f32 %v3199_v32  ;;  %vm1677_vm10 = vmor %vm1675_vm8, %vm1676_vm6  ;;  %vm1714_vm0 = vweird.f32 %v1708_v26 }
 0x5ff   :  { %v1672_v35 = vsub.f32 1.0, %v1671_v33  ;;  %vm1696_vm13 = vmor %vm1694_vm9, %vm1695_vm7  ;;  %v1718_v60 = vand.u32 2147483647, %v1708_v26  ;;  %v1721_v62 = vor.u32 1.1754944e-38, %v1720_v39 }
 0x600   :  { %v1691_v36 = vsub.f32 1.0, %v1690_v34 }
 0x601   :  { %v1673_v38 = vmul.f32 %v3197_v27, %v1672_v35  ;;  %vm1719_vm2 = vcmp.eq.f32.partialorder %v1718_v60, 8.507059e+37 }
 0x602   :  { %v1692_v45 = vmul.f32 %v3199_v32, %v1691_v36 }
 0x603   :  { %v3201_v49 = vpop.eup %3200  ;;  %v1674_v57 = vadd.f32 %v3197_v27, %v1673_v38 }
 0x604   :  { %v1693_v1 = vadd.f32 %v3199_v32, %v1692_v45  ;;  %v1710_v2 = vmul.f32 %v3201_v49, %v1708_v26  ;;  %v3203_v14 = vpop.eup %3202  ;;  %vm1715_vm15 = vweird.f32 %v3201_v49 }
 0x605   :  { %v1678_v5 = vsel %vm1677_vm10, %v3197_v27, %v1674_v57  ;;  %vm1716_vm1 = vmor %vm1714_vm0, %vm1715_vm15 }
 0x606   :  { %v1683_v7 = vsel %vm1680_vm11, %v1682_v0, %v1678_v5  ;;  %v1697_v8 = vsel %vm1696_vm13, %v3199_v32, %v1693_v1  ;;  %v1711_v9 = vsub.f32 1.0, %v1710_v2 }
 0x607   :  { %v1702_v11 = vsel %vm1699_vm14, %v1701_v3, %v1697_v8  ;;  %v1725_v12 = vmul.f32 %v3203_v14, %v1683_v7 }
 0x608   :  { %v1724_v13 = vmul.f32 0.0, %v1702_v11  ;;  %v1712_v54 = vmul.f32 %v3201_v49, %v1711_v9 }
 0x60a   :  { %v4162_v6 = vadd.f32 %v1725_v12, %v1724_v13  ;;  %v1713_v16 = vadd.f32 %v3201_v49, %v1712_v54 }
 0x60c   :  { %3204 = vtanh.f32 %v4162_v6  ;;  %v1717_v61 = vsel %vm1716_vm1, %v3201_v49, %v1713_v16 }
 0x60d   :  { %v1722_v30 = vsel %vm1719_vm2, %v1721_v62, %v1717_v61 }
 0x612   :  { %v3205_v28 = vpop.eup %3204 }
 0x613   :  { %v1728_v63 = vmul.f32 %v3205_v28, %v1722_v30 }
 0x615   :  { %3005 = vmatmul.msk.f32.vlgmr.msra.gmra.mxu0 %vm47_vm12, %v1728_v63  ;;  %3006 = vmatmul.msk.f32.vlgmr.msra.gmra.mxu1 %vm47_vm12, %v1728_v63 }
 0x616   :  { %3007 = vmatmul.msk.f32.vlgmr.msra.gmra.mxu2 %vm47_vm12, %v1728_v63  ;;  %3008 = vmatmul.msk.f32.vlgmr.msra.gmra.mxu3 %vm47_vm12, %v1728_v63 }
 0x617   :  { %2053 = vmatpush.msra.mxu0 %v3885_v58  ;;  %2075 = vmatpush.msra.mxu1 %v3890_v59 }
 0x618   :  { %2097 = vmatpush.msra.mxu2 %v3956_v46  ;;  %2119 = vmatpush.msra.mxu3 %v3913_v17 }
 0x619   :  { %2054 = vmatpush.msra.mxu0 %v3961_v47  ;;  %2076 = vmatpush.msra.mxu1 %v3966_v29 }
 0x61a   :  { %2098 = vmatpush.msra.mxu2 %v3979_v50  ;;  %2120 = vmatpush.msra.mxu3 %v3974_v48 }
 0x61b   :  { %2055 = vmatpush.msra.mxu0 %v3984_v51  ;;  %2077 = vmatpush.msra.mxu1 %v3992_v53 }
 0x61c   :  { %2099 = vmatpush.msra.mxu2 %v4002_v56  ;;  %2121 = vmatpush.msra.mxu3 %v3997_v55 }
 0x61d   :  { %2056 = vmatpush.msra.mxu0 %v4014_v4  ;;  %2078 = vmatpush.msra.mxu1 %v4019_v44 }
 0x61e   :  { %2100 = vmatpush.msra.mxu2 %v4077_v40  ;;  %2122 = vmatpush.msra.mxu3 %v4041_v15 }
 0x692   :  { %v1750_v20 = vpop.f32.mrf.mxu0  ;;  %v1772_v21 = vpop.f32.mrf.mxu1 }
 0x693   :  { %v1753_v43 = vadd.f32 %v1750_v20, %v1729_v19  ;;  %v1775_v22 = vadd.f32 %v1772_v21, %v1754_v42 }
 0x695   :  { %v3009_v10 = vmul.f32 -1.442695, %v1753_v43  ;;  %v3010_v23 = vmul.f32 -1.442695, %v1775_v22 }
 0x697   :  { %3206 = vpow2.f32 %v3009_v10 }
 0x698   :  { %3208 = vpow2.f32 %v3010_v23 }
 0x699   :  { %v1816_v25 = vpop.f32.mrf.mxu3  ;;  %v1794_v35 = vpop.f32.mrf.mxu2 }
 0x69a   :  { %v1819_v26 = vadd.f32 %v1816_v25, %v1798_v24  ;;  %v1797_v41 = vadd.f32 %v1794_v35, %v1776_v37 }
 0x69c   :  { %v3011_v27 = vmul.f32 -1.442695, %v1819_v26 }
 0x69d   :  { %v3207_v31 = vpop.eup %3206 }
 0x69e   :  { %v3209_v32 = vpop.eup %3208  ;;  %v1823_v33 = vadd.f32 1.0, %v3207_v31  ;;  %3210 = vpow2.f32 %v3011_v27 }
 0x69f   :  { %v1842_v34 = vadd.f32 1.0, %v3209_v32 }
 0x6a0   :  { %3212 = vrcp.f32 %v1823_v33  ;;  %v1835_v1 = vand.u32 2147483648, %v1823_v33  ;;  %v1833_v5 = vand.u32 2147483647, %v1823_v33  ;;  %vm1829_vm5 = vweird.f32 %v1823_v33 }
 0x6a1   :  { %3214 = vrcp.f32 %v1842_v34  ;;  %v1854_v2 = vand.u32 2147483648, %v1842_v34  ;;  %v1852_v7 = vand.u32 2147483647, %v1842_v34  ;;  %vm1848_vm6 = vweird.f32 %v1842_v34 }
 0x6a2   :  { %v1836_v11 = vor.u32 1.1754944e-38, %v1835_v1  ;;  %vm1834_vm9 = vcmp.eq.f32.partialorder %v1833_v5, 8.507059e+37 }
 0x6a3   :  { %v1855_v54 = vor.u32 1.1754944e-38, %v1854_v2  ;;  %vm1853_vm10 = vcmp.eq.f32.partialorder %v1852_v7, 8.507059e+37 }
 0x6a4   :  { %v3211_v36 = vpop.eup %3210 }
 0x6a5   :  { %v1862_v18 = vadd.f32 1.0, %v3211_v36 }
 0x6a6   :  { %v3213_v38 = vpop.eup %3212 }
 0x6a7   :  { %v3215_v45 = vpop.eup %3214  ;;  %v1825_v52 = vmul.f32 %v3213_v38, %v1823_v33  ;;  %3216 = vrcp.f32 %v1862_v18  ;;  %vm1830_vm3 = vweird.f32 %v3213_v38  ;;  %v1874_v21 = vand.u32 2147483648, %v1862_v18  ;;  %v1952_v33 = vld [vmem:[#allocation3 + $0xd0] sm:$0xff] }
 0x6a8   :  { %v1844_v49 = vmul.f32 %v3215_v45, %v1842_v34  ;;  %3218 = vtanh.f32 %v1797_v41  ;;  %vm1849_vm4 = vweird.f32 %v3215_v45  ;;  %vm1831_vm7 = vmor %vm1829_vm5, %vm1830_vm3  ;;  %vm1868_vm13 = vweird.f32 %v1862_v18 }
 0x6a9   :  { %v1826_v57 = vsub.f32 1.0, %v1825_v52  ;;  %vm1850_vm8 = vmor %vm1848_vm6, %vm1849_vm4  ;;  %v1872_v43 = vand.u32 2147483647, %v1862_v18  ;;  %v1875_v10 = vor.u32 1.1754944e-38, %v1874_v21 }
 0x6aa   :  { %v1845_v0 = vsub.f32 1.0, %v1844_v49  ;;  %v1930_v49 = vld [vmem:[#allocation3 + $0x90] sm:$0xff] }
 0x6ab   :  { %v1827_v3 = vmul.f32 %v3213_v38, %v1826_v57  ;;  %vm1873_vm15 = vcmp.eq.f32.partialorder %v1872_v43, 8.507059e+37 }
 0x6ac   :  { %v1846_v14 = vmul.f32 %v3215_v45, %v1845_v0 }
 0x6ad   :  { %v3217_v8 = vpop.eup %3216  ;;  %v1828_v9 = vadd.f32 %v3213_v38, %v1827_v3 }
 0x6ae   :  { %v1847_v12 = vadd.f32 %v3215_v45, %v1846_v14  ;;  %v1864_v13 = vmul.f32 %v3217_v8, %v1862_v18  ;;  %v3219_v39 = vpop.eup %3218  ;;  %vm1869_vm11 = vweird.f32 %v3217_v8 }
 0x6af   :  { %v1832_v16 = vsel %vm1831_vm7, %v3213_v38, %v1828_v9  ;;  %vm1870_vm14 = vmor %vm1868_vm13, %vm1869_vm11 }
 0x6b0   :  { %v1837_v60 = vsel %vm1834_vm9, %v1836_v11, %v1832_v16  ;;  %v1851_v61 = vsel %vm1850_vm8, %v3215_v45, %v1847_v12  ;;  %v1865_v62 = vsub.f32 1.0, %v1864_v13 }
 0x6b1   :  { %v1856_v28 = vsel %vm1853_vm10, %v1855_v54, %v1851_v61  ;;  %v1879_v30 = vmul.f32 %v3219_v39, %v1837_v60 }
 0x6b2   :  { %v1878_v63 = vmul.f32 %v1856_v28, %v4162_v6  ;;  %v1866_v19 = vmul.f32 %v3217_v8, %v1865_v62 }
 0x6b4   :  { %v4186_v20 = vadd.f32 %v1879_v30, %v1878_v63  ;;  %v1867_v42 = vadd.f32 %v3217_v8, %v1866_v19 }
 0x6b6   :  { %3220 = vtanh.f32 %v4186_v20  ;;  %v1871_v22 = vsel %vm1870_vm14, %v3217_v8, %v1867_v42 }
 0x6b7   :  { %v1876_v24 = vsel %vm1873_vm15, %v1875_v10, %v1871_v22 }
 0x6bc   :  { %v3221_v23 = vpop.eup %3220 }
 0x6bd   :  { %v1882_v25 = vmul.f32 %v3221_v23, %v1876_v24 }
 0x6bf   :  { %3012 = vmatmul.msk.f32.vlgmr.msrb.gmra.mxu0 %vm47_vm12, %v1882_v25  ;;  %3013 = vmatmul.msk.f32.vlgmr.msrb.gmra.mxu1 %vm47_vm12, %v1882_v25 }
 0x6c0   :  { %3014 = vmatmul.msk.f32.vlgmr.msrb.gmra.mxu2 %vm47_vm12, %v1882_v25  ;;  %3015 = vmatmul.msk.f32.vlgmr.msrb.gmra.mxu3 %vm47_vm12, %v1882_v25 }
 0x6c1   :  { %2207 = vmatpush.msrb.mxu0 %v3885_v58  ;;  %2229 = vmatpush.msrb.mxu1 %v3890_v59  ;;  %v1883_v58 = vld [vmem:[#allocation3 + $0x10] sm:$0xff] }
 0x6c2   :  { %2251 = vmatpush.msrb.mxu2 %v3956_v46  ;;  %2273 = vmatpush.msrb.mxu3 %v3913_v17  ;;  %v1908_v17 = vld [vmem:[#allocation3 + $0x50] sm:$0xff] }
 0x6c3   :  { %2208 = vmatpush.msrb.mxu0 %v3961_v47  ;;  %2230 = vmatpush.msrb.mxu1 %v3966_v29 }
 0x6c4   :  { %2252 = vmatpush.msrb.mxu2 %v3979_v50  ;;  %2274 = vmatpush.msrb.mxu3 %v3974_v48 }
 0x6c5   :  { %2209 = vmatpush.msrb.mxu0 %v3984_v51  ;;  %2231 = vmatpush.msrb.mxu1 %v3992_v53 }
 0x6c6   :  { %2253 = vmatpush.msrb.mxu2 %v4002_v56  ;;  %2275 = vmatpush.msrb.mxu3 %v3997_v55 }
 0x6c7   :  { %2210 = vmatpush.msrb.mxu0 %v4014_v4  ;;  %2232 = vmatpush.msrb.mxu1 %v4019_v44 }
 0x6c8   :  { %2254 = vmatpush.msrb.mxu2 %v4077_v40  ;;  %2276 = vmatpush.msrb.mxu3 %v4041_v15 }
 0x73c   :  { %v1904_v59 = vpop.f32.mrf.mxu0  ;;  %v1926_v6 = vpop.f32.mrf.mxu1 }
 0x73d   :  { %v1907_v26 = vadd.f32 %v1904_v59, %v1883_v58  ;;  %v1929_v27 = vadd.f32 %v1926_v6, %v1908_v17 }
 0x73f   :  { %v3016_v31 = vmul.f32 -1.442695, %v1907_v26  ;;  %v3017_v32 = vmul.f32 -1.442695, %v1929_v27 }
 0x741   :  { %3222 = vpow2.f32 %v3016_v31 }
 0x742   :  { %3224 = vpow2.f32 %v3017_v32  ;;  %v4226_v32 = vld [vmem:[%s4397_s3 + $0x38] sm:$0xff] }
 0x743   :  { %v1970_v34 = vpop.f32.mrf.mxu3  ;;  %v1948_v45 = vpop.f32.mrf.mxu2 }
 0x744   :  { %v1973_v35 = vadd.f32 %v1970_v34, %v1952_v33  ;;  %v1951_v1 = vadd.f32 %v1948_v45, %v1930_v49  ;;  %v4233_v33 = vld [vmem:[%s4397_s3 + $0x78] sm:$0xff] }
 0x746   :  { %v3018_v36 = vmul.f32 -1.442695, %v1973_v35 }
 0x747   :  { %v3223_v37 = vpop.eup %3222 }
 0x748   :  { %v3225_v18 = vpop.eup %3224  ;;  %v1977_v38 = vadd.f32 1.0, %v3223_v37  ;;  %3226 = vpow2.f32 %v3018_v36 }
 0x749   :  { %v1996_v41 = vadd.f32 1.0, %v3225_v18 }
 0x74a   :  { %3228 = vrcp.f32 %v1977_v38  ;;  %v1989_v8 = vand.u32 2147483648, %v1977_v38  ;;  %v1987_v12 = vand.u32 2147483647, %v1977_v38  ;;  %vm1983_vm2 = vweird.f32 %v1977_v38 }
 0x74b   :  { %3230 = vrcp.f32 %v1996_v41  ;;  %v2008_v9 = vand.u32 2147483648, %v1996_v41  ;;  %v2006_v54 = vand.u32 2147483647, %v1996_v41  ;;  %vm2002_vm3 = vweird.f32 %v1996_v41 }
 0x74c   :  { %v1990_v60 = vor.u32 1.1754944e-38, %v1989_v8  ;;  %vm1988_vm6 = vcmp.eq.f32.partialorder %v1987_v12, 8.507059e+37 }
 0x74d   :  { %v2009_v28 = vor.u32 1.1754944e-38, %v2008_v9  ;;  %vm2007_vm7 = vcmp.eq.f32.partialorder %v2006_v54, 8.507059e+37 }
 0x74e   :  { %v3227_v52 = vpop.eup %3226 }
 0x74f   :  { %v2016_v57 = vadd.f32 1.0, %v3227_v52 }
 0x750   :  { %v3229_v0 = vpop.eup %3228 }
 0x751   :  { %v3231_v2 = vpop.eup %3230  ;;  %v1979_v3 = vmul.f32 %v3229_v0, %v1977_v38  ;;  %3232 = vrcp.f32 %v2016_v57  ;;  %vm1984_vm0 = vweird.f32 %v3229_v0  ;;  %v2028_v58 = vand.u32 2147483648, %v2016_v57 }
 0x752   :  { %v1998_v5 = vmul.f32 %v3231_v2, %v1996_v41  ;;  %3234 = vtanh.f32 %v1951_v1  ;;  %vm2003_vm1 = vweird.f32 %v3231_v2  ;;  %vm1985_vm4 = vmor %vm1983_vm2, %vm1984_vm0  ;;  %vm2022_vm9 = vweird.f32 %v2016_v57  ;;  %v2084_v41 = vld [vmem:[#allocation3 + $0x98] sm:$0xff] }
 0x753   :  { %v1980_v14 = vsub.f32 1.0, %v1979_v3  ;;  %vm2004_vm5 = vmor %vm2002_vm3, %vm2003_vm1  ;;  %v2026_v59 = vand.u32 2147483647, %v2016_v57  ;;  %v2029_v6 = vor.u32 1.1754944e-38, %v2028_v58 }
 0x754   :  { %v1999_v7 = vsub.f32 1.0, %v1998_v5 }
 0x755   :  { %v1981_v11 = vmul.f32 %v3229_v0, %v1980_v14  ;;  %vm2027_vm11 = vcmp.eq.f32.partialorder %v2026_v59, 8.507059e+37 }
 0x756   :  { %v2000_v13 = vmul.f32 %v3231_v2, %v1999_v7 }
 0x757   :  { %v3233_v16 = vpop.eup %3232  ;;  %v1982_v39 = vadd.f32 %v3229_v0, %v1981_v11 }
 0x758   :  { %v2001_v61 = vadd.f32 %v3231_v2, %v2000_v13  ;;  %v2018_v62 = vmul.f32 %v3233_v16, %v2016_v57  ;;  %v3235_v63 = vpop.eup %3234  ;;  %vm2023_vm8 = vweird.f32 %v3233_v16 }
 0x759   :  { %v1986_v30 = vsel %vm1985_vm4, %v3229_v0, %v1982_v39  ;;  %vm2024_vm10 = vmor %vm2022_vm9, %vm2023_vm8 }
 0x75a   :  { %v1991_v19 = vsel %vm1988_vm6, %v1990_v60, %v1986_v30  ;;  %v2005_v42 = vsel %vm2004_vm5, %v3231_v2, %v2001_v61  ;;  %v2019_v21 = vsub.f32 1.0, %v2018_v62 }
 0x75b   :  { %v2010_v43 = vsel %vm2007_vm7, %v2009_v28, %v2005_v42  ;;  %v2033_v22 = vmul.f32 %v3235_v63, %v1991_v19 }
 0x75c   :  { %v2032_v10 = vmul.f32 %v2010_v43, %v4186_v20  ;;  %v2020_v23 = vmul.f32 %v3233_v16, %v2019_v21  ;;  %v4220_v20 = vld [vmem:[%s4397_s3 + $0x18] sm:$0xff] }
 0x75e   :  { %v4210_v24 = vadd.f32 %v2033_v22, %v2032_v10  ;;  %v2021_v25 = vadd.f32 %v3233_v16, %v2020_v23 }
 0x760   :  { %3236 = vtanh.f32 %v4210_v24  ;;  %v2025_v17 = vsel %vm2024_vm10, %v3233_v16, %v2021_v25 }
 0x761   :  { %v2030_v27 = vsel %vm2027_vm11, %v2029_v6, %v2025_v17 }
 0x766   :  { %v3237_v26 = vpop.eup %3236 }
 0x767   :  { %v2036_v31 = vmul.f32 %v3237_v26, %v2030_v27  ;;  %v4268_v27 = vld [vmem:[%s4397_s3 + $0x10] sm:$0xff] }
 0x769   :  { %3019 = vmatmul.msk.f32.vlgmr.msra.gmra.mxu0 %vm47_vm12, %v2036_v31  ;;  %3020 = vmatmul.msk.f32.vlgmr.msra.gmra.mxu1 %vm47_vm12, %v2036_v31 }
 0x76a   :  { %3021 = vmatmul.msk.f32.vlgmr.msra.gmra.mxu2 %vm47_vm12, %v2036_v31  ;;  %3022 = vmatmul.msk.f32.vlgmr.msra.gmra.mxu3 %vm47_vm12, %v2036_v31  ;;  %v4274_v31 = vld [vmem:[%s4397_s3 + $0x30] sm:$0xff] }
 0x76b   :  { %2361 = vmatpush.msra.mxu0 %v4220_v20  ;;  %2383 = vmatpush.msra.mxu1 %v4226_v32 }
 0x76c   :  { %2405 = vmatpush.msra.mxu2 %v3956_v46  ;;  %2427 = vmatpush.msra.mxu3 %v4233_v33  ;;  %v2037_v46 = vld [vmem:[#allocation3 + $0x18] sm:$0xff] }
 0x76d   :  { %2362 = vmatpush.msra.mxu0 %v3961_v47  ;;  %2384 = vmatpush.msra.mxu1 %v3966_v29  ;;  %v2062_v29 = vld [vmem:[#allocation3 + $0x58] sm:$0xff] }
 0x76e   :  { %2406 = vmatpush.msra.mxu2 %v3979_v50  ;;  %2428 = vmatpush.msra.mxu3 %v3974_v48 }
 0x76f   :  { %2363 = vmatpush.msra.mxu0 %v3984_v51  ;;  %2385 = vmatpush.msra.mxu1 %v3992_v53 }
 0x770   :  { %2407 = vmatpush.msra.mxu2 %v4002_v56  ;;  %2429 = vmatpush.msra.mxu3 %v3997_v55  ;;  %v2106_v56 = vld [vmem:[#allocation3 + $0xd8] sm:$0xff] }
 0x771   :  { %2364 = vmatpush.msra.mxu0 %v4014_v4  ;;  %2386 = vmatpush.msra.mxu1 %v4019_v44 }
 0x772   :  { %2408 = vmatpush.msra.mxu2 %v4077_v40  ;;  %2430 = vmatpush.msra.mxu3 %v4041_v15 }
 0x7e6   :  { %v2058_v47 = vpop.f32.mrf.mxu0  ;;  %v2080_v48 = vpop.f32.mrf.mxu1 }
 0x7e7   :  { %v2061_v50 = vadd.f32 %v2058_v47, %v2037_v46  ;;  %v2083_v51 = vadd.f32 %v2080_v48, %v2062_v29  ;;  %v4280_v46 = vld [vmem:[%s4397_s3 + $0x50] sm:$0xff]  ;;  %v4292_v29 = vld [vmem:[%s4397_s3 + $0x8] sm:$0xff] }
 0x7e8   :  { %v4286_v47 = vld [vmem:[%s4397_s3 + $0x70] sm:$0xff]  ;;  %v4298_v48 = vld [vmem:[%s4397_s3 + $0x28] sm:$0xff] }
 0x7e9   :  { %v3023_v34 = vmul.f32 -1.442695, %v2061_v50  ;;  %v3024_v53 = vmul.f32 -1.442695, %v2083_v51  ;;  %v4304_v50 = vld [vmem:[%s4397_s3 + $0x48] sm:$0xff] }
 0x7ea   :  { %v4310_v51 = vld [vmem:[%s4397_s3 + $0x68] sm:$0xff] }
 0x7eb   :  { %3238 = vpow2.f32 %v3023_v34  ;;  %v4316_v34 = vld [vmem:[%s4397_s3] sm:$0xff] }
 0x7ec   :  { %3240 = vpow2.f32 %v3024_v53  ;;  %v4322_v53 = vld [vmem:[%s4397_s3 + $0x20] sm:$0xff] }
 0x7ed   :  { %v2124_v55 = vpop.f32.mrf.mxu3  ;;  %v2102_v15 = vpop.f32.mrf.mxu2 }
 0x7ee   :  { %v2127_v35 = vadd.f32 %v2124_v55, %v2106_v56  ;;  %v2105_v49 = vadd.f32 %v2102_v15, %v2084_v41  ;;  %v4329_v56 = vld [vmem:[%s4397_s3 + $0x60] sm:$0xff] }
 0x7ef   :  { %v2191_v55 = vld [vmem:[#allocation3 + $0x20] sm:$0xff] }
 0x7f0   :  { %v3025_v4 = vmul.f32 -1.442695, %v2127_v35 }
 0x7f1   :  { %v3239_v36 = vpop.eup %3238 }
 0x7f2   :  { %v3241_v44 = vpop.eup %3240  ;;  %v2131_v37 = vadd.f32 1.0, %v3239_v36  ;;  %3242 = vpow2.f32 %v3025_v4  ;;  %v2216_v4 = vld [vmem:[#allocation3 + $0x60] sm:$0xff] }
 0x7f3   :  { %v2150_v18 = vadd.f32 1.0, %v3241_v44 }
 0x7f4   :  { %3244 = vrcp.f32 %v2131_v37  ;;  %v2143_v5 = vand.u32 2147483648, %v2131_v37  ;;  %v2141_v8 = vand.u32 2147483647, %v2131_v37  ;;  %vm2137_vm15 = vweird.f32 %v2131_v37 }
 0x7f5   :  { %3246 = vrcp.f32 %v2150_v18  ;;  %v2162_v14 = vand.u32 2147483648, %v2150_v18  ;;  %v2160_v11 = vand.u32 2147483647, %v2150_v18  ;;  %vm2156_vm0 = vweird.f32 %v2150_v18 }
 0x7f6   :  { %v2144_v54 = vor.u32 1.1754944e-38, %v2143_v5  ;;  %vm2142_vm3 = vcmp.eq.f32.partialorder %v2141_v8, 8.507059e+37 }
 0x7f7   :  { %v2163_v60 = vor.u32 1.1754944e-38, %v2162_v14  ;;  %vm2161_vm4 = vcmp.eq.f32.partialorder %v2160_v11, 8.507059e+37 }
 0x7f8   :  { %v3243_v38 = vpop.eup %3242 }
 0x7f9   :  { %v2170_v45 = vadd.f32 1.0, %v3243_v38  ;;  %v2260_v38 = vld [vmem:[#allocation3 + $0xe0] sm:$0xff] }
 0x7fa   :  { %v3245_v52 = vpop.eup %3244 }
 0x7fb   :  { %v3247_v57 = vpop.eup %3246  ;;  %v2133_v0 = vmul.f32 %v3245_v52, %v2131_v37  ;;  %3248 = vrcp.f32 %v2170_v45  ;;  %vm2138_vm13 = vweird.f32 %v3245_v52  ;;  %v2182_v23 = vand.u32 2147483648, %v2170_v45 }
 0x7fc   :  { %v2152_v1 = vmul.f32 %v3247_v57, %v2150_v18  ;;  %3250 = vtanh.f32 %v2105_v49  ;;  %vm2157_vm14 = vweird.f32 %v3247_v57  ;;  %vm2139_vm1 = vmor %vm2137_vm15, %vm2138_vm13  ;;  %vm2176_vm6 = vweird.f32 %v2170_v45 }
 0x7fd   :  { %v2134_v2 = vsub.f32 1.0, %v2133_v0  ;;  %vm2158_vm2 = vmor %vm2156_vm0, %vm2157_vm14  ;;  %v2180_v25 = vand.u32 2147483647, %v2170_v45  ;;  %v2183_v59 = vor.u32 1.1754944e-38, %v2182_v23 }
 0x7fe   :  { %v2153_v3 = vsub.f32 1.0, %v2152_v1 }
 0x7ff   :  { %v2135_v7 = vmul.f32 %v3245_v52, %v2134_v2  ;;  %vm2181_vm8 = vcmp.eq.f32.partialorder %v2180_v25, 8.507059e+37 }
 0x800   :  { %v2154_v9 = vmul.f32 %v3247_v57, %v2153_v3  ;;  %v2238_v3 = vld [vmem:[#allocation3 + $0xa0] sm:$0xff] }
 0x801   :  { %v3249_v12 = vpop.eup %3248  ;;  %v2136_v13 = vadd.f32 %v3245_v52, %v2135_v7 }
 0x802   :  { %v2155_v16 = vadd.f32 %v3247_v57, %v2154_v9  ;;  %v2172_v39 = vmul.f32 %v3249_v12, %v2170_v45  ;;  %v3251_v62 = vpop.eup %3250  ;;  %vm2177_vm5 = vweird.f32 %v3249_v12 }
 0x803   :  { %v2140_v61 = vsel %vm2139_vm1, %v3245_v52, %v2136_v13  ;;  %vm2178_vm7 = vmor %vm2176_vm6, %vm2177_vm5 }
 0x804   :  { %v2145_v28 = vsel %vm2142_vm3, %v2144_v54, %v2140_v61  ;;  %v2159_v30 = vsel %vm2158_vm2, %v3247_v57, %v2155_v16  ;;  %v2173_v63 = vsub.f32 1.0, %v2172_v39 }
 0x805   :  { %v2164_v19 = vsel %vm2161_vm4, %v2163_v60, %v2159_v30  ;;  %v2187_v42 = vmul.f32 %v3251_v62, %v2145_v28 }
 0x806   :  { %v2186_v21 = vmul.f32 %v2164_v19, %v4210_v24  ;;  %v2174_v43 = vmul.f32 %v3249_v12, %v2173_v63  ;;  %v4261_v24 = vld [vmem:[%s4397_s3 + $0x58] sm:$0xff] }
 0x808   :  { %v4249_v22 = vadd.f32 %v2187_v42, %v2186_v21  ;;  %v2175_v10 = vadd.f32 %v3249_v12, %v2174_v43 }
 0x80a   :  { %3252 = vtanh.f32 %v4249_v22  ;;  %v2179_v58 = vsel %vm2178_vm7, %v3249_v12, %v2175_v10 }
 0x80b   :  { %v2184_v6 = vsel %vm2181_vm8, %v2183_v59, %v2179_v58 }
 0x810   :  { %v3253_v17 = vpop.eup %3252 }
 0x811   :  { %v2190_v26 = vmul.f32 %v3253_v17, %v2184_v6 }
 0x813   :  { %3026 = vmatmul.msk.f32.vlgmr.msrb.gmra.mxu0 %vm47_vm12, %v2190_v26  ;;  %3027 = vmatmul.msk.f32.vlgmr.msrb.gmra.mxu1 %vm47_vm12, %v2190_v26 }
 0x814   :  { %3028 = vmatmul.msk.f32.vlgmr.msrb.gmra.mxu2 %vm47_vm12, %v2190_v26  ;;  %3029 = vmatmul.msk.f32.vlgmr.msrb.gmra.mxu3 %vm47_vm12, %v2190_v26 }
 0x815   :  { %2515 = vmatpush.msrb.mxu0 %v4220_v20  ;;  %2537 = vmatpush.msrb.mxu1 %v4226_v32 }
 0x816   :  { %2559 = vmatpush.msrb.mxu2 %v4261_v24  ;;  %2581 = vmatpush.msrb.mxu3 %v4233_v33 }
 0x817   :  { %2516 = vmatpush.msrb.mxu0 %v4268_v27  ;;  %2538 = vmatpush.msrb.mxu1 %v4274_v31 }
 0x818   :  { %2560 = vmatpush.msrb.mxu2 %v4280_v46  ;;  %2582 = vmatpush.msrb.mxu3 %v4286_v47 }
 0x819   :  { %2517 = vmatpush.msrb.mxu0 %v4292_v29  ;;  %2539 = vmatpush.msrb.mxu1 %v4298_v48 }
 0x81a   :  { %2561 = vmatpush.msrb.mxu2 %v4304_v50  ;;  %2583 = vmatpush.msrb.mxu3 %v4310_v51 }
 0x81b   :  { %2518 = vmatpush.msrb.mxu0 %v4316_v34  ;;  %2540 = vmatpush.msrb.mxu1 %v4322_v53 }
 0x81c   :  { %2562 = vmatpush.msrb.mxu2 %v4077_v40  ;;  %2584 = vmatpush.msrb.mxu3 %v4329_v56 }
 0x890   :  { %v2212_v35 = vpop.f32.mrf.mxu0  ;;  %v2234_v36 = vpop.f32.mrf.mxu1 }
 0x891   :  { %v2215_v44 = vadd.f32 %v2212_v35, %v2191_v55  ;;  %v2237_v37 = vadd.f32 %v2234_v36, %v2216_v4 }
 0x893   :  { %v3030_v18 = vmul.f32 -1.442695, %v2215_v44  ;;  %v3031_v15 = vmul.f32 -1.442695, %v2237_v37 }
 0x895   :  { %3254 = vpow2.f32 %v3030_v18 }
 0x896   :  { %3256 = vpow2.f32 %v3031_v15 }
 0x897   :  { %v2278_v41 = vpop.f32.mrf.mxu3  ;;  %v2256_v1 = vpop.f32.mrf.mxu2 }
 0x898   :  { %v2281_v40 = vadd.f32 %v2278_v41, %v2260_v38  ;;  %v2259_v7 = vadd.f32 %v2256_v1, %v2238_v3 }
 0x89a   :  { %v3032_v45 = vmul.f32 -1.442695, %v2281_v40 }
 0x89b   :  { %v3255_v52 = vpop.eup %3254 }
 0x89c   :  { %v3257_v49 = vpop.eup %3256  ;;  %v2285_v57 = vadd.f32 1.0, %v3255_v52  ;;  %3258 = vpow2.f32 %v3032_v45  ;;  %v2392_v52 = vld [vmem:[#allocation3 + $0xa8] sm:$0xff] }
 0x89d   :  { %v2304_v0 = vadd.f32 1.0, %v3257_v49 }
 0x89e   :  { %3260 = vrcp.f32 %v2285_v57  ;;  %v2297_v54 = vand.u32 2147483648, %v2285_v57  ;;  %v2295_v60 = vand.u32 2147483647, %v2285_v57  ;;  %vm2291_vm11 = vweird.f32 %v2285_v57 }
 0x89f   :  { %3262 = vrcp.f32 %v2304_v0  ;;  %v2316_v16 = vand.u32 2147483648, %v2304_v0  ;;  %v2314_v62 = vand.u32 2147483647, %v2304_v0  ;;  %vm2310_vm13 = vweird.f32 %v2304_v0 }
 0x8a0   :  { %v2298_v63 = vor.u32 1.1754944e-38, %v2297_v54  ;;  %vm2296_vm0 = vcmp.eq.f32.partialorder %v2295_v60, 8.507059e+37 }
 0x8a1   :  { %v2317_v21 = vor.u32 1.1754944e-38, %v2316_v16  ;;  %vm2315_vm1 = vcmp.eq.f32.partialorder %v2314_v62, 8.507059e+37 }
 0x8a2   :  { %v3259_v2 = vpop.eup %3258 }
 0x8a3   :  { %v2324_v5 = vadd.f32 1.0, %v3259_v2 }
 0x8a4   :  { %v3261_v14 = vpop.eup %3260 }
 0x8a5   :  { %v3263_v8 = vpop.eup %3262  ;;  %v2287_v9 = vmul.f32 %v3261_v14, %v2285_v57  ;;  %3264 = vrcp.f32 %v2324_v5  ;;  %vm2292_vm9 = vweird.f32 %v3261_v14  ;;  %v2336_v4 = vand.u32 2147483648, %v2324_v5 }
 0x8a6   :  { %v2306_v11 = vmul.f32 %v3263_v8, %v2304_v0  ;;  %3266 = vtanh.f32 %v2259_v7  ;;  %vm2311_vm10 = vweird.f32 %v3263_v8  ;;  %vm2293_vm14 = vmor %vm2291_vm11, %vm2292_vm9  ;;  %vm2330_vm3 = vweird.f32 %v2324_v5 }
 0x8a7   :  { %v2288_v12 = vsub.f32 1.0, %v2287_v9  ;;  %vm2312_vm15 = vmor %vm2310_vm13, %vm2311_vm10  ;;  %v2334_v36 = vand.u32 2147483647, %v2324_v5  ;;  %v2337_v37 = vor.u32 1.1754944e-38, %v2336_v4 }
 0x8a8   :  { %v2307_v13 = vsub.f32 1.0, %v2306_v11 }
 0x8a9   :  { %v2289_v39 = vmul.f32 %v3261_v14, %v2288_v12  ;;  %vm2335_vm5 = vcmp.eq.f32.partialorder %v2334_v36, 8.507059e+37 }
 0x8aa   :  { %v2308_v61 = vmul.f32 %v3263_v8, %v2307_v13 }
 0x8ab   :  { %v3265_v28 = vpop.eup %3264  ;;  %v2290_v30 = vadd.f32 %v3261_v14, %v2289_v39 }
 0x8ac   :  { %v2309_v19 = vadd.f32 %v3263_v8, %v2308_v61  ;;  %v2326_v42 = vmul.f32 %v3265_v28, %v2324_v5  ;;  %v3267_v10 = vpop.eup %3266  ;;  %vm2331_vm2 = vweird.f32 %v3265_v28 }
 0x8ad   :  { %v2294_v43 = vsel %vm2293_vm14, %v3261_v14, %v2290_v30  ;;  %vm2332_vm4 = vmor %vm2330_vm3, %vm2331_vm2 }
 0x8ae   :  { %v2299_v23 = vsel %vm2296_vm0, %v2298_v63, %v2294_v43  ;;  %v2313_v25 = vsel %vm2312_vm15, %v3263_v8, %v2309_v19  ;;  %v2327_v58 = vsub.f32 1.0, %v2326_v42 }
 0x8af   :  { %v2318_v59 = vsel %vm2315_vm1, %v2317_v21, %v2313_v25  ;;  %v2341_v17 = vmul.f32 %v3267_v10, %v2299_v23 }
 0x8b0   :  { %v2340_v6 = vmul.f32 %v2318_v59, %v4249_v22  ;;  %v2328_v26 = vmul.f32 %v3265_v28, %v2327_v58  ;;  %v2370_v22 = vld [vmem:[#allocation3 + $0x68] sm:$0xff] }
 0x8b2   :  { %v4333_v55 = vadd.f32 %v2341_v17, %v2340_v6  ;;  %v2329_v35 = vadd.f32 %v3265_v28, %v2328_v26 }
 0x8b4   :  { %3268 = vtanh.f32 %v4333_v55  ;;  %v2333_v44 = vsel %vm2332_vm4, %v3265_v28, %v2329_v35 }
 0x8b5   :  { %v2338_v15 = vsel %vm2335_vm5, %v2337_v37, %v2333_v44  ;;  %v2524_v37 = vld [vmem:[#allocation3 + $0x70] sm:$0xff] }
 0x8ba   :  { %v3269_v18 = vpop.eup %3268 }
 0x8bb   :  { %v2344_v38 = vmul.f32 %v3269_v18, %v2338_v15 }
 0x8bd   :  { %3033 = vmatmul.msk.f32.vlgmr.msra.gmra.mxu0 %vm47_vm12, %v2344_v38  ;;  %3034 = vmatmul.msk.f32.vlgmr.msra.gmra.mxu1 %vm47_vm12, %v2344_v38 }
 0x8be   :  { %3035 = vmatmul.msk.f32.vlgmr.msra.gmra.mxu2 %vm47_vm12, %v2344_v38  ;;  %3036 = vmatmul.msk.f32.vlgmr.msra.gmra.mxu3 %vm47_vm12, %v2344_v38 }
 0x8bf   :  { %2669 = vmatpush.msra.mxu0 %v4220_v20  ;;  %2691 = vmatpush.msra.mxu1 %v4226_v32  ;;  %v3349_v20 = vld [vmem:[%s4397_s3 + $0x40] sm:$0xff]  ;;  %v2345_v32 = vld [vmem:[#allocation3 + $0x28] sm:$0xff] }
 0x8c0   :  { %2713 = vmatpush.msra.mxu2 %v4261_v24  ;;  %2735 = vmatpush.msra.mxu3 %v4233_v33 }
 0x8c1   :  { %2670 = vmatpush.msra.mxu0 %v4268_v27  ;;  %2692 = vmatpush.msra.mxu1 %v4274_v31 }
 0x8c2   :  { %2714 = vmatpush.msra.mxu2 %v4280_v46  ;;  %2736 = vmatpush.msra.mxu3 %v4286_v47 }
 0x8c3   :  { %2671 = vmatpush.msra.mxu0 %v4292_v29  ;;  %2693 = vmatpush.msra.mxu1 %v4298_v48  ;;  %v2414_v29 = vld [vmem:[#allocation3 + $0xe8] sm:$0xff] }
 0x8c4   :  { %2715 = vmatpush.msra.mxu2 %v4304_v50  ;;  %2737 = vmatpush.msra.mxu3 %v4310_v51 }
 0x8c5   :  { %2672 = vmatpush.msra.mxu0 %v4316_v34  ;;  %2694 = vmatpush.msra.mxu1 %v4322_v53 }
 0x8c6   :  { %2716 = vmatpush.msra.mxu2 %v3349_v20  ;;  %2738 = vmatpush.msra.mxu3 %v4329_v56 }
 0x93a   :  { %v2366_v33 = vpop.f32.mrf.mxu0  ;;  %v2388_v24 = vpop.f32.mrf.mxu1 }
 0x93b   :  { %v2369_v27 = vadd.f32 %v2366_v33, %v2345_v32  ;;  %v2391_v31 = vadd.f32 %v2388_v24, %v2370_v22  ;;  %v2568_v33 = vld [vmem:[#allocation3 + $0xf0] sm:$0xff] }
 0x93d   :  { %v3037_v46 = vmul.f32 -1.442695, %v2369_v27  ;;  %v3038_v47 = vmul.f32 -1.442695, %v2391_v31 }
 0x93f   :  { %3270 = vpow2.f32 %v3037_v46 }
 0x940   :  { %3272 = vpow2.f32 %v3038_v47 }
 0x941   :  { %v2432_v48 = vpop.f32.mrf.mxu3  ;;  %v2410_v56 = vpop.f32.mrf.mxu2 }
 0x942   :  { %v2435_v50 = vadd.f32 %v2432_v48, %v2414_v29  ;;  %v2413_v0 = vadd.f32 %v2410_v56, %v2392_v52 }
 0x944   :  { %v3039_v51 = vmul.f32 -1.442695, %v2435_v50 }
 0x945   :  { %v3271_v34 = vpop.eup %3270 }
 0x946   :  { %v3273_v53 = vpop.eup %3272  ;;  %v2439_v41 = vadd.f32 1.0, %v3271_v34  ;;  %3274 = vpow2.f32 %v3039_v51  ;;  %v2546_v51 = vld [vmem:[#allocation3 + $0xb0] sm:$0xff] }
 0x947   :  { %v2458_v40 = vadd.f32 1.0, %v3273_v53 }
 0x948   :  { %3276 = vrcp.f32 %v2439_v41  ;;  %v2451_v7 = vand.u32 2147483648, %v2439_v41  ;;  %v2449_v11 = vand.u32 2147483647, %v2439_v41  ;;  %vm2445_vm8 = vweird.f32 %v2439_v41 }
 0x949   :  { %3278 = vrcp.f32 %v2458_v40  ;;  %v2470_v8 = vand.u32 2147483648, %v2458_v40  ;;  %v2468_v13 = vand.u32 2147483647, %v2458_v40  ;;  %vm2464_vm9 = vweird.f32 %v2458_v40 }
 0x94a   :  { %v2452_v39 = vor.u32 1.1754944e-38, %v2451_v7  ;;  %vm2450_vm13 = vcmp.eq.f32.partialorder %v2449_v11, 8.507059e+37 }
 0x94b   :  { %v2471_v62 = vor.u32 1.1754944e-38, %v2470_v8  ;;  %vm2469_vm14 = vcmp.eq.f32.partialorder %v2468_v13, 8.507059e+37 }
 0x94c   :  { %v3275_v45 = vpop.eup %3274 }
 0x94d   :  { %v2478_v49 = vadd.f32 1.0, %v3275_v45 }
 0x94e   :  { %v3277_v57 = vpop.eup %3276 }
 0x94f   :  { %v3279_v1 = vpop.eup %3278  ;;  %v2441_v2 = vmul.f32 %v3277_v57, %v2439_v41  ;;  %3280 = vrcp.f32 %v2478_v49  ;;  %vm2446_vm6 = vweird.f32 %v3277_v57  ;;  %v2490_v59 = vand.u32 2147483648, %v2478_v49 }
 0x950   :  { %v2460_v3 = vmul.f32 %v3279_v1, %v2458_v40  ;;  %3282 = vtanh.f32 %v2413_v0  ;;  %vm2465_vm7 = vweird.f32 %v3279_v1  ;;  %vm2447_vm10 = vmor %vm2445_vm8, %vm2446_vm6  ;;  %vm2484_vm0 = vweird.f32 %v2478_v49 }
 0x951   :  { %v2442_v5 = vsub.f32 1.0, %v2441_v2  ;;  %vm2466_vm11 = vmor %vm2464_vm9, %vm2465_vm7  ;;  %v2488_v17 = vand.u32 2147483647, %v2478_v49  ;;  %v2491_v26 = vor.u32 1.1754944e-38, %v2490_v59 }
 0x952   :  { %v2461_v14 = vsub.f32 1.0, %v2460_v3 }
 0x953   :  { %v2443_v9 = vmul.f32 %v3277_v57, %v2442_v5  ;;  %vm2489_vm2 = vcmp.eq.f32.partialorder %v2488_v17, 8.507059e+37 }
 0x954   :  { %v2462_v12 = vmul.f32 %v3279_v1, %v2461_v14 }
 0x955   :  { %v3281_v54 = vpop.eup %3280  ;;  %v2444_v16 = vadd.f32 %v3277_v57, %v2443_v9 }
 0x956   :  { %v2463_v60 = vadd.f32 %v3279_v1, %v2462_v12  ;;  %v2480_v61 = vmul.f32 %v3281_v54, %v2478_v49  ;;  %v3283_v30 = vpop.eup %3282  ;;  %vm2485_vm15 = vweird.f32 %v3281_v54 }
 0x957   :  { %v2448_v28 = vsel %vm2447_vm10, %v3277_v57, %v2444_v16  ;;  %vm2486_vm1 = vmor %vm2484_vm0, %vm2485_vm15 }
 0x958   :  { %v2453_v63 = vsel %vm2450_vm13, %v2452_v39, %v2448_v28  ;;  %v2467_v19 = vsel %vm2466_vm11, %v3279_v1, %v2463_v60  ;;  %v2481_v42 = vsub.f32 1.0, %v2480_v61 }
 0x959   :  { %v2472_v21 = vsel %vm2469_vm14, %v2471_v62, %v2467_v19  ;;  %v2495_v43 = vmul.f32 %v3283_v30, %v2453_v63 }
 0x95a   :  { %v2494_v10 = vmul.f32 %v2472_v21, %v4333_v55  ;;  %v2482_v23 = vmul.f32 %v3281_v54, %v2481_v42  ;;  %v2499_v55 = vld [vmem:[#allocation3 + $0x30] sm:$0xff] }
 0x95c   :  { %v4359_v25 = vadd.f32 %v2495_v43, %v2494_v10  ;;  %v2483_v58 = vadd.f32 %v3281_v54, %v2482_v23 }
 0x95e   :  { %3284 = vtanh.f32 %v4359_v25  ;;  %v2487_v6 = vsel %vm2486_vm1, %v3281_v54, %v2483_v58 }
 0x95f   :  { %v2492_v4 = vsel %vm2489_vm2, %v2491_v26, %v2487_v6  ;;  %v2678_v6 = vld [vmem:[#allocation3 + $0x78] sm:$0xff] }
 0x964   :  { %v3285_v35 = vpop.eup %3284 }
 0x965   :  { %v2498_v36 = vmul.f32 %v3285_v35, %v2492_v4 }
 0x967   :  { %3040 = vmatmul.msk.f32.vlgmr.msrb.gmra.mxu0 %vm47_vm12, %v2498_v36  ;;  %3041 = vmatmul.msk.f32.vlgmr.msrb.gmra.mxu1 %vm47_vm12, %v2498_v36 }
 0x968   :  { %3042 = vmatmul.msk.f32.vlgmr.msrb.gmra.mxu2 %vm47_vm12, %v2498_v36  ;;  %3043 = vmatmul.msk.f32.vlgmr.msrb.gmra.mxu3 %vm47_vm12, %v2498_v36 }
 0x9e4   :  { %v2520_v44 = vpop.f32.mrf.mxu0  ;;  %v2542_v18 = vpop.f32.mrf.mxu1 }
 0x9e5   :  { %v2523_v15 = vadd.f32 %v2520_v44, %v2499_v55  ;;  %v2545_v38 = vadd.f32 %v2542_v18, %v2524_v37  ;;  %v2810_v44 = vld [vmem:[%s4399_s5 + $0x18] sm:$0xff]  ;;  %v2809_v37 = vld [vmem:[%s4399_s5 + $0x10] sm:$0xff]  ;;  %v2808_v18 = vld [vmem:[%s4399_s5 + $0x8] sm:$0xff] }
 0x9e6   :  { %2830 = vmatpush.msrb.mxu0 %v2810_v44 }
 0x9e7   :  { %v3044_v20 = vmul.f32 -1.442695, %v2523_v15  ;;  %v3045_v32 = vmul.f32 -1.442695, %v2545_v38  ;;  %v2722_v15 = vld [vmem:[#allocation3 + $0xf8] sm:$0xff] }
 0x9e8   :  { %2831 = vmatpush.msrb.mxu0 %v2809_v37 }
 0x9e9   :  { %3286 = vpow2.f32 %v3044_v20 }
 0x9ea   :  { %3288 = vpow2.f32 %v3045_v32  ;;  %v2807_v32 = vld [vmem:[%s4399_s5] sm:$0xff]  ;;  %2832 = vmatpush.msrb.mxu0 %v2808_v18 }
 0x9eb   :  { %v2586_v22 = vpop.f32.mrf.mxu3  ;;  %v2564_v48 = vpop.f32.mrf.mxu2 }
 0x9ec   :  { %v2589_v24 = vadd.f32 %v2586_v22, %v2568_v33  ;;  %v2567_v41 = vadd.f32 %v2564_v48, %v2546_v51  ;;  %2833 = vmatpush.msrb.mxu0 %v2807_v32 }
 0x9ee   :  { %v3046_v27 = vmul.f32 -1.442695, %v2589_v24 }
 0x9ef   :  { %v3287_v31 = vpop.eup %3286 }
 0x9f0   :  { %v3289_v46 = vpop.eup %3288  ;;  %v2593_v47 = vadd.f32 1.0, %v3287_v31  ;;  %3290 = vpow2.f32 %v3046_v27 }
 0x9f1   :  { %v2612_v29 = vadd.f32 1.0, %v3289_v46 }
 0x9f2   :  { %3292 = vrcp.f32 %v2593_v47  ;;  %v2605_v57 = vand.u32 2147483648, %v2593_v47  ;;  %v2603_v2 = vand.u32 2147483647, %v2593_v47  ;;  %vm2599_vm5 = vweird.f32 %v2593_v47 }
 0x9f3   :  { %3294 = vrcp.f32 %v2612_v29  ;;  %v2624_v0 = vand.u32 2147483648, %v2612_v29  ;;  %v2622_v5 = vand.u32 2147483647, %v2612_v29  ;;  %vm2618_vm6 = vweird.f32 %v2612_v29 }
 0x9f4   :  { %v2606_v8 = vor.u32 1.1754944e-38, %v2605_v57  ;;  %vm2604_vm9 = vcmp.eq.f32.partialorder %v2603_v2, 8.507059e+37 }
 0x9f5   :  { %v2625_v12 = vor.u32 1.1754944e-38, %v2624_v0  ;;  %vm2623_vm10 = vcmp.eq.f32.partialorder %v2622_v5, 8.507059e+37 }
 0x9f6   :  { %v3291_v50 = vpop.eup %3290 }
 0x9f7   :  { %v2632_v34 = vadd.f32 1.0, %v3291_v50 }
 0x9f8   :  { %v3293_v53 = vpop.eup %3292 }
 0x9f9   :  { %v3295_v40 = vpop.eup %3294  ;;  %v2595_v56 = vmul.f32 %v3293_v53, %v2593_v47  ;;  %3296 = vrcp.f32 %v2632_v34  ;;  %vm2600_vm3 = vweird.f32 %v3293_v53  ;;  %v2644_v42 = vand.u32 2147483648, %v2632_v34 }
 0x9fa   :  { %v2614_v45 = vmul.f32 %v3295_v40, %v2612_v29  ;;  %3298 = vtanh.f32 %v2567_v41  ;;  %vm2619_vm4 = vweird.f32 %v3295_v40  ;;  %vm2601_vm7 = vmor %vm2599_vm5, %vm2600_vm3  ;;  %vm2638_vm13 = vweird.f32 %v2632_v34  ;;  %v2700_v29 = vld [vmem:[#allocation3 + $0xb8] sm:$0xff] }
 0x9fb   :  { %v2596_v52 = vsub.f32 1.0, %v2595_v56  ;;  %vm2620_vm8 = vmor %vm2618_vm6, %vm2619_vm4  ;;  %v2642_v21 = vand.u32 2147483647, %v2632_v34  ;;  %v2645_v10 = vor.u32 1.1754944e-38, %v2644_v42 }
 0x9fc   :  { %v2615_v49 = vsub.f32 1.0, %v2614_v45 }
 0x9fd   :  { %v2597_v1 = vmul.f32 %v3293_v53, %v2596_v52  ;;  %vm2643_vm15 = vcmp.eq.f32.partialorder %v2642_v21, 8.507059e+37 }
 0x9fe   :  { %v2616_v3 = vmul.f32 %v3295_v40, %v2615_v49 }
 0x9ff   :  { %v3297_v14 = vpop.eup %3296  ;;  %v2598_v7 = vadd.f32 %v3293_v53, %v2597_v1 }
 0xa00   :  { %v2617_v9 = vadd.f32 %v3295_v40, %v2616_v3  ;;  %v2634_v11 = vmul.f32 %v3297_v14, %v2632_v34  ;;  %v3299_v54 = vpop.eup %3298  ;;  %vm2639_vm11 = vweird.f32 %v3297_v14 }
 0xa01   :  { %v2602_v13 = vsel %vm2601_vm7, %v3293_v53, %v2598_v7  ;;  %vm2640_vm14 = vmor %vm2638_vm13, %vm2639_vm11 }
 0xa02   :  { %v2607_v16 = vsel %vm2604_vm9, %v2606_v8, %v2602_v13  ;;  %v2621_v39 = vsel %vm2620_vm8, %v3295_v40, %v2617_v9  ;;  %v2635_v60 = vsub.f32 1.0, %v2634_v11 }
 0xa03   :  { %v2626_v61 = vsel %vm2623_vm10, %v2625_v12, %v2621_v39  ;;  %v2649_v62 = vmul.f32 %v3299_v54, %v2607_v16 }
 0xa04   :  { %v2648_v28 = vmul.f32 %v2626_v61, %v4359_v25  ;;  %v2636_v30 = vmul.f32 %v3297_v14, %v2635_v60  ;;  %v2653_v25 = vld [vmem:[#allocation3 + $0x38] sm:$0xff] }
 0xa06   :  { %v4367_v63 = vadd.f32 %v2649_v62, %v2648_v28  ;;  %v2637_v19 = vadd.f32 %v3297_v14, %v2636_v30 }
 0xa08   :  { %3300 = vtanh.f32 %v4367_v63  ;;  %v2641_v43 = vsel %vm2640_vm14, %v3297_v14, %v2637_v19 }
 0xa09   :  { %v2646_v58 = vsel %vm2643_vm15, %v2645_v10, %v2641_v43 }
 0xa0e   :  { %v3301_v23 = vpop.eup %3300 }
 0xa0f   :  { %v2652_v59 = vmul.f32 %v3301_v23, %v2646_v58 }
 0xa11   :  { %3047 = vmatmul.msk.f32.vlgmr.msra.gmra.mxu0 %vm47_vm12, %v2652_v59  ;;  %3048 = vmatmul.msk.f32.vlgmr.msra.gmra.mxu1 %vm47_vm12, %v2652_v59 }
 0xa12   :  { %3049 = vmatmul.msk.f32.vlgmr.msra.gmra.mxu2 %vm47_vm12, %v2652_v59  ;;  %3050 = vmatmul.msk.f32.vlgmr.msra.gmra.mxu3 %vm47_vm12, %v2652_v59 }
 0xa8e   :  { %v2674_v17 = vpop.f32.mrf.mxu0  ;;  %v2696_v26 = vpop.f32.mrf.mxu1 }
 0xa8f   :  { %v2677_v35 = vadd.f32 %v2674_v17, %v2653_v25  ;;  %v2699_v4 = vadd.f32 %v2696_v26, %v2678_v6 }
 0xa91   :  { %v3051_v36 = vmul.f32 -1.442695, %v2677_v35  ;;  %v3052_v55 = vmul.f32 -1.442695, %v2699_v4 }
 0xa93   :  { %3302 = vpow2.f32 %v3051_v36 }
 0xa94   :  { %3304 = vpow2.f32 %v3052_v55 }
 0xa95   :  { %v2740_v38 = vpop.f32.mrf.mxu3  ;;  %v2718_v46 = vpop.f32.mrf.mxu2 }
 0xa96   :  { %v2743_v20 = vadd.f32 %v2740_v38, %v2722_v15  ;;  %v2721_v51 = vadd.f32 %v2718_v46, %v2700_v29 }
 0xa98   :  { %v3053_v33 = vmul.f32 -1.442695, %v2743_v20 }
 0xa99   :  { %v3303_v22 = vpop.eup %3302 }
 0xa9a   :  { %v3305_v24 = vpop.eup %3304  ;;  %v2747_v27 = vadd.f32 1.0, %v3303_v22  ;;  %3306 = vpow2.f32 %v3053_v33 }
 0xa9b   :  { %v2766_v31 = vadd.f32 1.0, %v3305_v24 }
 0xa9c   :  { %3308 = vrcp.f32 %v2747_v27  ;;  %v2759_v45 = vand.u32 2147483648, %v2747_v27  ;;  %v2757_v57 = vand.u32 2147483647, %v2747_v27  ;;  %vm2753_vm2 = vweird.f32 %v2747_v27 }
 0xa9d   :  { %3310 = vrcp.f32 %v2766_v31  ;;  %v2778_v52 = vand.u32 2147483648, %v2766_v31  ;;  %v2776_v1 = vand.u32 2147483647, %v2766_v31  ;;  %vm2772_vm3 = vweird.f32 %v2766_v31 }
 0xa9e   :  { %v2760_v5 = vor.u32 1.1754944e-38, %v2759_v45  ;;  %vm2758_vm6 = vcmp.eq.f32.partialorder %v2757_v57, 8.507059e+37 }
 0xa9f   :  { %v2779_v8 = vor.u32 1.1754944e-38, %v2778_v52  ;;  %vm2777_vm7 = vcmp.eq.f32.partialorder %v2776_v1, 8.507059e+37 }
 0xaa0   :  { %v3307_v47 = vpop.eup %3306 }
 0xaa1   :  { %v2786_v48 = vadd.f32 1.0, %v3307_v47 }
 0xaa2   :  { %v3309_v50 = vpop.eup %3308 }
 0xaa3   :  { %v3311_v34 = vpop.eup %3310  ;;  %v2749_v53 = vmul.f32 %v3309_v50, %v2747_v27  ;;  %3312 = vrcp.f32 %v2786_v48  ;;  %vm2754_vm0 = vweird.f32 %v3309_v50  ;;  %v2798_v30 = vand.u32 2147483648, %v2786_v48 }
 0xaa4   :  { %v2768_v41 = vmul.f32 %v3311_v34, %v2766_v31  ;;  %3314 = vtanh.f32 %v2721_v51  ;;  %vm2773_vm1 = vweird.f32 %v3311_v34  ;;  %vm2755_vm4 = vmor %vm2753_vm2, %vm2754_vm0  ;;  %vm2792_vm9 = vweird.f32 %v2786_v48 }
 0xaa5   :  { %v2750_v40 = vsub.f32 1.0, %v2749_v53  ;;  %vm2774_vm5 = vmor %vm2772_vm3, %vm2773_vm1  ;;  %v2796_v19 = vand.u32 2147483647, %v2786_v48  ;;  %v2799_v21 = vor.u32 1.1754944e-38, %v2798_v30 }
 0xaa6   :  { %v2769_v56 = vsub.f32 1.0, %v2768_v41 }
 0xaa7   :  { %v2751_v49 = vmul.f32 %v3309_v50, %v2750_v40  ;;  %vm2797_vm11 = vcmp.eq.f32.partialorder %v2796_v19, 8.507059e+37 }
 0xaa8   :  { %v2770_v0 = vmul.f32 %v3311_v34, %v2769_v56 }
 0xaa9   :  { %v3313_v2 = vpop.eup %3312  ;;  %v2752_v3 = vadd.f32 %v3309_v50, %v2751_v49 }
 0xaaa   :  { %v2771_v14 = vadd.f32 %v3311_v34, %v2770_v0  ;;  %v2788_v7 = vmul.f32 %v3313_v2, %v2786_v48  ;;  %v3315_v11 = vpop.eup %3314  ;;  %vm2793_vm8 = vweird.f32 %v3313_v2 }
 0xaab   :  { %v2756_v9 = vsel %vm2755_vm4, %v3309_v50, %v2752_v3  ;;  %vm2794_vm10 = vmor %vm2792_vm9, %vm2793_vm8 }
 0xaac   :  { %v2761_v12 = vsel %vm2758_vm6, %v2760_v5, %v2756_v9  ;;  %v2775_v13 = vsel %vm2774_vm5, %v3311_v34, %v2771_v14  ;;  %v2789_v54 = vsub.f32 1.0, %v2788_v7 }
 0xaad   :  { %v2780_v16 = vsel %vm2777_vm7, %v2779_v8, %v2775_v13  ;;  %v2803_v39 = vmul.f32 %v3315_v11, %v2761_v12 }
 0xaae   :  { %v2802_v60 = vmul.f32 %v2780_v16, %v4367_v63  ;;  %v2790_v61 = vmul.f32 %v3313_v2, %v2789_v54  ;;  %v3061_v63 = vld [vmem:[%s4400_s6] ss:$0 sm:$0xff] }
 0xab0   :  { %v2804_v62 = vadd.f32 %v2803_v39, %v2802_v60  ;;  %v2791_v28 = vadd.f32 %v3313_v2, %v2790_v61 }
 0xab2   :  { %3316 = vtanh.f32 %v2804_v62  ;;  %v2795_v42 = vsel %vm2794_vm10, %v3313_v2, %v2791_v28 }
 0xab3   :  { %v2800_v10 = vsel %vm2797_vm11, %v2799_v21, %v2795_v42 }
 0xab8   :  { %v3317_v43 = vpop.eup %3316 }
 0xab9   :  { %v2806_v23 = vmul.f32 %v3317_v43, %v2800_v10 }
 0xabb   :  { %3054 = vmatmul.msk.f32.vlgmr.msrb.gmra.mxu0 %vm47_vm12, %v2806_v23 }
 0xb38   :  { %v2835_v58 = vpop.f32.mrf.mxu0 }
 0xb39   :  { %v2836_v59 = vadd.f32 %v3061_v63, %v2835_v58 }
 0xb3b   :  { %2838 = vst [vmem:[#allocation4] sm:$0xff] %v2836_v59 }
 0xb3c   :  { %2849 = dma.vmem_to_hbm [thread:$0]  %s2845_s20, 128, %s2847_s23, [#allocation5]  }
 0xb3d   :  { %3374 = dma.done.wait [#allocation5], 128  }
 0xb3e   :  { %3375 = vsyncadd [#allocation5], 4294967168 }
 0xb3f   :  { %2854 = vsyncpa [#allocation5], 1 }

</bundles_post_ra>
